<compile_context>
chip_gen: v6e
topology: v6e:2x2x1
jax: 0.10.0
libtpu: 0.0.40
codegen_flags: <defaults>
</compile_context>

<pallas_src>
import functools

import jax
import jax.numpy as jnp
from jax.experimental import pallas as pl
from jax.experimental.pallas import tpu as pltpu


def _elu(v):
    # torch.nn.ELU(alpha=1): v if v > 0 else exp(v) - 1   (one EUP exp per elem)
    return jnp.where(v > 0, v, jnp.exp(v) - 1.0)


def _resnet_block_kernel(x_ref, w1_ref, w2_ref, wd_ref, bd_ref, out_ref,
                         *, dilations, stride, kernel_size):
    """One batch element per grid step.

    x_ref  : (1, T, C_in)              activation tile (pipelined)
    w1_ref : (U*K, C_in, C_in)         dilated-conv taps, unit-major (resident)
    w2_ref : (U, C_in, C_in)           1x1 conv weights per unit (resident)
    wd_ref : (2*stride, C_in, C_out)   downsampling conv taps (resident)
    bd_ref : (1, C_out)                downsampling conv bias (resident)
    out_ref: (1, T_out, C_out)
    """
    K = kernel_size
    x = x_ref[0].astype(jnp.float32)                       # (T, C_in)
    T, C = x.shape

    # ---- three causal residual units ------------------------------------
    for u, d in enumerate(dilations):
        a = _elu(x)                                        # (T, C)
        pad = (K - 1) * d
        # CausalConv1d zero-pads the *activated* signal on the left.
        ap = jnp.concatenate(
            [jnp.zeros((pad, C), jnp.float32), a], axis=0)  # (T + pad, C)
        y = jnp.zeros((T, C), jnp.float32)
        for k in range(K):                                 # K shifted MXU matmuls
            y = y + jnp.dot(ap[k * d:k * d + T, :], w1_ref[u * K + k],
                            preferred_element_type=jnp.float32)
        y = _elu(y)
        y = jnp.dot(y, w2_ref[u],                          # 1x1 conv (no bias)
                    preferred_element_type=jnp.float32)
        x = x + y                                          # residual

    # ---- strided causal downsampling conv (kernel = 2*stride) ------------
    Kd = wd_ref.shape[0]                                   # 2 * stride
    C_out = wd_ref.shape[2]
    ap = jnp.concatenate(
        [jnp.zeros((Kd - 1, C), jnp.float32), x], axis=0)  # (T + 2s - 1, C)
    yd = jnp.zeros((T, C_out), jnp.float32)
    for k in range(Kd):
        yd = yd + jnp.dot(ap[k:k + T, :], wd_ref[k],
                          preferred_element_type=jnp.float32)
    # Keep rows 0, s, 2s, ... : 0/1 selection matmul on the MXU instead of a
    # strided sublane gather, then fold in the bias.
    T_out = T // stride
    rows = jax.lax.broadcasted_iota(jnp.int32, (T_out, T), 0)
    cols = jax.lax.broadcasted_iota(jnp.int32, (T_out, T), 1)
    sel = (cols == rows * stride).astype(jnp.float32)      # (T_out, T)
    out = jnp.dot(sel, yd, preferred_element_type=jnp.float32) + bd_ref[...]
    out_ref[0] = out.astype(out_ref.dtype)


def resnet_block_forward(x, w1, w2, wd, bd, *, dilations, stride, kernel_size):
    """x: (B, T, C_in); w1: (U*K, C_in, C_in); w2: (U, C_in, C_in);
    wd: (2*stride, C_in, C_out); bd: (C_out,)."""
    B, T, C_in = x.shape
    Kd, _, C_out = wd.shape
    assert Kd == 2 * stride
    assert T % stride == 0, "demo kernel assumes T divisible by stride"
    assert w1.shape[0] == len(dilations) * kernel_size
    T_out = T // stride
    U = len(dilations)

    kernel = functools.partial(_resnet_block_kernel,
                               dilations=tuple(dilations),
                               stride=stride,
                               kernel_size=kernel_size)
    bd2 = bd.reshape(1, C_out)

    # Advisory cost estimate so XLA schedules sensibly around the custom call.
    flops_per_row = (
        U * (2 * kernel_size * T * C_in * C_in + 2 * T * C_in * C_in)  # res units
        + 2 * Kd * T * C_in * C_out                                    # down conv
        + 2 * T_out * T * C_out)                                       # selection
    cost = pl.CostEstimate(
        flops=int(B * flops_per_row),
        transcendentals=int(B * U * 2 * T * C_in),                     # ELU exps
        bytes_accessed=int(4 * (x.size + w1.size + w2.size + wd.size + bd.size
                                + B * T_out * C_out)),
    )

    return pl.pallas_call(
        kernel,
        out_shape=jax.ShapeDtypeStruct((B, T_out, C_out), x.dtype),
        grid=(B,),
        in_specs=[
            pl.BlockSpec((1, T, C_in), lambda b: (b, 0, 0)),      # x (streamed)
            pl.BlockSpec(w1.shape, lambda b: (0, 0, 0)),          # weights stay
            pl.BlockSpec(w2.shape, lambda b: (0, 0, 0)),          # resident via
            pl.BlockSpec(wd.shape, lambda b: (0, 0, 0)),          # constant
            pl.BlockSpec((1, C_out), lambda b: (0, 0)),           # index_maps
        ],
        out_specs=pl.BlockSpec((1, T_out, C_out), lambda b: (b, 0, 0)),
        compiler_params=pltpu.CompilerParams(
            dimension_semantics=("parallel",),   # shard batch across TCs (v7x)
            vmem_limit_bytes=32 << 20,           # safe on 64 MiB-VMEM v7x too
        ),
        cost_estimate=cost,
    )(x, w1, w2, wd, bd2)


def _reference(x, w1, w2, wd, bd, *, dilations, stride, kernel_size):
    """Independent pure-JAX reference mirroring the torch ResNetBlock forward."""
    dn = ('NCH', 'OIH', 'NCH')
    hp = jax.lax.Precision.HIGHEST
    K = kernel_size
    xb = jnp.transpose(x, (0, 2, 1))                       # (B, C, T) torch layout
    for u, d in enumerate(dilations):
        a = _elu(xb)
        w = w1[u * K:(u + 1) * K]                          # (K, in, out)
        wt = jnp.transpose(w, (2, 1, 0))                   # -> (out, in, K)
        pad = (K - 1) * d
        y = jax.lax.conv_general_dilated(a, wt, (1,), [(pad, 0)],
                                         rhs_dilation=(d,),
                                         dimension_numbers=dn, precision=hp)
        y = _elu(y)
        w2t = jnp.transpose(w2[u], (1, 0))[:, :, None]     # (in,out)->(out,in,1)
        y = jax.lax.conv_general_dilated(y, w2t, (1,), [(0, 0)],
                                         dimension_numbers=dn, precision=hp)
        xb = xb + y
    Kd = wd.shape[0]
    wdt = jnp.transpose(wd, (2, 1, 0))                     # (out, in, Kd)
    y = jax.lax.conv_general_dilated(xb, wdt, (stride,), [(Kd - 1, 0)],
                                     dimension_numbers=dn, precision=hp)
    y = y + bd[None, :, None]
    return jnp.transpose(y, (0, 2, 1))                     # (B, T_out, C_out)


if __name__ == "__main__":
    B, T = 2, 64
    in_channels, out_channels = 16, 32
    stride = 2
    kernel_size = 7
    dilations = (1, 3, 9)
    U = len(dilations)
    Kd = 2 * stride

    key = jax.random.PRNGKey(0)
    k_x, k_w1, k_w2, k_wd, k_bd = jax.random.split(key, 5)

    x = jax.random.normal(k_x, (B, T, in_channels), dtype=jnp.float32)

    # CausalConv1d(res_ch, res_ch, k=7, dilation=d, bias=False) weights of the 3
    # residual units, torch layout (out, in, k) stored pre-transposed and
    # flattened as (unit*K + k, in, out); nn.Conv1d-like init scale.
    w1 = jax.random.uniform(k_w1, (U * kernel_size, in_channels, in_channels),
                            dtype=jnp.float32, minval=-1.0, maxval=1.0)
    w1 = w1 / jnp.sqrt(in_channels * kernel_size)
    # Conv1d1x1(res_ch, res_ch, bias=False) weights per unit, stored (in, out).
    w2 = jax.random.uniform(k_w2, (U, in_channels, in_channels),
                            dtype=jnp.float32, minval=-1.0, maxval=1.0)
    w2 = w2 / jnp.sqrt(in_channels)
    # Downsampling CausalConv1d(in, out, kernel=2*stride, stride=stride, bias=True),
    # stored (k, in, out) + bias.
    wd = jax.random.uniform(k_wd, (Kd, in_channels, out_channels),
                            dtype=jnp.float32, minval=-1.0, maxval=1.0)
    wd = wd / jnp.sqrt(in_channels * Kd)
    bd = jax.random.uniform(k_bd, (out_channels,), dtype=jnp.float32,
                            minval=-0.1, maxval=0.1)

    out = resnet_block_forward(x, w1, w2, wd, bd,
                               dilations=dilations, stride=stride,
                               kernel_size=kernel_size)
    out = jax.block_until_ready(out)

    ref = _reference(x, w1, w2, wd, bd,
                     dilations=dilations, stride=stride,
                     kernel_size=kernel_size)
    assert out.shape == (B, T // stride, out_channels)
    assert jnp.allclose(out, ref, atol=1e-3, rtol=1e-3), \
        float(jnp.max(jnp.abs(out - ref)))

    print("KERNEL_OK")
</pallas_src>

<mosaic_0001>
module attributes {stable_mosaic.version = 11 : i64} {
  func.func @_resnet_block_kernel(%arg0: i32, %arg1: memref<1x64x16xf32, #tpu.memory_space<vmem>>, %arg2: memref<21x16x16xf32, #tpu.memory_space<vmem>>, %arg3: memref<3x16x16xf32, #tpu.memory_space<vmem>>, %arg4: memref<4x16x32xf32, #tpu.memory_space<vmem>>, %arg5: memref<1x32xf32, #tpu.memory_space<vmem>>, %arg6: memref<1x32x32xf32, #tpu.memory_space<vmem>>) attributes {dimension_semantics = [#tpu.dimension_semantics<parallel>], iteration_bounds = array<i64: 2>, scalar_prefetch = 0 : i64, scratch_operands = 0 : i64, tpu.core_type = #tpu.core_type<tc>, window_params = [{transform_indices = @transform_0, window_bounds = array<i64: 1, 64, 16>}, {pipeline_mode = #tpu.pipeline_mode<synchronous>, transform_indices = @transform_1, window_bounds = array<i64: 21, 16, 16>}, {pipeline_mode = #tpu.pipeline_mode<synchronous>, transform_indices = @transform_2, window_bounds = array<i64: 3, 16, 16>}, {pipeline_mode = #tpu.pipeline_mode<synchronous>, transform_indices = @transform_3, window_bounds = array<i64: 4, 16, 32>}, {pipeline_mode = #tpu.pipeline_mode<synchronous>, transform_indices = @transform_4, window_bounds = array<i64: 1, 32>}, {transform_indices = @transform_5, window_bounds = array<i64: 1, 32, 32>}]} {
    %c0 = arith.constant 0 : index
    %c0_0 = arith.constant 0 : index
    %c0_1 = arith.constant 0 : index
    %0 = vector.load %arg1[%c0, %c0_0, %c0_1] : memref<1x64x16xf32, #tpu.memory_space<vmem>>, vector<1x64x16xf32>
    %1 = vector.shape_cast %0 : vector<1x64x16xf32> to vector<64x16xf32>
    %cst = arith.constant 0.000000e+00 : f32
    %2 = vector.broadcast %cst : f32 to vector<64x16xf32>
    %3 = arith.cmpf ogt, %1, %2 : vector<64x16xf32>
    %4 = math.exp %1 : vector<64x16xf32>
    %cst_2 = arith.constant 1.000000e+00 : f32
    %5 = vector.broadcast %cst_2 : f32 to vector<64x16xf32>
    %6 = arith.subf %4, %5 : vector<64x16xf32>
    %7 = arith.select %3, %1, %6 : vector<64x16xi1>, vector<64x16xf32>
    %cst_3 = arith.constant 0.000000e+00 : f32
    %8 = vector.broadcast %cst_3 : f32 to vector<6x16xf32>
    %9 = tpu.concatenate %8, %7 in 0 : vector<6x16xf32>, vector<64x16xf32> -> vector<70x16xf32>
    %cst_4 = arith.constant 0.000000e+00 : f32
    %10 = vector.broadcast %cst_4 : f32 to vector<64x16xf32>
    %11 = vector.extract_strided_slice %9 {offsets = [0, 0], sizes = [64, 16], strides = [1, 1]} : vector<70x16xf32> to vector<64x16xf32>
    %c0_5 = arith.constant 0 : index
    %c0_6 = arith.constant 0 : index
    %c0_7 = arith.constant 0 : index
    %12 = vector.load %arg2[%c0_5, %c0_6, %c0_7] : memref<21x16x16xf32, #tpu.memory_space<vmem>>, vector<1x16x16xf32>
    %13 = vector.shape_cast %12 : vector<1x16x16xf32> to vector<16x16xf32>
    %cst_8 = arith.constant dense<0.000000e+00> : vector<64x16xf32>
    %14 = tpu.matmul %11, %13, %cst_8 {dimension_numbers = #tpu.dot_dimension_numbers<[1], [0], [0], [1], [0, 0, 1, 1], [], []>} : vector<64x16xf32>, vector<16x16xf32>, vector<64x16xf32> -> vector<64x16xf32>
    %15 = arith.addf %10, %14 : vector<64x16xf32>
    %16 = vector.extract_strided_slice %9 {offsets = [1, 0], sizes = [64, 16], strides = [1, 1]} : vector<70x16xf32> to vector<64x16xf32>
    %c1 = arith.constant 1 : index
    %c0_9 = arith.constant 0 : index
    %c0_10 = arith.constant 0 : index
    %17 = vector.load %arg2[%c1, %c0_9, %c0_10] : memref<21x16x16xf32, #tpu.memory_space<vmem>>, vector<1x16x16xf32>
    %18 = vector.shape_cast %17 : vector<1x16x16xf32> to vector<16x16xf32>
    %cst_11 = arith.constant dense<0.000000e+00> : vector<64x16xf32>
    %19 = tpu.matmul %16, %18, %cst_11 {dimension_numbers = #tpu.dot_dimension_numbers<[1], [0], [0], [1], [0, 0, 1, 1], [], []>} : vector<64x16xf32>, vector<16x16xf32>, vector<64x16xf32> -> vector<64x16xf32>
    %20 = arith.addf %15, %19 : vector<64x16xf32>
    %21 = vector.extract_strided_slice %9 {offsets = [2, 0], sizes = [64, 16], strides = [1, 1]} : vector<70x16xf32> to vector<64x16xf32>
    %c2 = arith.constant 2 : index
    %c0_12 = arith.constant 0 : index
    %c0_13 = arith.constant 0 : index
    %22 = vector.load %arg2[%c2, %c0_12, %c0_13] : memref<21x16x16xf32, #tpu.memory_space<vmem>>, vector<1x16x16xf32>
    %23 = vector.shape_cast %22 : vector<1x16x16xf32> to vector<16x16xf32>
    %cst_14 = arith.constant dense<0.000000e+00> : vector<64x16xf32>
    %24 = tpu.matmul %21, %23, %cst_14 {dimension_numbers = #tpu.dot_dimension_numbers<[1], [0], [0], [1], [0, 0, 1, 1], [], []>} : vector<64x16xf32>, vector<16x16xf32>, vector<64x16xf32> -> vector<64x16xf32>
    %25 = arith.addf %20, %24 : vector<64x16xf32>
    %26 = vector.extract_strided_slice %9 {offsets = [3, 0], sizes = [64, 16], strides = [1, 1]} : vector<70x16xf32> to vector<64x16xf32>
    %c3 = arith.constant 3 : index
    %c0_15 = arith.constant 0 : index
    %c0_16 = arith.constant 0 : index
    %27 = vector.load %arg2[%c3, %c0_15, %c0_16] : memref<21x16x16xf32, #tpu.memory_space<vmem>>, vector<1x16x16xf32>
    %28 = vector.shape_cast %27 : vector<1x16x16xf32> to vector<16x16xf32>
    %cst_17 = arith.constant dense<0.000000e+00> : vector<64x16xf32>
    %29 = tpu.matmul %26, %28, %cst_17 {dimension_numbers = #tpu.dot_dimension_numbers<[1], [0], [0], [1], [0, 0, 1, 1], [], []>} : vector<64x16xf32>, vector<16x16xf32>, vector<64x16xf32> -> vector<64x16xf32>
    %30 = arith.addf %25, %29 : vector<64x16xf32>
    %31 = vector.extract_strided_slice %9 {offsets = [4, 0], sizes = [64, 16], strides = [1, 1]} : vector<70x16xf32> to vector<64x16xf32>
    %c4 = arith.constant 4 : index
    %c0_18 = arith.constant 0 : index
    %c0_19 = arith.constant 0 : index
    %32 = vector.load %arg2[%c4, %c0_18, %c0_19] : memref<21x16x16xf32, #tpu.memory_space<vmem>>, vector<1x16x16xf32>
    %33 = vector.shape_cast %32 : vector<1x16x16xf32> to vector<16x16xf32>
    %cst_20 = arith.constant dense<0.000000e+00> : vector<64x16xf32>
    %34 = tpu.matmul %31, %33, %cst_20 {dimension_numbers = #tpu.dot_dimension_numbers<[1], [0], [0], [1], [0, 0, 1, 1], [], []>} : vector<64x16xf32>, vector<16x16xf32>, vector<64x16xf32> -> vector<64x16xf32>
    %35 = arith.addf %30, %34 : vector<64x16xf32>
    %36 = vector.extract_strided_slice %9 {offsets = [5, 0], sizes = [64, 16], strides = [1, 1]} : vector<70x16xf32> to vector<64x16xf32>
    %c5 = arith.constant 5 : index
    %c0_21 = arith.constant 0 : index
    %c0_22 = arith.constant 0 : index
    %37 = vector.load %arg2[%c5, %c0_21, %c0_22] : memref<21x16x16xf32, #tpu.memory_space<vmem>>, vector<1x16x16xf32>
    %38 = vector.shape_cast %37 : vector<1x16x16xf32> to vector<16x16xf32>
    %cst_23 = arith.constant dense<0.000000e+00> : vector<64x16xf32>
    %39 = tpu.matmul %36, %38, %cst_23 {dimension_numbers = #tpu.dot_dimension_numbers<[1], [0], [0], [1], [0, 0, 1, 1], [], []>} : vector<64x16xf32>, vector<16x16xf32>, vector<64x16xf32> -> vector<64x16xf32>
    %40 = arith.addf %35, %39 : vector<64x16xf32>
    %41 = vector.extract_strided_slice %9 {offsets = [6, 0], sizes = [64, 16], strides = [1, 1]} : vector<70x16xf32> to vector<64x16xf32>
    %c6 = arith.constant 6 : index
    %c0_24 = arith.constant 0 : index
    %c0_25 = arith.constant 0 : index
    %42 = vector.load %arg2[%c6, %c0_24, %c0_25] : memref<21x16x16xf32, #tpu.memory_space<vmem>>, vector<1x16x16xf32>
    %43 = vector.shape_cast %42 : vector<1x16x16xf32> to vector<16x16xf32>
    %cst_26 = arith.constant dense<0.000000e+00> : vector<64x16xf32>
    %44 = tpu.matmul %41, %43, %cst_26 {dimension_numbers = #tpu.dot_dimension_numbers<[1], [0], [0], [1], [0, 0, 1, 1], [], []>} : vector<64x16xf32>, vector<16x16xf32>, vector<64x16xf32> -> vector<64x16xf32>
    %45 = arith.addf %40, %44 : vector<64x16xf32>
    %cst_27 = arith.constant 0.000000e+00 : f32
    %46 = vector.broadcast %cst_27 : f32 to vector<64x16xf32>
    %47 = arith.cmpf ogt, %45, %46 : vector<64x16xf32>
    %48 = math.exp %45 : vector<64x16xf32>
    %cst_28 = arith.constant 1.000000e+00 : f32
    %49 = vector.broadcast %cst_28 : f32 to vector<64x16xf32>
    %50 = arith.subf %48, %49 : vector<64x16xf32>
    %51 = arith.select %47, %45, %50 : vector<64x16xi1>, vector<64x16xf32>
    %c0_29 = arith.constant 0 : index
    %c0_30 = arith.constant 0 : index
    %c0_31 = arith.constant 0 : index
    %52 = vector.load %arg3[%c0_29, %c0_30, %c0_31] : memref<3x16x16xf32, #tpu.memory_space<vmem>>, vector<1x16x16xf32>
    %53 = vector.shape_cast %52 : vector<1x16x16xf32> to vector<16x16xf32>
    %cst_32 = arith.constant dense<0.000000e+00> : vector<64x16xf32>
    %54 = tpu.matmul %51, %53, %cst_32 {dimension_numbers = #tpu.dot_dimension_numbers<[1], [0], [0], [1], [0, 0, 1, 1], [], []>} : vector<64x16xf32>, vector<16x16xf32>, vector<64x16xf32> -> vector<64x16xf32>
    %55 = arith.addf %1, %54 : vector<64x16xf32>
    %cst_33 = arith.constant 0.000000e+00 : f32
    %56 = vector.broadcast %cst_33 : f32 to vector<64x16xf32>
    %57 = arith.cmpf ogt, %55, %56 : vector<64x16xf32>
    %58 = math.exp %55 : vector<64x16xf32>
    %cst_34 = arith.constant 1.000000e+00 : f32
    %59 = vector.broadcast %cst_34 : f32 to vector<64x16xf32>
    %60 = arith.subf %58, %59 : vector<64x16xf32>
    %61 = arith.select %57, %55, %60 : vector<64x16xi1>, vector<64x16xf32>
    %cst_35 = arith.constant 0.000000e+00 : f32
    %62 = vector.broadcast %cst_35 : f32 to vector<18x16xf32>
    %63 = tpu.concatenate %62, %61 in 0 : vector<18x16xf32>, vector<64x16xf32> -> vector<82x16xf32>
    %cst_36 = arith.constant 0.000000e+00 : f32
    %64 = vector.broadcast %cst_36 : f32 to vector<64x16xf32>
    %65 = vector.extract_strided_slice %63 {offsets = [0, 0], sizes = [64, 16], strides = [1, 1]} : vector<82x16xf32> to vector<64x16xf32>
    %c7 = arith.constant 7 : index
    %c0_37 = arith.constant 0 : index
    %c0_38 = arith.constant 0 : index
    %66 = vector.load %arg2[%c7, %c0_37, %c0_38] : memref<21x16x16xf32, #tpu.memory_space<vmem>>, vector<1x16x16xf32>
    %67 = vector.shape_cast %66 : vector<1x16x16xf32> to vector<16x16xf32>
    %cst_39 = arith.constant dense<0.000000e+00> : vector<64x16xf32>
    %68 = tpu.matmul %65, %67, %cst_39 {dimension_numbers = #tpu.dot_dimension_numbers<[1], [0], [0], [1], [0, 0, 1, 1], [], []>} : vector<64x16xf32>, vector<16x16xf32>, vector<64x16xf32> -> vector<64x16xf32>
    %69 = arith.addf %64, %68 : vector<64x16xf32>
    %70 = vector.extract_strided_slice %63 {offsets = [3, 0], sizes = [64, 16], strides = [1, 1]} : vector<82x16xf32> to vector<64x16xf32>
    %c8 = arith.constant 8 : index
    %c0_40 = arith.constant 0 : index
    %c0_41 = arith.constant 0 : index
    %71 = vector.load %arg2[%c8, %c0_40, %c0_41] : memref<21x16x16xf32, #tpu.memory_space<vmem>>, vector<1x16x16xf32>
    %72 = vector.shape_cast %71 : vector<1x16x16xf32> to vector<16x16xf32>
    %cst_42 = arith.constant dense<0.000000e+00> : vector<64x16xf32>
    %73 = tpu.matmul %70, %72, %cst_42 {dimension_numbers = #tpu.dot_dimension_numbers<[1], [0], [0], [1], [0, 0, 1, 1], [], []>} : vector<64x16xf32>, vector<16x16xf32>, vector<64x16xf32> -> vector<64x16xf32>
    %74 = arith.addf %69, %73 : vector<64x16xf32>
    %75 = vector.extract_strided_slice %63 {offsets = [6, 0], sizes = [64, 16], strides = [1, 1]} : vector<82x16xf32> to vector<64x16xf32>
    %c9 = arith.constant 9 : index
    %c0_43 = arith.constant 0 : index
    %c0_44 = arith.constant 0 : index
    %76 = vector.load %arg2[%c9, %c0_43, %c0_44] : memref<21x16x16xf32, #tpu.memory_space<vmem>>, vector<1x16x16xf32>
    %77 = vector.shape_cast %76 : vector<1x16x16xf32> to vector<16x16xf32>
    %cst_45 = arith.constant dense<0.000000e+00> : vector<64x16xf32>
    %78 = tpu.matmul %75, %77, %cst_45 {dimension_numbers = #tpu.dot_dimension_numbers<[1], [0], [0], [1], [0, 0, 1, 1], [], []>} : vector<64x16xf32>, vector<16x16xf32>, vector<64x16xf32> -> vector<64x16xf32>
    %79 = arith.addf %74, %78 : vector<64x16xf32>
    %80 = vector.extract_strided_slice %63 {offsets = [9, 0], sizes = [64, 16], strides = [1, 1]} : vector<82x16xf32> to vector<64x16xf32>
    %c10 = arith.constant 10 : index
    %c0_46 = arith.constant 0 : index
    %c0_47 = arith.constant 0 : index
    %81 = vector.load %arg2[%c10, %c0_46, %c0_47] : memref<21x16x16xf32, #tpu.memory_space<vmem>>, vector<1x16x16xf32>
    %82 = vector.shape_cast %81 : vector<1x16x16xf32> to vector<16x16xf32>
    %cst_48 = arith.constant dense<0.000000e+00> : vector<64x16xf32>
    %83 = tpu.matmul %80, %82, %cst_48 {dimension_numbers = #tpu.dot_dimension_numbers<[1], [0], [0], [1], [0, 0, 1, 1], [], []>} : vector<64x16xf32>, vector<16x16xf32>, vector<64x16xf32> -> vector<64x16xf32>
    %84 = arith.addf %79, %83 : vector<64x16xf32>
    %85 = vector.extract_strided_slice %63 {offsets = [12, 0], sizes = [64, 16], strides = [1, 1]} : vector<82x16xf32> to vector<64x16xf32>
    %c11 = arith.constant 11 : index
    %c0_49 = arith.constant 0 : index
    %c0_50 = arith.constant 0 : index
    %86 = vector.load %arg2[%c11, %c0_49, %c0_50] : memref<21x16x16xf32, #tpu.memory_space<vmem>>, vector<1x16x16xf32>
    %87 = vector.shape_cast %86 : vector<1x16x16xf32> to vector<16x16xf32>
    %cst_51 = arith.constant dense<0.000000e+00> : vector<64x16xf32>
    %88 = tpu.matmul %85, %87, %cst_51 {dimension_numbers = #tpu.dot_dimension_numbers<[1], [0], [0], [1], [0, 0, 1, 1], [], []>} : vector<64x16xf32>, vector<16x16xf32>, vector<64x16xf32> -> vector<64x16xf32>
    %89 = arith.addf %84, %88 : vector<64x16xf32>
    %90 = vector.extract_strided_slice %63 {offsets = [15, 0], sizes = [64, 16], strides = [1, 1]} : vector<82x16xf32> to vector<64x16xf32>
    %c12 = arith.constant 12 : index
    %c0_52 = arith.constant 0 : index
    %c0_53 = arith.constant 0 : index
    %91 = vector.load %arg2[%c12, %c0_52, %c0_53] : memref<21x16x16xf32, #tpu.memory_space<vmem>>, vector<1x16x16xf32>
    %92 = vector.shape_cast %91 : vector<1x16x16xf32> to vector<16x16xf32>
    %cst_54 = arith.constant dense<0.000000e+00> : vector<64x16xf32>
    %93 = tpu.matmul %90, %92, %cst_54 {dimension_numbers = #tpu.dot_dimension_numbers<[1], [0], [0], [1], [0, 0, 1, 1], [], []>} : vector<64x16xf32>, vector<16x16xf32>, vector<64x16xf32> -> vector<64x16xf32>
    %94 = arith.addf %89, %93 : vector<64x16xf32>
    %95 = vector.extract_strided_slice %63 {offsets = [18, 0], sizes = [64, 16], strides = [1, 1]} : vector<82x16xf32> to vector<64x16xf32>
    %c13 = arith.constant 13 : index
    %c0_55 = arith.constant 0 : index
    %c0_56 = arith.constant 0 : index
    %96 = vector.load %arg2[%c13, %c0_55, %c0_56] : memref<21x16x16xf32, #tpu.memory_space<vmem>>, vector<1x16x16xf32>
    %97 = vector.shape_cast %96 : vector<1x16x16xf32> to vector<16x16xf32>
    %cst_57 = arith.constant dense<0.000000e+00> : vector<64x16xf32>
    %98 = tpu.matmul %95, %97, %cst_57 {dimension_numbers = #tpu.dot_dimension_numbers<[1], [0], [0], [1], [0, 0, 1, 1], [], []>} : vector<64x16xf32>, vector<16x16xf32>, vector<64x16xf32> -> vector<64x16xf32>
    %99 = arith.addf %94, %98 : vector<64x16xf32>
    %cst_58 = arith.constant 0.000000e+00 : f32
    %100 = vector.broadcast %cst_58 : f32 to vector<64x16xf32>
    %101 = arith.cmpf ogt, %99, %100 : vector<64x16xf32>
    %102 = math.exp %99 : vector<64x16xf32>
    %cst_59 = arith.constant 1.000000e+00 : f32
    %103 = vector.broadcast %cst_59 : f32 to vector<64x16xf32>
    %104 = arith.subf %102, %103 : vector<64x16xf32>
    %105 = arith.select %101, %99, %104 : vector<64x16xi1>, vector<64x16xf32>
    %c1_60 = arith.constant 1 : index
    %c0_61 = arith.constant 0 : index
    %c0_62 = arith.constant 0 : index
    %106 = vector.load %arg3[%c1_60, %c0_61, %c0_62] : memref<3x16x16xf32, #tpu.memory_space<vmem>>, vector<1x16x16xf32>
    %107 = vector.shape_cast %106 : vector<1x16x16xf32> to vector<16x16xf32>
    %cst_63 = arith.constant dense<0.000000e+00> : vector<64x16xf32>
    %108 = tpu.matmul %105, %107, %cst_63 {dimension_numbers = #tpu.dot_dimension_numbers<[1], [0], [0], [1], [0, 0, 1, 1], [], []>} : vector<64x16xf32>, vector<16x16xf32>, vector<64x16xf32> -> vector<64x16xf32>
    %109 = arith.addf %55, %108 : vector<64x16xf32>
    %cst_64 = arith.constant 0.000000e+00 : f32
    %110 = vector.broadcast %cst_64 : f32 to vector<64x16xf32>
    %111 = arith.cmpf ogt, %109, %110 : vector<64x16xf32>
    %112 = math.exp %109 : vector<64x16xf32>
    %cst_65 = arith.constant 1.000000e+00 : f32
    %113 = vector.broadcast %cst_65 : f32 to vector<64x16xf32>
    %114 = arith.subf %112, %113 : vector<64x16xf32>
    %115 = arith.select %111, %109, %114 : vector<64x16xi1>, vector<64x16xf32>
    %cst_66 = arith.constant 0.000000e+00 : f32
    %116 = vector.broadcast %cst_66 : f32 to vector<54x16xf32>
    %117 = tpu.concatenate %116, %115 in 0 : vector<54x16xf32>, vector<64x16xf32> -> vector<118x16xf32>
    %cst_67 = arith.constant 0.000000e+00 : f32
    %118 = vector.broadcast %cst_67 : f32 to vector<64x16xf32>
    %119 = vector.extract_strided_slice %117 {offsets = [0, 0], sizes = [64, 16], strides = [1, 1]} : vector<118x16xf32> to vector<64x16xf32>
    %c14 = arith.constant 14 : index
    %c0_68 = arith.constant 0 : index
    %c0_69 = arith.constant 0 : index
    %120 = vector.load %arg2[%c14, %c0_68, %c0_69] : memref<21x16x16xf32, #tpu.memory_space<vmem>>, vector<1x16x16xf32>
    %121 = vector.shape_cast %120 : vector<1x16x16xf32> to vector<16x16xf32>
    %cst_70 = arith.constant dense<0.000000e+00> : vector<64x16xf32>
    %122 = tpu.matmul %119, %121, %cst_70 {dimension_numbers = #tpu.dot_dimension_numbers<[1], [0], [0], [1], [0, 0, 1, 1], [], []>} : vector<64x16xf32>, vector<16x16xf32>, vector<64x16xf32> -> vector<64x16xf32>
    %123 = arith.addf %118, %122 : vector<64x16xf32>
    %124 = vector.extract_strided_slice %117 {offsets = [9, 0], sizes = [64, 16], strides = [1, 1]} : vector<118x16xf32> to vector<64x16xf32>
    %c15 = arith.constant 15 : index
    %c0_71 = arith.constant 0 : index
    %c0_72 = arith.constant 0 : index
    %125 = vector.load %arg2[%c15, %c0_71, %c0_72] : memref<21x16x16xf32, #tpu.memory_space<vmem>>, vector<1x16x16xf32>
    %126 = vector.shape_cast %125 : vector<1x16x16xf32> to vector<16x16xf32>
    %cst_73 = arith.constant dense<0.000000e+00> : vector<64x16xf32>
    %127 = tpu.matmul %124, %126, %cst_73 {dimension_numbers = #tpu.dot_dimension_numbers<[1], [0], [0], [1], [0, 0, 1, 1], [], []>} : vector<64x16xf32>, vector<16x16xf32>, vector<64x16xf32> -> vector<64x16xf32>
    %128 = arith.addf %123, %127 : vector<64x16xf32>
    %129 = vector.extract_strided_slice %117 {offsets = [18, 0], sizes = [64, 16], strides = [1, 1]} : vector<118x16xf32> to vector<64x16xf32>
    %c16 = arith.constant 16 : index
    %c0_74 = arith.constant 0 : index
    %c0_75 = arith.constant 0 : index
    %130 = vector.load %arg2[%c16, %c0_74, %c0_75] : memref<21x16x16xf32, #tpu.memory_space<vmem>>, vector<1x16x16xf32>
    %131 = vector.shape_cast %130 : vector<1x16x16xf32> to vector<16x16xf32>
    %cst_76 = arith.constant dense<0.000000e+00> : vector<64x16xf32>
    %132 = tpu.matmul %129, %131, %cst_76 {dimension_numbers = #tpu.dot_dimension_numbers<[1], [0], [0], [1], [0, 0, 1, 1], [], []>} : vector<64x16xf32>, vector<16x16xf32>, vector<64x16xf32> -> vector<64x16xf32>
    %133 = arith.addf %128, %132 : vector<64x16xf32>
    %134 = vector.extract_strided_slice %117 {offsets = [27, 0], sizes = [64, 16], strides = [1, 1]} : vector<118x16xf32> to vector<64x16xf32>
    %c17 = arith.constant 17 : index
    %c0_77 = arith.constant 0 : index
    %c0_78 = arith.constant 0 : index
    %135 = vector.load %arg2[%c17, %c0_77, %c0_78] : memref<21x16x16xf32, #tpu.memory_space<vmem>>, vector<1x16x16xf32>
    %136 = vector.shape_cast %135 : vector<1x16x16xf32> to vector<16x16xf32>
    %cst_79 = arith.constant dense<0.000000e+00> : vector<64x16xf32>
    %137 = tpu.matmul %134, %136, %cst_79 {dimension_numbers = #tpu.dot_dimension_numbers<[1], [0], [0], [1], [0, 0, 1, 1], [], []>} : vector<64x16xf32>, vector<16x16xf32>, vector<64x16xf32> -> vector<64x16xf32>
    %138 = arith.addf %133, %137 : vector<64x16xf32>
    %139 = vector.extract_strided_slice %117 {offsets = [36, 0], sizes = [64, 16], strides = [1, 1]} : vector<118x16xf32> to vector<64x16xf32>
    %c18 = arith.constant 18 : index
    %c0_80 = arith.constant 0 : index
    %c0_81 = arith.constant 0 : index
    %140 = vector.load %arg2[%c18, %c0_80, %c0_81] : memref<21x16x16xf32, #tpu.memory_space<vmem>>, vector<1x16x16xf32>
    %141 = vector.shape_cast %140 : vector<1x16x16xf32> to vector<16x16xf32>
    %cst_82 = arith.constant dense<0.000000e+00> : vector<64x16xf32>
    %142 = tpu.matmul %139, %141, %cst_82 {dimension_numbers = #tpu.dot_dimension_numbers<[1], [0], [0], [1], [0, 0, 1, 1], [], []>} : vector<64x16xf32>, vector<16x16xf32>, vector<64x16xf32> -> vector<64x16xf32>
    %143 = arith.addf %138, %142 : vector<64x16xf32>
    %144 = vector.extract_strided_slice %117 {offsets = [45, 0], sizes = [64, 16], strides = [1, 1]} : vector<118x16xf32> to vector<64x16xf32>
    %c19 = arith.constant 19 : index
    %c0_83 = arith.constant 0 : index
    %c0_84 = arith.constant 0 : index
    %145 = vector.load %arg2[%c19, %c0_83, %c0_84] : memref<21x16x16xf32, #tpu.memory_space<vmem>>, vector<1x16x16xf32>
    %146 = vector.shape_cast %145 : vector<1x16x16xf32> to vector<16x16xf32>
    %cst_85 = arith.constant dense<0.000000e+00> : vector<64x16xf32>
    %147 = tpu.matmul %144, %146, %cst_85 {dimension_numbers = #tpu.dot_dimension_numbers<[1], [0], [0], [1], [0, 0, 1, 1], [], []>} : vector<64x16xf32>, vector<16x16xf32>, vector<64x16xf32> -> vector<64x16xf32>
    %148 = arith.addf %143, %147 : vector<64x16xf32>
    %149 = vector.extract_strided_slice %117 {offsets = [54, 0], sizes = [64, 16], strides = [1, 1]} : vector<118x16xf32> to vector<64x16xf32>
    %c20 = arith.constant 20 : index
    %c0_86 = arith.constant 0 : index
    %c0_87 = arith.constant 0 : index
    %150 = vector.load %arg2[%c20, %c0_86, %c0_87] : memref<21x16x16xf32, #tpu.memory_space<vmem>>, vector<1x16x16xf32>
    %151 = vector.shape_cast %150 : vector<1x16x16xf32> to vector<16x16xf32>
    %cst_88 = arith.constant dense<0.000000e+00> : vector<64x16xf32>
    %152 = tpu.matmul %149, %151, %cst_88 {dimension_numbers = #tpu.dot_dimension_numbers<[1], [0], [0], [1], [0, 0, 1, 1], [], []>} : vector<64x16xf32>, vector<16x16xf32>, vector<64x16xf32> -> vector<64x16xf32>
    %153 = arith.addf %148, %152 : vector<64x16xf32>
    %cst_89 = arith.constant 0.000000e+00 : f32
    %154 = vector.broadcast %cst_89 : f32 to vector<64x16xf32>
    %155 = arith.cmpf ogt, %153, %154 : vector<64x16xf32>
    %156 = math.exp %153 : vector<64x16xf32>
    %cst_90 = arith.constant 1.000000e+00 : f32
    %157 = vector.broadcast %cst_90 : f32 to vector<64x16xf32>
    %158 = arith.subf %156, %157 : vector<64x16xf32>
    %159 = arith.select %155, %153, %158 : vector<64x16xi1>, vector<64x16xf32>
    %c2_91 = arith.constant 2 : index
    %c0_92 = arith.constant 0 : index
    %c0_93 = arith.constant 0 : index
    %160 = vector.load %arg3[%c2_91, %c0_92, %c0_93] : memref<3x16x16xf32, #tpu.memory_space<vmem>>, vector<1x16x16xf32>
    %161 = vector.shape_cast %160 : vector<1x16x16xf32> to vector<16x16xf32>
    %cst_94 = arith.constant dense<0.000000e+00> : vector<64x16xf32>
    %162 = tpu.matmul %159, %161, %cst_94 {dimension_numbers = #tpu.dot_dimension_numbers<[1], [0], [0], [1], [0, 0, 1, 1], [], []>} : vector<64x16xf32>, vector<16x16xf32>, vector<64x16xf32> -> vector<64x16xf32>
    %163 = arith.addf %109, %162 : vector<64x16xf32>
    %cst_95 = arith.constant 0.000000e+00 : f32
    %164 = vector.broadcast %cst_95 : f32 to vector<3x16xf32>
    %165 = tpu.concatenate %164, %163 in 0 : vector<3x16xf32>, vector<64x16xf32> -> vector<67x16xf32>
    %cst_96 = arith.constant 0.000000e+00 : f32
    %166 = vector.broadcast %cst_96 : f32 to vector<64x32xf32>
    %167 = vector.extract_strided_slice %165 {offsets = [0, 0], sizes = [64, 16], strides = [1, 1]} : vector<67x16xf32> to vector<64x16xf32>
    %c0_97 = arith.constant 0 : index
    %c0_98 = arith.constant 0 : index
    %c0_99 = arith.constant 0 : index
    %168 = vector.load %arg4[%c0_97, %c0_98, %c0_99] : memref<4x16x32xf32, #tpu.memory_space<vmem>>, vector<1x16x32xf32>
    %169 = vector.shape_cast %168 : vector<1x16x32xf32> to vector<16x32xf32>
    %cst_100 = arith.constant dense<0.000000e+00> : vector<64x32xf32>
    %170 = tpu.matmul %167, %169, %cst_100 {dimension_numbers = #tpu.dot_dimension_numbers<[1], [0], [0], [1], [0, 0, 1, 1], [], []>} : vector<64x16xf32>, vector<16x32xf32>, vector<64x32xf32> -> vector<64x32xf32>
    %171 = arith.addf %166, %170 : vector<64x32xf32>
    %172 = vector.extract_strided_slice %165 {offsets = [1, 0], sizes = [64, 16], strides = [1, 1]} : vector<67x16xf32> to vector<64x16xf32>
    %c1_101 = arith.constant 1 : index
    %c0_102 = arith.constant 0 : index
    %c0_103 = arith.constant 0 : index
    %173 = vector.load %arg4[%c1_101, %c0_102, %c0_103] : memref<4x16x32xf32, #tpu.memory_space<vmem>>, vector<1x16x32xf32>
    %174 = vector.shape_cast %173 : vector<1x16x32xf32> to vector<16x32xf32>
    %cst_104 = arith.constant dense<0.000000e+00> : vector<64x32xf32>
    %175 = tpu.matmul %172, %174, %cst_104 {dimension_numbers = #tpu.dot_dimension_numbers<[1], [0], [0], [1], [0, 0, 1, 1], [], []>} : vector<64x16xf32>, vector<16x32xf32>, vector<64x32xf32> -> vector<64x32xf32>
    %176 = arith.addf %171, %175 : vector<64x32xf32>
    %177 = vector.extract_strided_slice %165 {offsets = [2, 0], sizes = [64, 16], strides = [1, 1]} : vector<67x16xf32> to vector<64x16xf32>
    %c2_105 = arith.constant 2 : index
    %c0_106 = arith.constant 0 : index
    %c0_107 = arith.constant 0 : index
    %178 = vector.load %arg4[%c2_105, %c0_106, %c0_107] : memref<4x16x32xf32, #tpu.memory_space<vmem>>, vector<1x16x32xf32>
    %179 = vector.shape_cast %178 : vector<1x16x32xf32> to vector<16x32xf32>
    %cst_108 = arith.constant dense<0.000000e+00> : vector<64x32xf32>
    %180 = tpu.matmul %177, %179, %cst_108 {dimension_numbers = #tpu.dot_dimension_numbers<[1], [0], [0], [1], [0, 0, 1, 1], [], []>} : vector<64x16xf32>, vector<16x32xf32>, vector<64x32xf32> -> vector<64x32xf32>
    %181 = arith.addf %176, %180 : vector<64x32xf32>
    %182 = vector.extract_strided_slice %165 {offsets = [3, 0], sizes = [64, 16], strides = [1, 1]} : vector<67x16xf32> to vector<64x16xf32>
    %c3_109 = arith.constant 3 : index
    %c0_110 = arith.constant 0 : index
    %c0_111 = arith.constant 0 : index
    %183 = vector.load %arg4[%c3_109, %c0_110, %c0_111] : memref<4x16x32xf32, #tpu.memory_space<vmem>>, vector<1x16x32xf32>
    %184 = vector.shape_cast %183 : vector<1x16x32xf32> to vector<16x32xf32>
    %cst_112 = arith.constant dense<0.000000e+00> : vector<64x32xf32>
    %185 = tpu.matmul %182, %184, %cst_112 {dimension_numbers = #tpu.dot_dimension_numbers<[1], [0], [0], [1], [0, 0, 1, 1], [], []>} : vector<64x16xf32>, vector<16x32xf32>, vector<64x32xf32> -> vector<64x32xf32>
    %186 = arith.addf %181, %185 : vector<64x32xf32>
    %187 = tpu.iota {dimensions = array<i32: 0>} : vector<32x64xi32>
    %188 = tpu.iota {dimensions = array<i32: 1>} : vector<32x64xi32>
    %c2_i32 = arith.constant 2 : i32
    %189 = vector.broadcast %c2_i32 : i32 to vector<32x64xi32>
    %190 = arith.muli %187, %189 : vector<32x64xi32>
    %191 = arith.cmpi eq, %188, %190 : vector<32x64xi32>
    %192 = arith.extui %191 : vector<32x64xi1> to vector<32x64xi32>
    %193 = arith.sitofp %192 : vector<32x64xi32> to vector<32x64xf32>
    %cst_113 = arith.constant dense<0.000000e+00> : vector<32x32xf32>
    %194 = tpu.matmul %193, %186, %cst_113 {dimension_numbers = #tpu.dot_dimension_numbers<[1], [0], [0], [1], [0, 0, 1, 1], [], []>} : vector<32x64xf32>, vector<64x32xf32>, vector<32x32xf32> -> vector<32x32xf32>
    %c0_114 = arith.constant 0 : index
    %c0_115 = arith.constant 0 : index
    %195 = vector.load %arg5[%c0_114, %c0_115] : memref<1x32xf32, #tpu.memory_space<vmem>>, vector<1x32xf32>
    %196 = vector.broadcast %195 : vector<1x32xf32> to vector<32x32xf32>
    %197 = arith.addf %194, %196 : vector<32x32xf32>
    %c0_116 = arith.constant 0 : index
    %c0_117 = arith.constant 0 : index
    %c0_118 = arith.constant 0 : index
    %198 = vector.load %arg6[%c0_116, %c0_117, %c0_118] : memref<1x32x32xf32, #tpu.memory_space<vmem>>, vector<1x32x32xf32>
    %199 = vector.shape_cast %198 : vector<1x32x32xf32> to vector<32x32xf32>
    %200 = vector.shape_cast %197 : vector<32x32xf32> to vector<1x32x32xf32>
    tpu.vector_store %arg6[%c0_116, %c0_117, %c0_118], %200 {strides = array<i32>} : memref<1x32x32xf32, #tpu.memory_space<vmem>>, vector<1x32x32xf32>,
    return
  }
  func.func @transform_0(%arg0: i32) -> (i32, i32, i32) {
    %c0_i32 = arith.constant 0 : i32
    %c0_i32_0 = arith.constant 0 : i32
    %c0_i32_1 = arith.constant 0 : i32
    return %arg0, %c0_i32, %c0_i32_0 : i32, i32, i32
  }
  func.func @transform_1(%arg0: i32) -> (i32, i32, i32) {
    %c0_i32 = arith.constant 0 : i32
    %c0_i32_0 = arith.constant 0 : i32
    %c0_i32_1 = arith.constant 0 : i32
    %c0_i32_2 = arith.constant 0 : i32
    return %c0_i32, %c0_i32_0, %c0_i32_1 : i32, i32, i32
  }
  func.func @transform_2(%arg0: i32) -> (i32, i32, i32) {
    %c0_i32 = arith.constant 0 : i32
    %c0_i32_0 = arith.constant 0 : i32
    %c0_i32_1 = arith.constant 0 : i32
    %c0_i32_2 = arith.constant 0 : i32
    return %c0_i32, %c0_i32_0, %c0_i32_1 : i32, i32, i32
  }
  func.func @transform_3(%arg0: i32) -> (i32, i32, i32) {
    %c0_i32 = arith.constant 0 : i32
    %c0_i32_0 = arith.constant 0 : i32
    %c0_i32_1 = arith.constant 0 : i32
    %c0_i32_2 = arith.constant 0 : i32
    return %c0_i32, %c0_i32_0, %c0_i32_1 : i32, i32, i32
  }
  func.func @transform_4(%arg0: i32) -> (i32, i32) {
    %c0_i32 = arith.constant 0 : i32
    %c0_i32_0 = arith.constant 0 : i32
    %c0_i32_1 = arith.constant 0 : i32
    return %c0_i32, %c0_i32_0 : i32, i32
  }
  func.func @transform_5(%arg0: i32) -> (i32, i32, i32) {
    %c0_i32 = arith.constant 0 : i32
    %c0_i32_0 = arith.constant 0 : i32
    %c0_i32_1 = arith.constant 0 : i32
    return %arg0, %c0_i32, %c0_i32_0 : i32, i32, i32
  }
}

</mosaic_0001>

<bundles_post_ra>
// kernel: tpu_custom_call.1
= control target key start
LH: loop header
LB: loop body
LE: loop exit
PB: predicated region body
PF: predicated region fallthrough
CT: control target
= control target key end

     0   :  { %10 = vsyncpa [#allocation3], 0  ;;  %s7285_s0 = inlined_call_operand.vmem [shape: f32[2,64,16], index: 0, kind: input, shape index: {}]   ;;  %s7286_s1 = inlined_call_operand.vmem [shape: f32[21,16,16], index: 1, kind: input, shape index: {}]   ;;  %s7287_s2 = inlined_call_operand.vmem [shape: f32[3,16,16], index: 2, kind: input, shape index: {}]   ;;  %s7288_s3 = inlined_call_operand.vmem [shape: f32[4,16,32], index: 3, kind: input, shape index: {}]   ;;  %s7289_s4 = inlined_call_operand.vmem [shape: f32[1,32], index: 4, kind: input, shape index: {}]   ;;  %s7290_s5 = inlined_call_operand.hbm [shape: f32[2,32,32], index: 5, kind: output, shape index: {}]  }
   0x1   :  { %12 = vsyncpa [#allocation3 + $0x1], 0  ;;  %s6090_s18 = smov 0   ;;  %s6092_s19 = smov 0  }
   0x2   :  { %s6094_s20 = smov 0   ;;  %s6096_s21 = smov 0  }
   0x3 LB: > { %s6111_s22 = sadd.s32 4294967295, %s6054_s21   ;;  %s4753_s23 = sadd.s32 4294967294, %s6054_s21   ;;  %s6054_s21 = sphi %s6096_s21, %s7321_s21   ;;  %s6050_s20 = sphi %s6094_s20, %s7320_s20   ;;  %s6046_s19 = sphi %s6092_s19, %s7319_s19   ;;  %s6042_s18 = sphi %s6090_s18, %s7318_s18  }
   0x4   : > { %s6115_s24 = sadd.s32 1, %s6054_s21   ;;  %s135_s25 = sadd.s32 1, %s6050_s20 }
   0x5   : > { %s132_s26 = ssub.s32 %s6054_s21, %s6115_s24  ;;  %p145_p0 = scmp.ne.s32.totalorder %s6050_s20, %s6046_s19 }
   0x6   : > { %p133_p1 = scmp.eq.s32.totalorder %s132_s26, 0  ;;  %p146_p2 = scmp.eq.s32.totalorder %s6111_s22, 1 }
   0x7   : > { %p151_p3 = scmp.ne.s32.totalorder %s6046_s19, %s6042_s18  ;;  %p152_p4 = scmp.eq.s32.totalorder %s4753_s23, 1 }
   0x8   : > { %s6126_s27 = scalar_select %p133_p1, %s6050_s20, %s135_s25  }
   0x9   : > { %p6128_p5 = por %p146_p2, %p145_p0  ;;  %p6132_p6 = por %p152_p4, %p151_p3 }
   0xa   : > { %p4756_p7 = scmp.ge.s32.totalorder %s6054_s21, 1  ;;  %p190_p8 = scmp.lt.s32.totalorder %s6054_s21, 3 }
   0xc   : > { %p191_p9 = pnand %p4756_p7, %p190_p8 }
   0xe   : > { %194 = sbr.rel (%p191_p9) target bundleno = 1947 (0x79b), region = 40 }
  0x13   : > { %v4769_v0 = vld [vmem:[%s7286_s1 + $0x18] sm:$0xff]  ;;  %v4768_v1 = vld [vmem:[%s7286_s1 + $0x10] sm:$0xff]  ;;  %p218_p10 = scmp.lt.s32.totalorder %s6111_s22, 1  ;;  %v6149_v2 = vld [vmem:[%s7286_s1 + $0x8] sm:$0xff]  ;;  %vm279_vm2 = vcmask 1045504   ;;  %vm303_vm3 = vcmask 1046528  }
  0x14   : > { %5382 = vmatprep.subr.mxu0 %v4769_v0  ;;  %5852 = vmatprep.subr.mxu1 %v4769_v0  ;;  %v6154_v3 = vld [vmem:[%s7286_s1 + $0x28] sm:$0xff]  ;;  %vm321_vm4 = vcmask 130048   ;;  %vm716_vm11 = vcmask 1044480   ;;  %vm866_vm12 = vcmask 1043456   ;;  %vm1016_vm13 = vcmask 1042432   ;;  %s215_s10 = sand.u32 1, %s6046_s19  }
  0x15   : > { %5383 = vmatpush3.msra.mxu0 %v4769_v0  ;;  %5854 = vmatpush3.msra.mxu1 %v4769_v0  ;;  %s219_s9 = scalar_select %p218_p10, %s6111_s22, 1  ;;  %vm1166_vm14 = vcmask 1041408  }
  0x16   : > { %5384 = vmatprep.subr.mxu0 %v4768_v1  ;;  %5853 = vmatprep.subr.mxu1 %v4768_v1  ;;  %s4757_s11 = sshll.u32 %s215_s10, 5  ;;  %s5089_s16 = sshll.u32 %s6111_s22, 9 }
  0x17   : > { %5385 = vmatpush3.msra.mxu0 %v4768_v1  ;;  %5855 = vmatpush3.msra.mxu1 %v4768_v1  ;;  %s5088_s14 = sshll.u32 %s219_s9, 6  ;;  %s7242_s25 = scalar_lea.hbm %s7290_s5, %s5089_s16 }
  0x18   : > { %s222_s17 = scalar_lea.vmem %s7285_s0, %s5088_s14  ;;  %5398 = vmatprep.subr.mxu1 %v6149_v2  ;;  %5414 = vmatprep.subr.mxu0 %v6154_v3  ;;  %s217_s14 = scalar_lea.vmem [#allocation2], %s4757_s11 }
  0x19   : > { %v6161_v4 = vld [vmem:[%s222_s17] sm:$0xff]  ;;  %v6163_v5 = vld [vmem:[%s222_s17 + $0x8] sm:$0xff]  ;;  %v6169_v9 = vld [vmem:[%s222_s17 + $0x30] sm:$0xff]  ;;  %s4691_s15 = sshll.u32 %s217_s14, 4  ;;  %s7245_s22 = scalar_lea.sflag [#allocation3], %s215_s10  ;;  %s7236_s15 = int_to_ptr.vmem [resolvable:$true] %s4691_s15 }
  0x1a   : > { %v6165_v6 = vld [vmem:[%s222_s17 + $0x28] sm:$0xff]  ;;  %v239_v7 = vmul.f32 1.442695, %v6161_v4  ;;  %v241_v8 = vmul.f32 1.442695, %v6163_v5  ;;  %7302 = vst [vmem:[#allocation5_spill] sm:$0xff] %v6169_v9 }
  0x1b   : > { %v6171_v10 = vld [vmem:[%s222_s17 + $0x38] sm:$0xff]  ;;  %v249_v11 = vmul.f32 1.442695, %v6165_v6  ;;  %v6174_v12 = vld [vmem:[%s222_s17 + $0x10] sm:$0xff]  ;;  %v251_v13 = vmul.f32 1.442695, %v6169_v9 }
  0x1c   : > { %5898 = vpow2.f32 %v239_v7  ;;  %v6177_v14 = vld [vmem:[%s222_s17 + $0x18] sm:$0xff]  ;;  %v6179_v15 = vld [vmem:[%s222_s17 + $0x20] sm:$0xff]  ;;  %v253_v16 = vmul.f32 1.442695, %v6171_v10  ;;  %v243_v17 = vmul.f32 1.442695, %v6174_v12 }
  0x1d   : > { %5900 = vpow2.f32 %v241_v8  ;;  %v245_v18 = vmul.f32 1.442695, %v6177_v14  ;;  %v247_v19 = vmul.f32 1.442695, %v6179_v15  ;;  %vm231_vm0 = vcmp.gt.f32.partialorder %v6161_v4, 0.0  ;;  %v297_v8 = vld [vmem:[%s7286_s1] sm:$0xff] }
  0x1e   : > { %5902 = vpow2.f32 %v249_v11  ;;  %vm232_vm1 = vcmp.gt.f32.partialorder %v6163_v5, 0.0  ;;  %vm236_vm5 = vcmp.gt.f32.partialorder %v6165_v6, 0.0  ;;  %vm237_vm6 = vcmp.gt.f32.partialorder %v6169_v9, 0.0  ;;  %s5994_s26 = scalar_lea.vmem %s7236_s15, 512  ;;  %s6057_s30 = smov [#allocation2]  }
  0x1f   : > { %5904 = vpow2.f32 %v251_v13  ;;  %vm238_vm7 = vcmp.gt.f32.partialorder %v6171_v10, 0.0  ;;  %vm233_vm8 = vcmp.gt.f32.partialorder %v6174_v12, 0.0  ;;  %vm234_vm9 = vcmp.gt.f32.partialorder %v6177_v14, 0.0  ;;  %p5995_p11 = scmp.ne.s32.totalorder %s7236_s15, %s5994_s26  ;;  %s5998_s6 = sshll.u32 %s6057_s30, 4  ;;  %s5999_s6 = int_to_ptr.vmem [resolvable:$false] %s5998_s6 }
  0x20   : > { %5906 = vpow2.f32 %v253_v16  ;;  %vm235_vm10 = vcmp.gt.f32.partialorder %v6179_v15, 0.0  ;;  %s6000_s7 = scalar_lea.vmem %s5999_s6, 1024  ;;  %p6001_p0 = scmp.lt.s32.totalorder %s7236_s15, %s5999_s6 }
  0x21   : > { %5908 = vpow2.f32 %v243_v17  ;;  %p5996_p12 = pnand %p5995_p11, %p6128_p5  ;;  %p6002_p1 = scmp.lt.s32.totalorder %s6000_s7, %s5994_s26 }
  0x22   : > { %5910 = vpow2.f32 %v245_v18 }
  0x23   : > { %5912 = vpow2.f32 %v247_v19  ;;  %p5997_p13 = pneg %p5996_p12  ;;  %p6003_p2 = por %p6002_p1, %p6001_p0 }
  0x25   : > { %p6004_p3 = pnand %p6003_p2, %p5997_p13 }
  0x29   : > { %v5899_v20 = vpop.eup %5898 }
  0x2a   : > { %v5901_v21 = vpop.eup %5900  ;;  %v4760_v22 = vadd.f32 -1.0, %v5899_v20 }
  0x2b   : > { %v5903_v23 = vpop.eup %5902  ;;  %v4761_v24 = vadd.f32 -1.0, %v5901_v21 }
  0x2c   : > { %v5905_v25 = vpop.eup %5904  ;;  %v263_v26 = vsel %vm231_vm0, %v6161_v4, %v4760_v22  ;;  %v4765_v27 = vadd.f32 -1.0, %v5903_v23  ;;  %v4786_v23 = vld [vmem:[%s7286_s1 + $0x20] sm:$0xff] }
  0x2d   : > { %v5907_v28 = vpop.eup %5906  ;;  %v264_v29 = vsel %vm232_vm1, %v6163_v5, %v4761_v24  ;;  %v280_v30 = vrot.slane %v263_v26, 2  ;;  %v4766_v31 = vadd.f32 -1.0, %v5905_v25  ;;  %v4807_v25 = vld [vmem:[%s7286_s1 + $0x48] sm:$0xff] }
  0x2e   : > { %v5909_v32 = vpop.eup %5908  ;;  %v281_v33 = vrot.slane %v264_v29, 2  ;;  %v4767_v34 = vadd.f32 -1.0, %v5907_v28  ;;  %v268_v35 = vsel %vm236_vm5, %v6165_v6, %v4765_v27 }
  0x2f   : > { %v5911_v36 = vpop.eup %5910  ;;  %v6197_v37 = vsel %vm279_vm2, 0.0, %v280_v30  ;;  %v269_v38 = vsel %vm237_vm6, %v6169_v9, %v4766_v31  ;;  %v289_v39 = vrot.slane %v268_v35, 2  ;;  %v4762_v40 = vadd.f32 -1.0, %v5909_v32 }
  0x30   : > { %v5913_v41 = vpop.eup %5912  ;;  %v6203_v42 = vsel %vm279_vm2, %v280_v30, %v281_v33  ;;  %v304_v43 = vrot.slane %v6197_v37, 1  ;;  %v270_v44 = vsel %vm238_vm7, %v6171_v10, %v4767_v34  ;;  %v291_v45 = vrot.slane %v269_v38, 2  ;;  %v4796_v30 = vld [vmem:[%s7286_s1 + $0x30] sm:$0xff] }
  0x31   : > { %v305_v46 = vrot.slane %v6203_v42, 1  ;;  %v6210_v47 = vrot.slane %v270_v44, 2  ;;  %v265_v48 = vsel %vm233_vm8, %v6174_v12, %v4762_v40  ;;  %v4763_v49 = vadd.f32 -1.0, %v5911_v36  ;;  %v4817_v40 = vld [vmem:[%s7286_s1 + $0x58] sm:$0xff] }
  0x32   : > { %v6216_v50 = vsel %vm279_vm2, %v289_v39, %v291_v45  ;;  %v283_v51 = vrot.slane %v265_v48, 2  ;;  %v4764_v52 = vadd.f32 -1.0, %v5913_v41  ;;  %v567_v20 = vrot.slane %v6197_v37, 2 }
  0x33   : > { %v306_v53 = vsel %vm303_vm3, %v304_v43, %v305_v46  ;;  %v6221_v54 = vsel %vm279_vm2, %v291_v45, %v6210_v47  ;;  %v315_v55 = vrot.slane %v6216_v50, 1  ;;  %v319_v56 = vrot.slane %v6210_v47, 1 }
  0x34   : > { %5386 = vmatprep.mubr.msk.f32.mxu0 %vm321_vm4, %v306_v53  ;;  %v317_v57 = vrot.slane %v6221_v54, 1  ;;  %v6228_v58 = vsel %vm279_vm2, %v281_v33, %v283_v51  ;;  %v266_v59 = vsel %vm234_vm9, %v6177_v14, %v4763_v49  ;;  %v267_v60 = vsel %vm235_vm10, %v6179_v15, %v4764_v52 }
  0x35   : > { %v307_v61 = vrot.slane %v6228_v58, 1  ;;  %v285_v62 = vrot.slane %v266_v59, 2  ;;  %v287_v63 = vrot.slane %v267_v60, 2  ;;  %v570_v27 = vrot.slane %v6228_v58, 2 }
  0x36   : > { %v318_v0 = vsel %vm303_vm3, %v315_v55, %v317_v57  ;;  %v320_v1 = vsel %vm303_vm3, %v317_v57, %v319_v56  ;;  %v717_v34 = vrot.slane %v6197_v37, 3  ;;  %v718_v35 = vrot.slane %v6203_v42, 3 }
  0x37   : > { %5395 = vmatprep.mubr.msk.f32.mxu1 %vm321_vm4, %v318_v0  ;;  %v308_v7 = vsel %vm303_vm3, %v305_v46, %v307_v61  ;;  %v6245_v11 = vsel %vm279_vm2, %v283_v51, %v285_v62  ;;  %v6248_v13 = vsel %vm279_vm2, %v285_v62, %v287_v63  ;;  %v6251_v16 = vsel %vm279_vm2, %v287_v63, %v289_v39  ;;  %v4806_v39 = vld [vmem:[%s7286_s1 + $0x40] sm:$0xff]  ;;  %v4827_v51 = vld [vmem:[%s7286_s1 + $0x68] sm:$0xff]  ;;  %v4816_v62 = vld [vmem:[%s7286_s1 + $0x50] sm:$0xff] }
  0x38   : > { %5387 = vmatmul.mubr.msk.f32.vlgmr.msra.gmra.mxu0 %vm321_vm4, %v308_v7  ;;  %5396 = vmatmul.mubr.msk.f32.vlgmr.msra.gmra.mxu1 %vm321_vm4, %v320_v1  ;;  %v309_v17 = vrot.slane %v6245_v11, 1  ;;  %v311_v18 = vrot.slane %v6248_v13, 1  ;;  %v313_v19 = vrot.slane %v6251_v16, 1  ;;  %v572_v29 = vrot.slane %v6245_v11, 2 }
  0x39   : > { %5399 = vmatpush3.msra.mxu1 %v6149_v2  ;;  %5415 = vmatpush3.msra.mxu0 %v6154_v3  ;;  %v568_v2 = vrot.slane %v6203_v42, 2  ;;  %v4797_v3 = vld [vmem:[%s7286_s1 + $0x38] sm:$0xff]  ;;  %v574_v32 = vrot.slane %v6248_v13, 2  ;;  %v576_v33 = vrot.slane %v6251_v16, 2  ;;  %v578_v38 = vrot.slane %v6216_v50, 2 }
  0x3a   : > { %5400 = vmatprep.subr.mxu1 %v297_v8  ;;  %v310_v21 = vsel %vm303_vm3, %v307_v61, %v309_v17  ;;  %5402 = vmatprep.mubr.msk.f32.mxu1 %vm321_vm4, %v6197_v37  ;;  %v312_v22 = vsel %vm303_vm3, %v309_v17, %v311_v18  ;;  %v314_v24 = vsel %vm303_vm3, %v311_v18, %v313_v19  ;;  %v720_v43 = vrot.slane %v6228_v58, 3 }
  0x3b   : > { %5389 = vmatprep.mubr.msk.f32.mxu0 %vm321_vm4, %v310_v21  ;;  %5401 = vmatpush3.msra.mxu1 %v297_v8  ;;  %v316_v26 = vsel %vm303_vm3, %v313_v19, %v315_v55  ;;  %v569_v28 = vsel %vm279_vm2, %v567_v20, %v568_v2  ;;  %v571_v31 = vsel %vm279_vm2, %v568_v2, %v570_v27  ;;  %v580_v44 = vrot.slane %v6221_v54, 2 }
  0x3c   : > { %5390 = vmatmul.mubr.msk.f32.gmra.mxu0 %vm321_vm4, %v312_v22  ;;  %5403 = vmatmul.mubr.msk.f32.vlgmr.msra.gmra.mxu1 %vm321_vm4, %v6203_v42  ;;  %v573_v36 = vsel %vm279_vm2, %v570_v27, %v572_v29  ;;  %v575_v41 = vsel %vm279_vm2, %v572_v29, %v574_v32  ;;  %v577_v45 = vsel %vm279_vm2, %v574_v32, %v576_v33  ;;  %v722_v48 = vrot.slane %v6245_v11, 3  ;;  %v4826_v27 = vld [vmem:[%s7286_s1 + $0x60] sm:$0xff] }
  0x3d   : > { %5416 = vmatprep.subr.mxu0 %v4786_v23  ;;  %5392 = vmatprep.mubr.msk.f32.mxu0 %vm321_vm4, %v314_v24  ;;  %v719_v46 = vsel %vm716_vm11, %v717_v34, %v718_v35  ;;  %v579_v49 = vsel %vm279_vm2, %v576_v33, %v578_v38  ;;  %v721_v52 = vsel %vm716_vm11, %v718_v35, %v720_v43  ;;  %v582_v55 = vrot.slane %v6210_v47, 2 }
  0x3e   : > { %5405 = vmatprep.mubr.msk.f32.mxu1 %vm321_vm4, %v6228_v58  ;;  %5417 = vmatpush3.msra.mxu0 %v4786_v23  ;;  %v581_v53 = vsel %vm279_vm2, %v578_v38, %v580_v44  ;;  %v724_v56 = vrot.slane %v6248_v13, 3  ;;  %v723_v57 = vsel %vm716_vm11, %v720_v43, %v722_v48  ;;  %v726_v59 = vrot.slane %v6251_v16, 3 }
  0x3f   : > { %5430 = vmatprep.subr.mxu1 %v4797_v3  ;;  %5446 = vmatprep.subr.mxu0 %v4807_v25  ;;  %v867_v60 = vrot.slane %v6197_v37, 4  ;;  %v868_v61 = vrot.slane %v6203_v42, 4  ;;  %v583_v63 = vsel %vm279_vm2, %v580_v44, %v582_v55  ;;  %v728_v1 = vrot.slane %v6216_v50, 3 }
  0x40   : > { %5393 = vmatmul.mubr.msk.f32.gmra.mxu0 %vm321_vm4, %v316_v26  ;;  %5406 = vmatmul.mubr.msk.f32.gmra.mxu1 %vm321_vm4, %v6245_v11  ;;  %v725_v0 = vsel %vm716_vm11, %v722_v48, %v724_v56  ;;  %v870_v7 = vrot.slane %v6228_v58, 4  ;;  %v727_v8 = vsel %vm716_vm11, %v724_v56, %v726_v59  ;;  %v730_v18 = vrot.slane %v6221_v54, 3 }
  0x41   : > { %5408 = vmatprep.mubr.msk.f32.mxu1 %vm321_vm4, %v6248_v13  ;;  %5418 = vmatprep.mubr.msk.f32.mxu0 %vm321_vm4, %v569_v28  ;;  %v869_v17 = vsel %vm866_vm12, %v867_v60, %v868_v61  ;;  %v872_v19 = vrot.slane %v6245_v11, 4  ;;  %v729_v20 = vsel %vm716_vm11, %v726_v59, %v728_v1  ;;  %v732_v22 = vrot.slane %v6210_v47, 3 }
  0x42   : > { %5431 = vmatpush3.msra.mxu1 %v4797_v3  ;;  %v871_v21 = vsel %vm866_vm12, %v868_v61, %v870_v7  ;;  %v874_v23 = vrot.slane %v6248_v13, 4  ;;  %v731_v24 = vsel %vm716_vm11, %v728_v1, %v730_v18  ;;  %v876_v2 = vrot.slane %v6251_v16, 4 }
  0x43   : > { %5432 = vmatprep.subr.mxu1 %v4796_v30  ;;  %v1017_v3 = vrot.slane %v6197_v37, 5  ;;  %v873_v26 = vsel %vm866_vm12, %v870_v7, %v872_v19  ;;  %v733_v28 = vsel %vm716_vm11, %v730_v18, %v732_v22  ;;  %v880_v34 = vrot.slane %v6221_v54, 4 }
  0x44   : > { %5409 = vmatmul.mubr.msk.f32.gmra.mxu1 %vm321_vm4, %v6251_v16  ;;  %5419 = vmatmul.mubr.msk.f32.vlgmr.msra.gmra.mxu0 %vm321_vm4, %v571_v31  ;;  %v875_v29 = vsel %vm866_vm12, %v872_v19, %v874_v23  ;;  %v1020_v31 = vrot.slane %v6228_v58, 5  ;;  %v877_v32 = vsel %vm866_vm12, %v874_v23, %v876_v2  ;;  %v1022_v35 = vrot.slane %v6245_v11, 5 }
  0x45   : > { %5447 = vmatpush3.msra.mxu0 %v4807_v25  ;;  %5411 = vmatprep.mubr.msk.f32.mxu1 %vm321_vm4, %v6216_v50  ;;  %v1018_v25 = vrot.slane %v6203_v42, 5  ;;  %v1172_v55 = vrot.slane %v6245_v11, 6  ;;  %v1174_v59 = vrot.slane %v6248_v13, 6  ;;  %v1176_v61 = vrot.slane %v6251_v16, 6 }
  0x46   : > { %5421 = vmatprep.mubr.msk.f32.mxu0 %vm321_vm4, %v573_v36  ;;  %5433 = vmatpush3.msra.mxu1 %v4796_v30  ;;  %v878_v30 = vrot.slane %v6216_v50, 4  ;;  %v882_v36 = vrot.slane %v6210_v47, 4  ;;  %v1023_v44 = vsel %vm1016_vm13, %v1020_v31, %v1022_v35  ;;  %v1180_v1 = vrot.slane %v6221_v54, 6 }
  0x47   : > { %5448 = vmatprep.subr.mxu0 %v4806_v39  ;;  %5462 = vmatprep.subr.mxu1 %v4817_v40  ;;  %v1019_v33 = vsel %vm1016_vm13, %v1017_v3, %v1018_v25  ;;  %v1182_v7 = vrot.slane %v6210_v47, 6 }
  0x48   : > { %5412 = vmatmul.mubr.msk.f32.gmra.mxu1 %vm321_vm4, %v6221_v54  ;;  %5422 = vmatmul.mubr.msk.f32.gmra.mxu0 %vm321_vm4, %v575_v41  ;;  %v879_v38 = vsel %vm866_vm12, %v876_v2, %v878_v30  ;;  %v1026_v41 = vrot.slane %v6251_v16, 5  ;;  %v881_v43 = vsel %vm866_vm12, %v878_v30, %v880_v34  ;;  %v883_v48 = vsel %vm866_vm12, %v880_v34, %v882_v36 }
  0x49   : > { %5424 = vmatprep.mubr.msk.f32.mxu0 %vm321_vm4, %v577_v45  ;;  %5434 = vmatprep.mubr.msk.f32.mxu1 %vm321_vm4, %v719_v46  ;;  %v1167_v45 = vrot.slane %v6197_v37, 6  ;;  %v1168_v46 = vrot.slane %v6203_v42, 6 }
  0x4a   : > { %5449 = vmatpush3.msra.mxu0 %v4806_v39  ;;  %v1021_v39 = vsel %vm1016_vm13, %v1018_v25, %v1020_v31 }
  0x4b   : > { %5478 = vmatprep.subr.mxu0 %v4827_v51  ;;  %v1169_v42 = vsel %vm1166_vm14, %v1167_v45, %v1168_v46 }
  0x4c   : > { %5425 = vmatmul.mubr.msk.f32.gmra.mxu0 %vm321_vm4, %v579_v49  ;;  %5435 = vmatmul.mubr.msk.f32.vlgmr.msra.gmra.mxu1 %vm321_vm4, %v721_v52  ;;  %v1170_v52 = vrot.slane %v6228_v58, 6 }
  0x4d   : > { %5427 = vmatprep.mubr.msk.f32.mxu0 %vm321_vm4, %v581_v53  ;;  %5437 = vmatprep.mubr.msk.f32.mxu1 %vm321_vm4, %v723_v57  ;;  %v1030_v53 = vrot.slane %v6221_v54, 5  ;;  %v1032_v57 = vrot.slane %v6210_v47, 5  ;;  %v1354_v54 = vld [vmem:[%s7287_s2 + $0x8] sm:$0xff] }
  0x4e   : > { %5463 = vmatpush3.msra.mxu1 %v4817_v40  ;;  %v1024_v40 = vrot.slane %v6248_v13, 5  ;;  %v1171_v58 = vsel %vm1166_vm14, %v1168_v46, %v1170_v52  ;;  %v1173_v11 = vsel %vm1166_vm14, %v1170_v52, %v1172_v55  ;;  %v1178_v13 = vrot.slane %v6216_v50, 6 }
  0x4f   : > { %5464 = vmatprep.subr.mxu1 %v4816_v62 }
  0x50   : > { %5428 = vmatmul.mubr.msk.f32.gmra.mxu0 %vm321_vm4, %v583_v63  ;;  %5438 = vmatmul.mubr.msk.f32.gmra.mxu1 %vm321_vm4, %v725_v0  ;;  %v1025_v49 = vsel %vm1016_vm13, %v1022_v35, %v1024_v40  ;;  %v1027_v37 = vsel %vm1016_vm13, %v1024_v40, %v1026_v41  ;;  %v1175_v63 = vsel %vm1166_vm14, %v1172_v55, %v1174_v59 }
  0x51   : > { %5440 = vmatprep.mubr.msk.f32.mxu1 %vm321_vm4, %v727_v8  ;;  %5450 = vmatprep.mubr.msk.f32.mxu0 %vm321_vm4, %v869_v17  ;;  %v1177_v0 = vsel %vm1166_vm14, %v1174_v59, %v1176_v61  ;;  %v1179_v16 = vsel %vm1166_vm14, %v1176_v61, %v1178_v13  ;;  %v1181_v8 = vsel %vm1166_vm14, %v1178_v13, %v1180_v1  ;;  %v1353_v17 = vld [vmem:[%s7287_s2] sm:$0xff] }
  0x52   : > { %5465 = vmatpush3.msra.mxu1 %v4816_v62  ;;  %v1033_v62 = vsel %vm1016_vm13, %v1030_v53, %v1032_v57 }
  0x53   : > { %5494 = vmatprep.subr.mxu1 %v1354_v54 }
  0x54   : > { %5441 = vmatmul.mubr.msk.f32.gmra.mxu1 %vm321_vm4, %v729_v20  ;;  %5451 = vmatmul.mubr.msk.f32.vlgmr.msra.gmra.mxu0 %vm321_vm4, %v871_v21 }
  0x55   : > { %5479 = vmatpush3.msra.mxu0 %v4827_v51  ;;  %5443 = vmatprep.mubr.msk.f32.mxu1 %vm321_vm4, %v731_v24  ;;  %v1028_v51 = vrot.slane %v6216_v50, 5  ;;  %v1183_v50 = vsel %vm1166_vm14, %v1180_v1, %v1182_v7 }
  0x56   : > { %5453 = vmatprep.mubr.msk.f32.mxu0 %vm321_vm4, %v873_v26  ;;  %5480 = vmatprep.subr.mxu0 %v4826_v27 }
  0x57   : > { %5481 = vmatpush3.msra.mxu0 %v4826_v27  ;;  %v1029_v56 = vsel %vm1016_vm13, %v1026_v41, %v1028_v51  ;;  %v1031_v60 = vsel %vm1016_vm13, %v1028_v51, %v1030_v53 }
  0x58   : > { %5444 = vmatmul.mubr.msk.f32.gmra.mxu1 %vm321_vm4, %v733_v28  ;;  %5454 = vmatmul.mubr.msk.f32.gmra.mxu0 %vm321_vm4, %v875_v29 }
  0x59   : > { %5456 = vmatprep.mubr.msk.f32.mxu0 %vm321_vm4, %v877_v32  ;;  %5466 = vmatprep.mubr.msk.f32.mxu1 %vm321_vm4, %v1019_v33 }
  0x5c   : > { %5457 = vmatmul.mubr.msk.f32.gmra.mxu0 %vm321_vm4, %v879_v38  ;;  %5467 = vmatmul.mubr.msk.f32.vlgmr.msra.gmra.mxu1 %vm321_vm4, %v1021_v39 }
  0x5d   : > { %5459 = vmatprep.mubr.msk.f32.mxu0 %vm321_vm4, %v881_v43  ;;  %5469 = vmatprep.mubr.msk.f32.mxu1 %vm321_vm4, %v1023_v44 }
  0x5e   : > { %5495 = vmatpush3.msra.mxu1 %v1354_v54 }
  0x5f   : > { %5496 = vmatprep.subr.mxu1 %v1353_v17 }
  0x60   : > { %5460 = vmatmul.mubr.msk.f32.gmra.mxu0 %vm321_vm4, %v883_v48  ;;  %5470 = vmatmul.mubr.msk.f32.gmra.mxu1 %vm321_vm4, %v1025_v49 }
  0x61   : > { %5472 = vmatprep.mubr.msk.f32.mxu1 %vm321_vm4, %v1027_v37  ;;  %5482 = vmatprep.mubr.msk.f32.mxu0 %vm321_vm4, %v1169_v42 }
  0x62   : > { %5497 = vmatpush3.msra.mxu1 %v1353_v17 }
  0x64   : > { %5473 = vmatmul.mubr.msk.f32.gmra.mxu1 %vm321_vm4, %v1029_v56  ;;  %5483 = vmatmul.mubr.msk.f32.vlgmr.msra.gmra.mxu0 %vm321_vm4, %v1171_v58 }
  0x65   : > { %5475 = vmatprep.mubr.msk.f32.mxu1 %vm321_vm4, %v1031_v60  ;;  %5485 = vmatprep.mubr.msk.f32.mxu0 %vm321_vm4, %v1173_v11 }
  0x68   : > { %5476 = vmatmul.mubr.msk.f32.gmra.mxu1 %vm321_vm4, %v1033_v62  ;;  %5486 = vmatmul.mubr.msk.f32.gmra.mxu0 %vm321_vm4, %v1175_v63 }
  0x69   : > { %5488 = vmatprep.mubr.msk.f32.mxu0 %vm321_vm4, %v1177_v0 }
  0x6c   : > { %5489 = vmatmul.mubr.msk.f32.gmra.mxu0 %vm321_vm4, %v1179_v16 }
  0x6d   : > { %5491 = vmatprep.mubr.msk.f32.mxu0 %vm321_vm4, %v1181_v8 }
  0x70   : > { %5492 = vmatmul.mubr.msk.f32.gmra.mxu0 %vm321_vm4, %v1183_v50 }
  0xf8   : > { %v5388_v47 = vpop.f32.mrf.mxu0  ;;  %v6442_v18 = vpop.f32.mrf.mxu1 }
  0xfa   : > { %v404_v19 = vpop.f32.mrf.mxu0  ;;  %v6444_v20 = vpop.f32.mrf.mxu1 }
  0xfc   : > { %v5391_v21 = vpop.f32.mrf.mxu0  ;;  %v5404_v22 = vpop.f32.mrf.mxu1 }
  0xfd   : > { %v531_v53 = vadd.f32 %v5404_v22, %v5388_v47 }
  0xfe   : > { %v414_v23 = vpop.f32.mrf.mxu0  ;;  %v525_v24 = vpop.f32.mrf.mxu1 }
  0xff   : > { %v526_v58 = vadd.f32 %v525_v24, %v404_v19 }
 0x100   : > { %v5394_v2 = vpop.f32.mrf.mxu0  ;;  %v5407_v3 = vpop.f32.mrf.mxu1 }
 0x101   : > { %v541_v62 = vadd.f32 %v5407_v3, %v5391_v21 }
 0x102   : > { %v424_v25 = vpop.f32.mrf.mxu0  ;;  %v535_v26 = vpop.f32.mrf.mxu1 }
 0x103   : > { %v536_v0 = vadd.f32 %v535_v26, %v414_v23 }
 0x104   : > { %v5410_v27 = vpop.f32.mrf.mxu1  ;;  %v5420_v28 = vpop.f32.mrf.mxu0 }
 0x105   : > { %v706_v57 = vadd.f32 %v5420_v28, %v531_v53  ;;  %v551_v54 = vadd.f32 %v5410_v27, %v5394_v2 }
 0x106   : > { %v545_v29 = vpop.f32.mrf.mxu1  ;;  %v666_v30 = vpop.f32.mrf.mxu0 }
 0x107   : > { %v705_v11 = vadd.f32 %v666_v30, %v526_v58  ;;  %v546_v9 = vadd.f32 %v545_v29, %v424_v25 }
 0x108   : > { %v5413_v31 = vpop.f32.mrf.mxu1  ;;  %v5423_v32 = vpop.f32.mrf.mxu0 }
 0x109   : > { %v708_v7 = vadd.f32 %v5423_v32, %v541_v62  ;;  %v561_v23 = vadd.f32 %v5413_v31, %v6442_v18 }
 0x10a   : > { %v555_v33 = vpop.f32.mrf.mxu1  ;;  %v676_v34 = vpop.f32.mrf.mxu0 }
 0x10b   : > { %v707_v17 = vadd.f32 %v676_v34, %v536_v0  ;;  %v556_v25 = vadd.f32 %v555_v33, %v6444_v20 }
 0x10c   : > { %v5426_v35 = vpop.f32.mrf.mxu0  ;;  %v5436_v36 = vpop.f32.mrf.mxu1 }
 0x10d   : > { %v856_v61 = vadd.f32 %v5436_v36, %v706_v57  ;;  %v710_v53 = vadd.f32 %v5426_v35, %v551_v54 }
 0x10e   : > { %v686_v38 = vpop.f32.mrf.mxu0  ;;  %v816_v39 = vpop.f32.mrf.mxu1 }
 0x10f   : > { %v855_v1 = vadd.f32 %v816_v39, %v705_v11  ;;  %v709_v3 = vadd.f32 %v686_v38, %v546_v9 }
 0x110   : > { %v5429_v40 = vpop.f32.mrf.mxu0  ;;  %v5439_v41 = vpop.f32.mrf.mxu1 }
 0x111   : > { %v858_v19 = vadd.f32 %v5439_v41, %v708_v7  ;;  %v712_v29 = vadd.f32 %v5429_v40, %v561_v23 }
 0x112   : > { %v696_v43 = vpop.f32.mrf.mxu0  ;;  %v826_v44 = vpop.f32.mrf.mxu1 }
 0x113   : > { %v857_v30 = vadd.f32 %v826_v44, %v707_v17  ;;  %v711_v18 = vadd.f32 %v696_v43, %v556_v25 }
 0x114   : > { %v5442_v45 = vpop.f32.mrf.mxu1  ;;  %v5452_v46 = vpop.f32.mrf.mxu0 }
 0x115   : > { %v1006_v16 = vadd.f32 %v5452_v46, %v856_v61  ;;  %v860_v46 = vadd.f32 %v5442_v45, %v710_v53 }
 0x116   : > { %v836_v48 = vpop.f32.mrf.mxu1  ;;  %v966_v49 = vpop.f32.mrf.mxu0 }
 0x117   : > { %v1005_v47 = vadd.f32 %v966_v49, %v855_v1  ;;  %v859_v41 = vadd.f32 %v836_v48, %v709_v3 }
 0x118   : > { %v5445_v51 = vpop.f32.mrf.mxu1  ;;  %v5455_v52 = vpop.f32.mrf.mxu0 }
 0x119   : > { %v1008_v26 = vadd.f32 %v5455_v52, %v858_v19  ;;  %v862_v9 = vadd.f32 %v5445_v51, %v712_v29 }
 0x11a   : > { %v846_v37 = vpop.f32.mrf.mxu1  ;;  %v976_v42 = vpop.f32.mrf.mxu0 }
 0x11b   : > { %v1007_v2 = vadd.f32 %v976_v42, %v857_v30 }
 0x11c   : > { %v5458_v55 = vpop.f32.mrf.mxu0  ;;  %v5468_v56 = vpop.f32.mrf.mxu1 }
 0x11d   : > { %v1156_v22 = vadd.f32 %v5468_v56, %v1006_v16  ;;  %v1010_v49 = vadd.f32 %v5458_v55, %v860_v46 }
 0x11e   : > { %v986_v59 = vpop.f32.mrf.mxu0  ;;  %v1116_v60 = vpop.f32.mrf.mxu1 }
 0x11f   : > { %v1155_v36 = vadd.f32 %v1116_v60, %v1005_v47  ;;  %v1009_v45 = vadd.f32 %v986_v59, %v859_v41  ;;  %v861_v60 = vadd.f32 %v846_v37, %v711_v18  ;;  %v4862_v18 = vld [vmem:[%s7286_s1 + $0x80] sm:$0xff] }
 0x120   : > { %v5461_v63 = vpop.f32.mrf.mxu0  ;;  %v5471_v13 = vpop.f32.mrf.mxu1 }
 0x121   : > { %v1158_v35 = vadd.f32 %v5471_v13, %v1008_v26  ;;  %v1012_v33 = vadd.f32 %v5461_v63, %v862_v9 }
 0x122   : > { %v996_v8 = vpop.f32.mrf.mxu0  ;;  %v1126_v50 = vpop.f32.mrf.mxu1 }
 0x123   : > { %v1157_v56 = vadd.f32 %v1126_v50, %v1007_v2  ;;  %v1011_v55 = vadd.f32 %v996_v8, %v861_v60 }
 0x124   : > { %v5474_v24 = vpop.f32.mrf.mxu1  ;;  %v5484_v28 = vpop.f32.mrf.mxu0 }
 0x125   : > { %v6446_v21 = vadd.f32 %v5484_v28, %v1156_v22  ;;  %v1160_v42 = vadd.f32 %v5474_v24, %v1010_v49  ;;  %v4860_v49 = vld [vmem:[%s7286_s1 + $0x70] sm:$0xff] }
 0x126   : > { %v1136_v32 = vpop.f32.mrf.mxu1  ;;  %v1266_v39 = vpop.f32.mrf.mxu0 }
 0x127   : > { %v1323_v27 = vmul.f32 1.442695, %v6446_v21  ;;  %v1305_v34 = vadd.f32 %v1266_v39, %v1155_v36  ;;  %v1159_v40 = vadd.f32 %v1136_v32, %v1009_v45  ;;  %vm1314_vm0 = vcmp.gt.f32.partialorder %v6446_v21, 0.0  ;;  %v6495_v45 = vld [vmem:[%s7286_s1 + $0xc8] sm:$0xff] }
 0x128   : > { %v5487_v44 = vpop.f32.mrf.mxu0  ;;  %v5477_v31 = vpop.f32.mrf.mxu1 }
 0x129   : > { %5914 = vpow2.f32 %v1323_v27  ;;  %v1321_v58 = vmul.f32 1.442695, %v1305_v34  ;;  %v1308_v38 = vadd.f32 %v5487_v44, %v1158_v35  ;;  %v1162_v43 = vadd.f32 %v5477_v31, %v1012_v33  ;;  %v4861_v44 = vld [vmem:[%s7286_s1 + $0x78] sm:$0xff]  ;;  %v4889_v31 = vld [vmem:[%s7286_s1 + $0xa8] sm:$0xff] }
 0x12a   : > { %v1276_v52 = vpop.f32.mrf.mxu0  ;;  %v1146_v62 = vpop.f32.mrf.mxu1  ;;  %vm1313_vm15 = vcmp.gt.f32.partialorder %v1305_v34, 0.0  ;;  %5526 = vmatprep.subr.mxu1 %v4861_v44 }
 0x12b   : > { %5916 = vpow2.f32 %v1321_v58  ;;  %v1307_v57 = vadd.f32 %v1276_v52, %v1157_v56  ;;  %v1327_v11 = vmul.f32 1.442695, %v1308_v38  ;;  %v1161_v59 = vadd.f32 %v1146_v62, %v1011_v55  ;;  %v4863_v58 = vld [vmem:[%s7286_s1 + $0x88] sm:$0xff]  ;;  %v4888_v52 = vld [vmem:[%s7286_s1 + $0xa0] sm:$0xff] }
 0x12c   : > { %v5490_v20 = vpop.f32.mrf.mxu0  ;;  %vm1316_vm5 = vcmp.gt.f32.partialorder %v1308_v38, 0.0  ;;  %v7292_v56 = vmov 0.0   ;;  %5510 = vmatprep.subr.mxu0 %v4863_v58 }
 0x12d   : > { %v1325_v48 = vmul.f32 1.442695, %v1307_v57  ;;  %v1310_v61 = vadd.f32 %v5490_v20, %v1160_v42  ;;  %5918 = vpow2.f32 %v1327_v11  ;;  %vm1315_vm1 = vcmp.gt.f32.partialorder %v1307_v57, 0.0  ;;  %5511 = vmatpush3.msra.mxu0 %v4863_v58 }
 0x12e   : > { %v1286_v13 = vpop.f32.mrf.mxu0  ;;  %v6476_v9 = vrot.slane %v7292_v56, 3  ;;  %5512 = vmatprep.subr.mxu0 %v4862_v18 }
 0x12f   : > { %5920 = vpow2.f32 %v1325_v48  ;;  %v1331_v51 = vmul.f32 1.442695, %v1310_v61  ;;  %v1309_v0 = vadd.f32 %v1286_v13, %v1159_v40  ;;  %vm1318_vm7 = vcmp.gt.f32.partialorder %v1310_v61, 0.0  ;;  %5513 = vmatpush3.msra.mxu0 %v4862_v18 }
 0x130   : > { %v5493_v1 = vpop.f32.mrf.mxu0  ;;  %7303 = vst [vmem:[#allocation6_spill] sm:$0xff] %v6476_v9  ;;  %5514 = vmatprep.mubr.msk.f32.mxu0 %vm321_vm4, %v6476_v9 }
 0x131   : > { %5922 = vpow2.f32 %v1331_v51  ;;  %v1329_v16 = vmul.f32 1.442695, %v1309_v0  ;;  %v1312_v7 = vadd.f32 %v5493_v1, %v1162_v43  ;;  %vm1317_vm6 = vcmp.gt.f32.partialorder %v1309_v0, 0.0 }
 0x132   : > { %v1296_v37 = vpop.f32.mrf.mxu0 }
 0x133   : > { %5924 = vpow2.f32 %v1329_v16  ;;  %v1335_v50 = vmul.f32 1.442695, %v1312_v7  ;;  %v1311_v63 = vadd.f32 %v1296_v37, %v1161_v59  ;;  %vm1320_vm9 = vcmp.gt.f32.partialorder %v1312_v7, 0.0 }
 0x135   : > { %5926 = vpow2.f32 %v1335_v50  ;;  %v1333_v54 = vmul.f32 1.442695, %v1311_v63  ;;  %vm1319_vm8 = vcmp.gt.f32.partialorder %v1311_v63, 0.0 }
 0x136   : > { %v5915_v17 = vpop.eup %5914 }
 0x137   : > { %5928 = vpow2.f32 %v1333_v54  ;;  %v4837_v47 = vadd.f32 -1.0, %v5915_v17 }
 0x138   : > { %v5917_v8 = vpop.eup %5916 }
 0x139   : > { %v4836_v22 = vadd.f32 -1.0, %v5917_v8  ;;  %v1346_v53 = vsel %vm1314_vm0, %v6446_v21, %v4837_v47 }
 0x13a   : > { %v5919_v19 = vpop.eup %5918 }
 0x13b   : > { %v1345_v24 = vsel %vm1313_vm15, %v1305_v34, %v4836_v22  ;;  %v4839_v30 = vadd.f32 -1.0, %v5919_v19 }
 0x13c   : > { %v5921_v28 = vpop.eup %5920  ;;  %5498 = vmatprep.mubr.msk.f32.mxu1 %vm321_vm4, %v1345_v24 }
 0x13d   : > { %5499 = vmatmul.mubr.msk.f32.vlgmr.msra.gmra.mxu1 %vm321_vm4, %v1346_v53  ;;  %v4838_v36 = vadd.f32 -1.0, %v5921_v28  ;;  %v1348_v32 = vsel %vm1316_vm5, %v1308_v38, %v4839_v30  ;;  %v6486_v38 = vld [vmem:[%s7286_s1 + $0x98] sm:$0xff] }
 0x13e   : > { %v5923_v23 = vpop.eup %5922  ;;  %5527 = vmatpush3.msra.mxu1 %v4861_v44  ;;  %5542 = vmatprep.subr.mxu0 %v6486_v38  ;;  %v4878_v44 = vld [vmem:[%s7286_s1 + $0x90] sm:$0xff] }
 0x13f   : > { %v1347_v3 = vsel %vm1315_vm1, %v1307_v57, %v4838_v36  ;;  %v4841_v39 = vadd.f32 -1.0, %v5923_v23  ;;  %5528 = vmatprep.subr.mxu1 %v4860_v49 }
 0x140   : > { %v5925_v26 = vpop.eup %5924  ;;  %5501 = vmatprep.mubr.msk.f32.mxu1 %vm321_vm4, %v1347_v3  ;;  %5529 = vmatpush3.msra.mxu1 %v4860_v49 }
 0x141   : > { %5502 = vmatmul.mubr.msk.f32.gmra.mxu1 %vm321_vm4, %v1348_v32  ;;  %v4840_v46 = vadd.f32 -1.0, %v5925_v26  ;;  %v1350_v34 = vsel %vm1318_vm7, %v1310_v61, %v4841_v39  ;;  %5558 = vmatprep.subr.mxu1 %v4889_v31 }
 0x142   : > { %v5927_v2 = vpop.eup %5926 }
 0x143   : > { %v1349_v21 = vsel %vm1317_vm6, %v1309_v0, %v4840_v46  ;;  %v4843_v25 = vadd.f32 -1.0, %v5927_v2 }
 0x144   : > { %v5929_v27 = vpop.eup %5928  ;;  %5504 = vmatprep.mubr.msk.f32.mxu1 %vm321_vm4, %v1349_v21 }
 0x145   : > { %5505 = vmatmul.mubr.msk.f32.gmra.mxu1 %vm321_vm4, %v1350_v34  ;;  %v4842_v29 = vadd.f32 -1.0, %v5929_v27  ;;  %v1352_v35 = vsel %vm1320_vm9, %v1312_v7, %v4843_v25  ;;  %vm2270_vm9 = vcmask 1040384  }
 0x147   : > { %v1351_v41 = vsel %vm1319_vm8, %v1311_v63, %v4842_v29 }
 0x148   : > { %5507 = vmatprep.mubr.msk.f32.mxu1 %vm321_vm4, %v1351_v41 }
 0x149   : > { %5508 = vmatmul.mubr.msk.f32.gmra.mxu1 %vm321_vm4, %v1352_v35 }
 0x14a   : > { %5530 = vmatprep.mubr.f32.mxu1 %v7292_v56 }
 0x14d   : > { %5531 = vmatmul.mubr.f32.vlgmr.msra.gmra.mxu1 %v7292_v56 }
 0x14e   : > { %5559 = vmatpush3.msra.mxu1 %v4889_v31 }
 0x14f   : > { %5560 = vmatprep.subr.mxu1 %v4888_v52 }
 0x150   : > { %5561 = vmatpush3.msra.mxu1 %v4888_v52 }
 0x151   : > { %5590 = vmatprep.subr.mxu1 %v6495_v45 }
 0x1fd   : > { %v5500_v42 = vpop.f32.mrf.mxu1 }
 0x1fe   : > { %v6499_v57 = vadd.f32 %v5500_v42, %v6163_v5 }
 0x1ff   : > { %v1445_v60 = vpop.f32.mrf.mxu1 }
 0x200   : > { %v1502_v11 = vmul.f32 1.442695, %v6499_v57  ;;  %v6503_v20 = vadd.f32 %v1445_v60, %v6161_v4  ;;  %vm1493_vm10 = vcmp.gt.f32.partialorder %v6499_v57, 0.0 }
 0x201   : > { %v5503_v33 = vpop.f32.mrf.mxu1 }
 0x202   : > { %5930 = vpow2.f32 %v1502_v11  ;;  %v1500_v40 = vmul.f32 1.442695, %v6503_v20  ;;  %v6507_v48 = vadd.f32 %v5503_v33, %v6177_v14  ;;  %vm1492_vm15 = vcmp.gt.f32.partialorder %v6503_v20, 0.0 }
 0x203   : > { %v1455_v61 = vpop.f32.mrf.mxu1  ;;  %v6576_v11 = vrot.slane %v7292_v56, 1 }
 0x204   : > { %5932 = vpow2.f32 %v1500_v40  ;;  %v1506_v55 = vmul.f32 1.442695, %v6507_v48  ;;  %v6511_v5 = vadd.f32 %v1455_v61, %v6174_v12  ;;  %vm1495_vm0 = vcmp.gt.f32.partialorder %v6507_v48, 0.0 }
 0x205   : > { %v5506_v62 = vpop.f32.mrf.mxu1 }
 0x206   : > { %5934 = vpow2.f32 %v1506_v55  ;;  %v1504_v13 = vmul.f32 1.442695, %v6511_v5  ;;  %v6515_v4 = vadd.f32 %v5506_v62, %v6165_v6  ;;  %v7305_v6 = vld [vmem:[#allocation5_spill] sm:$0xff]  ;;  %vm1494_vm1 = vcmp.gt.f32.partialorder %v6511_v5, 0.0 }
 0x207   : > { %v1465_v43 = vpop.f32.mrf.mxu1 }
 0x208   : > { %5936 = vpow2.f32 %v1504_v13  ;;  %v1510_v51 = vmul.f32 1.442695, %v6515_v4  ;;  %v6519_v14 = vadd.f32 %v1465_v43, %v6179_v15  ;;  %vm1497_vm5 = vcmp.gt.f32.partialorder %v6515_v4, 0.0  ;;  %v4899_v43 = vld [vmem:[%s7286_s1 + $0xb8] sm:$0xff] }
 0x209   : > { %v5509_v0 = vpop.f32.mrf.mxu1 }
 0x20a   : > { %5938 = vpow2.f32 %v1510_v51  ;;  %v1508_v1 = vmul.f32 1.442695, %v6519_v14  ;;  %v6523_v12 = vadd.f32 %v5509_v0, %v6171_v10  ;;  %vm1496_vm6 = vcmp.gt.f32.partialorder %v6519_v14, 0.0 }
 0x20b   : > { %v1475_v59 = vpop.f32.mrf.mxu1 }
 0x20c   : > { %7304 = vst [vmem:[#allocation7_spill] sm:$0xff] %v6523_v12  ;;  %5940 = vpow2.f32 %v1508_v1  ;;  %v1514_v16 = vmul.f32 1.442695, %v6523_v12  ;;  %v6527_v7 = vadd.f32 %v1475_v59, %v7305_v6  ;;  %vm1499_vm8 = vcmp.gt.f32.partialorder %v6523_v12, 0.0 }
 0x20e   : > { %v1512_v37 = vmul.f32 1.442695, %v6527_v7  ;;  %5942 = vpow2.f32 %v1514_v16  ;;  %vm1498_vm7 = vcmp.gt.f32.partialorder %v6527_v7, 0.0 }
 0x20f   : > { %v5931_v50 = vpop.eup %5930 }
 0x210   : > { %v4853_v15 = vadd.f32 -1.0, %v5931_v50  ;;  %5944 = vpow2.f32 %v1512_v37 }
 0x211   : > { %v5933_v63 = vpop.eup %5932 }
 0x212   : > { %v1525_v54 = vsel %vm1493_vm10, %v6499_v57, %v4853_v15  ;;  %v4852_v10 = vadd.f32 -1.0, %v5933_v63 }
 0x213   : > { %v5935_v17 = vpop.eup %5934  ;;  %v1541_v19 = vrot.slane %v1525_v54, 6 }
 0x214   : > { %v1524_v8 = vsel %vm1492_vm15, %v6503_v20, %v4852_v10  ;;  %v4855_v47 = vadd.f32 -1.0, %v5935_v17 }
 0x215   : > { %v5937_v22 = vpop.eup %5936  ;;  %v1540_v24 = vrot.slane %v1524_v8, 6 }
 0x216   : > { %v1527_v28 = vsel %vm1495_vm0, %v6507_v48, %v4855_v47  ;;  %v4854_v53 = vadd.f32 -1.0, %v5937_v22  ;;  %v4908_v47 = vld [vmem:[%s7286_s1 + $0xc0] sm:$0xff] }
 0x217   : > { %v5939_v30 = vpop.eup %5938  ;;  %v6537_v36 = vsel %vm1166_vm14, 0.0, %v1540_v24  ;;  %v6541_v23 = vsel %vm1166_vm14, %v1540_v24, %v1541_v19  ;;  %v1545_v2 = vrot.slane %v1527_v28, 6  ;;  %v1824_v28 = vrot.slane %v7292_v56, 6 }
 0x218   : > { %v1526_v3 = vsel %vm1494_vm1, %v6511_v5, %v4854_v53  ;;  %v4857_v26 = vadd.f32 -1.0, %v5939_v30  ;;  %5533 = vmatprep.mubr.msk.f32.mxu1 %vm321_vm4, %v6537_v36  ;;  %v1567_v32 = vrot.slane %v6537_v36, 3  ;;  %v1569_v39 = vrot.slane %v6541_v23, 3 }
 0x219   : > { %v5941_v46 = vpop.eup %5940  ;;  %v1543_v21 = vrot.slane %v1526_v3, 6  ;;  %5534 = vmatmul.mubr.msk.f32.gmra.mxu1 %vm321_vm4, %v6541_v23  ;;  %v1973_v33 = vrot.slane %v6537_v36, 1  ;;  %v1975_v13 = vrot.slane %v6541_v23, 1  ;;  %v1826_v53 = vrot.slane %v6537_v36, 6 }
 0x21a   : > { %v1529_v27 = vsel %vm1497_vm5, %v6515_v4, %v4857_v26  ;;  %v4856_v34 = vadd.f32 -1.0, %v5941_v46  ;;  %v1568_v25 = vsel %vm716_vm11, %v6476_v9, %v1567_v32  ;;  %v1570_v29 = vsel %vm716_vm11, %v1567_v32, %v1569_v39 }
 0x21b   : > { %5515 = vmatmul.mubr.msk.f32.vlgmr.msra.gmra.mxu0 %vm321_vm4, %v1568_v25  ;;  %v6558_v41 = vsel %vm1166_vm14, %v1541_v19, %v1543_v21  ;;  %v6561_v35 = vsel %vm1166_vm14, %v1543_v21, %v1545_v2  ;;  %v5943_v49 = vpop.eup %5942  ;;  %v1549_v42 = vrot.slane %v1529_v27, 6  ;;  %v1974_v6 = vsel %vm303_vm3, %v6576_v11, %v1973_v33  ;;  %v4898_v27 = vld [vmem:[%s7286_s1 + $0xb0] sm:$0xff] }
 0x21c   : > { %v1528_v58 = vsel %vm1496_vm6, %v6519_v14, %v4856_v34  ;;  %5517 = vmatprep.mubr.msk.f32.mxu0 %vm321_vm4, %v1570_v29  ;;  %5536 = vmatprep.mubr.msk.f32.mxu1 %vm321_vm4, %v6558_v41  ;;  %v1571_v18 = vrot.slane %v6558_v41, 3  ;;  %v1573_v31 = vrot.slane %v6561_v35, 3  ;;  %v4859_v51 = vadd.f32 -1.0, %v5943_v49  ;;  %v4919_v49 = vld [vmem:[%s7286_s1 + $0xd8] sm:$0xff] }
 0x21d   : > { %v5945_v52 = vpop.eup %5944  ;;  %v1547_v60 = vrot.slane %v1528_v58, 6  ;;  %5543 = vmatpush3.msra.mxu0 %v6486_v38  ;;  %5537 = vmatmul.mubr.msk.f32.gmra.mxu1 %vm321_vm4, %v6561_v35  ;;  %v1977_v37 = vrot.slane %v6558_v41, 1  ;;  %v1976_v10 = vsel %vm303_vm3, %v1973_v33, %v1975_v13  ;;  %v1979_v8 = vrot.slane %v6561_v35, 1 }
 0x21e   : > { %v4858_v40 = vadd.f32 -1.0, %v5945_v52  ;;  %v1572_v61 = vsel %vm716_vm11, %v1569_v39, %v1571_v18  ;;  %v1574_v55 = vsel %vm716_vm11, %v1571_v18, %v1573_v31  ;;  %5544 = vmatprep.subr.mxu0 %v4878_v44  ;;  %v6613_v54 = vsel %vm1499_vm8, %v6523_v12, %v4859_v51 }
 0x21f   : > { %5518 = vmatmul.mubr.msk.f32.gmra.mxu0 %vm321_vm4, %v1572_v61  ;;  %v6584_v38 = vsel %vm1166_vm14, %v1545_v2, %v1547_v60  ;;  %v6587_v62 = vsel %vm1166_vm14, %v1547_v60, %v1549_v42  ;;  %v1978_v22 = vsel %vm303_vm3, %v1975_v13, %v1977_v37  ;;  %v1553_v30 = vrot.slane %v6613_v54, 6  ;;  %v5532_v54 = vpop.f32.mrf.mxu1 }
 0x220   : > { %v1530_v0 = vsel %vm1498_vm7, %v6527_v7, %v4858_v40  ;;  %5520 = vmatprep.mubr.msk.f32.mxu0 %vm321_vm4, %v1574_v55  ;;  %5539 = vmatprep.mubr.msk.f32.mxu1 %vm321_vm4, %v6584_v38  ;;  %v1575_v1 = vrot.slane %v6584_v38, 3  ;;  %v1577_v59 = vrot.slane %v6587_v62, 3  ;;  %v1981_v19 = vrot.slane %v6584_v38, 1 }
 0x221   : > { %v1551_v16 = vrot.slane %v1530_v0, 6  ;;  %5540 = vmatmul.mubr.msk.f32.gmra.mxu1 %vm321_vm4, %v6587_v62  ;;  %5545 = vmatpush3.msra.mxu0 %v4878_v44  ;;  %v1828_v3 = vrot.slane %v6541_v23, 6  ;;  %v1980_v26 = vsel %vm303_vm3, %v1977_v37, %v1979_v8  ;;  %v1983_v32 = vrot.slane %v6587_v62, 1 }
 0x222   : > { %5562 = vmatprep.mubr.msk.f32.mxu1 %vm321_vm4, %v1974_v6  ;;  %v1576_v50 = vsel %vm716_vm11, %v1573_v31, %v1575_v1  ;;  %v1578_v15 = vsel %vm716_vm11, %v1575_v1, %v1577_v59  ;;  %5574 = vmatprep.subr.mxu0 %v4899_v43  ;;  %v1982_v39 = vsel %vm303_vm3, %v1979_v8, %v1981_v19  ;;  %v1830_v21 = vrot.slane %v6558_v41, 6 }
 0x223   : > { %v6609_v63 = vsel %vm1166_vm14, %v1549_v42, %v1551_v16  ;;  %5521 = vmatmul.mubr.msk.f32.gmra.mxu0 %vm321_vm4, %v1576_v50  ;;  %v6642_v46 = vsel %vm1166_vm14, %v1551_v16, %v1553_v30  ;;  %v1827_v2 = vsel %vm1166_vm14, %v1824_v28, %v1826_v53  ;;  %v1829_v34 = vsel %vm1166_vm14, %v1826_v53, %v1828_v3 }
 0x224   : > { %5523 = vmatprep.mubr.msk.f32.mxu0 %vm321_vm4, %v1578_v15  ;;  %v1579_v17 = vrot.slane %v6609_v63, 3  ;;  %v1832_v25 = vrot.slane %v6561_v35, 6  ;;  %v1984_v29 = vsel %vm303_vm3, %v1981_v19, %v1983_v32  ;;  %v1987_v44 = vrot.slane %v6642_v46, 1 }
 0x225   : > { %5563 = vmatmul.mubr.msk.f32.vlgmr.msra.gmra.mxu1 %vm321_vm4, %v1976_v10  ;;  %v2271_v18 = vrot.slane %v7292_v56, 7  ;;  %v2272_v31 = vrot.slane %v6537_v36, 7  ;;  %v1831_v52 = vsel %vm1166_vm14, %v1828_v3, %v1830_v21  ;;  %v1834_v42 = vrot.slane %v6584_v38, 6  ;;  %v4918_v3 = vld [vmem:[%s7286_s1 + $0xd0] sm:$0xff] }
 0x226   : > { %5565 = vmatprep.mubr.msk.f32.mxu1 %vm321_vm4, %v1978_v22  ;;  %v1580_v24 = vsel %vm716_vm11, %v1577_v59, %v1579_v17  ;;  %5591 = vmatpush3.msra.mxu1 %v6495_v45  ;;  %v1985_v45 = vrot.slane %v6609_v63, 1  ;;  %v1833_v60 = vsel %vm1166_vm14, %v1830_v21, %v1832_v25  ;;  %v1836_v33 = vrot.slane %v6587_v62, 6 }
 0x227   : > { %5524 = vmatmul.mubr.msk.f32.gmra.mxu0 %vm321_vm4, %v1580_v24  ;;  %5592 = vmatprep.subr.mxu1 %v4908_v47  ;;  %v2274_v61 = vrot.slane %v6541_v23, 7  ;;  %v2273_v55 = vsel %vm2270_vm9, %v2271_v18, %v2272_v31  ;;  %v2276_v13 = vrot.slane %v6558_v41, 7  ;;  %v1838_v51 = vrot.slane %v6609_v63, 6 }
 0x228   : > { %5546 = vmatprep.mubr.msk.f32.mxu0 %vm321_vm4, %v1824_v28  ;;  %5593 = vmatpush3.msra.mxu1 %v4908_v47  ;;  %v1986_v58 = vsel %vm303_vm3, %v1983_v32, %v1985_v45  ;;  %v1988_v40 = vsel %vm303_vm3, %v1985_v45, %v1987_v44  ;;  %v1837_v0 = vsel %vm1166_vm14, %v1834_v42, %v1836_v33  ;;  %v6681_v1 = vrot.slane %v7292_v56, 4 }
 0x229   : > { %5566 = vmatmul.mubr.msk.f32.gmra.mxu1 %vm321_vm4, %v1980_v26  ;;  %v2122_v59 = vrot.slane %v6537_v36, 4  ;;  %v2275_v16 = vsel %vm2270_vm9, %v2272_v31, %v2274_v61  ;;  %v2278_v6 = vrot.slane %v6561_v35, 7  ;;  %v2277_v37 = vsel %vm2270_vm9, %v2274_v61, %v2276_v13 }
 0x22a   : > { %5568 = vmatprep.mubr.msk.f32.mxu1 %vm321_vm4, %v1982_v39  ;;  %7306 = vst [vmem:[#allocation5_spill] sm:$0xff] %v6681_v1  ;;  %v2280_v50 = vrot.slane %v6584_v38, 7  ;;  %v1839_v15 = vsel %vm1166_vm14, %v1836_v33, %v1838_v51  ;;  %v2124_v10 = vrot.slane %v6541_v23, 4  ;;  %v2126_v8 = vrot.slane %v6558_v41, 4  ;;  %v4936_v51 = vld [vmem:[%s7287_s2 + $0x10] sm:$0xff] }
 0x22b   : > { %5547 = vmatmul.mubr.msk.f32.vlgmr.msra.gmra.mxu0 %vm321_vm4, %v1827_v2  ;;  %v2123_v17 = vsel %vm866_vm12, %v6681_v1, %v2122_v59  ;;  %v2279_v47 = vsel %vm2270_vm9, %v2276_v13, %v2278_v6  ;;  %v2282_v22 = vrot.slane %v6587_v62, 7  ;;  %v2284_v24 = vrot.slane %v6609_v63, 7 }
 0x22c   : > { %5549 = vmatprep.mubr.msk.f32.mxu0 %vm321_vm4, %v1829_v34  ;;  %5575 = vmatpush3.msra.mxu0 %v4899_v43  ;;  %v1835_v43 = vsel %vm1166_vm14, %v1832_v25, %v1834_v42  ;;  %v2281_v19 = vsel %vm2270_vm9, %v2278_v6, %v2280_v50  ;;  %v2125_v28 = vsel %vm866_vm12, %v2122_v59, %v2124_v10  ;;  %v2128_v53 = vrot.slane %v6561_v35, 4 }
 0x22d   : > { %5569 = vmatmul.mubr.msk.f32.gmra.mxu1 %vm321_vm4, %v1984_v29  ;;  %5576 = vmatprep.subr.mxu0 %v4898_v27  ;;  %v2127_v26 = vsel %vm866_vm12, %v2124_v10, %v2126_v8  ;;  %v2130_v32 = vrot.slane %v6584_v38, 4  ;;  %v2283_v39 = vsel %vm2270_vm9, %v2280_v50, %v2282_v22  ;;  %v2286_v45 = vrot.slane %v6642_v46, 7 }
 0x22e   : > { %5571 = vmatprep.mubr.msk.f32.mxu1 %vm321_vm4, %v1986_v58  ;;  %5577 = vmatpush3.msra.mxu0 %v4898_v27  ;;  %v2285_v2 = vsel %vm2270_vm9, %v2282_v22, %v2284_v24  ;;  %v2129_v21 = vsel %vm866_vm12, %v2126_v8, %v2128_v53  ;;  %v2132_v27 = vrot.slane %v6587_v62, 4  ;;  %v2134_v25 = vrot.slane %v6609_v63, 4 }
 0x22f   : > { %5550 = vmatmul.mubr.msk.f32.gmra.mxu0 %vm321_vm4, %v1831_v52  ;;  %5606 = vmatprep.subr.mxu0 %v4919_v49  ;;  %v2131_v34 = vsel %vm866_vm12, %v2128_v53, %v2130_v32  ;;  %v2287_v29 = vsel %vm2270_vm9, %v2284_v24, %v2286_v45  ;;  %v2420_v18 = vrot.slane %v6537_v36, 2  ;;  %v2421_v31 = vrot.slane %v6541_v23, 2 }
 0x230   : > { %5552 = vmatprep.mubr.msk.f32.mxu0 %vm321_vm4, %v1833_v60  ;;  %v2133_v44 = vsel %vm866_vm12, %v2130_v32, %v2132_v27  ;;  %v2135_v58 = vsel %vm866_vm12, %v2132_v27, %v2134_v25  ;;  %v2423_v42 = vrot.slane %v6558_v41, 2  ;;  %v2425_v33 = vrot.slane %v6561_v35, 2 }
 0x231   : > { %5572 = vmatmul.mubr.msk.f32.gmra.mxu1 %vm321_vm4, %v1988_v40  ;;  %v2422_v60 = vsel %vm279_vm2, %v2420_v18, %v2421_v31  ;;  %v2427_v36 = vrot.slane %v6584_v38, 2  ;;  %v2429_v61 = vrot.slane %v6587_v62, 2  ;;  %v2433_v13 = vrot.slane %v6642_v46, 2 }
 0x232   : > { %5594 = vmatprep.mubr.msk.f32.mxu1 %vm321_vm4, %v2273_v55  ;;  %v2424_v40 = vsel %vm279_vm2, %v2421_v31, %v2423_v42  ;;  %v2426_v23 = vsel %vm279_vm2, %v2423_v42, %v2425_v33  ;;  %v2431_v55 = vrot.slane %v6609_v63, 2 }
 0x233   : > { %5553 = vmatmul.mubr.msk.f32.gmra.mxu0 %vm321_vm4, %v1835_v43  ;;  %v2428_v41 = vsel %vm279_vm2, %v2425_v33, %v2427_v36  ;;  %v2430_v35 = vsel %vm279_vm2, %v2427_v36, %v2429_v61  ;;  %v2435_v43 = vrot.slane %v1553_v30, 2  ;;  %v1782_v30 = vpop.f32.mrf.mxu1 }
 0x234   : > { %5555 = vmatprep.mubr.msk.f32.mxu0 %vm321_vm4, %v1837_v0  ;;  %v2432_v38 = vsel %vm279_vm2, %v2429_v61, %v2431_v55  ;;  %v2434_v62 = vsel %vm279_vm2, %v2431_v55, %v2433_v13 }
 0x235   : > { %5595 = vmatmul.mubr.msk.f32.vlgmr.msra.gmra.mxu1 %vm321_vm4, %v2275_v16  ;;  %v2436_v63 = vsel %vm279_vm2, %v2433_v13, %v2435_v43 }
 0x236   : > { %5597 = vmatprep.mubr.msk.f32.mxu1 %vm321_vm4, %v2277_v37 }
 0x237   : > { %5556 = vmatmul.mubr.msk.f32.gmra.mxu0 %vm321_vm4, %v1839_v15 }
 0x238   : > { %5578 = vmatprep.mubr.msk.f32.mxu0 %vm321_vm4, %v2123_v17 }
 0x239   : > { %5598 = vmatmul.mubr.msk.f32.gmra.mxu1 %vm321_vm4, %v2279_v47 }
 0x23a   : > { %5600 = vmatprep.mubr.msk.f32.mxu1 %vm321_vm4, %v2281_v19 }
 0x23b   : > { %5579 = vmatmul.mubr.msk.f32.vlgmr.msra.gmra.mxu0 %vm321_vm4, %v2125_v28 }
 0x23c   : > { %5581 = vmatprep.mubr.msk.f32.mxu0 %vm321_vm4, %v2127_v26  ;;  %5607 = vmatpush3.msra.mxu0 %v4919_v49  ;;  %v2136_v49 = vrot.slane %v6642_v46, 4  ;;  %v4937_v46 = vld [vmem:[%s7287_s2 + $0x18] sm:$0xff] }
 0x23d   : > { %5601 = vmatmul.mubr.msk.f32.gmra.mxu1 %vm321_vm4, %v2283_v39  ;;  %5608 = vmatprep.subr.mxu0 %v4918_v3 }
 0x23e   : > { %5603 = vmatprep.mubr.msk.f32.mxu1 %vm321_vm4, %v2285_v2  ;;  %5609 = vmatpush3.msra.mxu0 %v4918_v3  ;;  %v2137_v52 = vsel %vm866_vm12, %v2134_v25, %v2136_v49 }
 0x23f   : > { %5582 = vmatmul.mubr.msk.f32.gmra.mxu0 %vm321_vm4, %v2129_v21  ;;  %5622 = vmatprep.subr.mxu1 %v4937_v46 }
 0x240   : > { %5584 = vmatprep.mubr.msk.f32.mxu0 %vm321_vm4, %v2131_v34  ;;  %5623 = vmatpush3.msra.mxu1 %v4937_v46 }
 0x241   : > { %5604 = vmatmul.mubr.msk.f32.gmra.mxu1 %vm321_vm4, %v2287_v29  ;;  %5624 = vmatprep.subr.mxu1 %v4936_v51 }
 0x242   : > { %5625 = vmatpush3.msra.mxu1 %v4936_v51 }
 0x243   : > { %5585 = vmatmul.mubr.msk.f32.gmra.mxu0 %vm321_vm4, %v2133_v44 }
 0x244   : > { %5587 = vmatprep.mubr.msk.f32.mxu0 %vm321_vm4, %v2135_v58 }
 0x247   : > { %5588 = vmatmul.mubr.msk.f32.gmra.mxu0 %vm321_vm4, %v2137_v52 }
 0x248   : > { %5610 = vmatprep.mubr.msk.f32.mxu0 %vm321_vm4, %v2422_v60 }
 0x24b   : > { %5611 = vmatmul.mubr.msk.f32.vlgmr.msra.gmra.mxu0 %vm321_vm4, %v2424_v40 }
 0x24c   : > { %5613 = vmatprep.mubr.msk.f32.mxu0 %vm321_vm4, %v2426_v23 }
 0x24f   : > { %5614 = vmatmul.mubr.msk.f32.gmra.mxu0 %vm321_vm4, %v2428_v41 }
 0x250   : > { %5616 = vmatprep.mubr.msk.f32.mxu0 %vm321_vm4, %v2430_v35 }
 0x253   : > { %5617 = vmatmul.mubr.msk.f32.gmra.mxu0 %vm321_vm4, %v2432_v38 }
 0x254   : > { %5619 = vmatprep.mubr.msk.f32.mxu0 %vm321_vm4, %v2434_v62 }
 0x257   : > { %5620 = vmatmul.mubr.msk.f32.gmra.mxu0 %vm321_vm4, %v2436_v63 }
 0x258   : > { %5642 = vmatprep.mubr.msk.f32.mxu0 %vm321_vm4, %v6576_v11 }
 0x2d9   : > { %v5535_v0 = vpop.f32.mrf.mxu1 }
 0x2db   : > { %v5516_v59 = vpop.f32.mrf.mxu0  ;;  %v1792_v16 = vpop.f32.mrf.mxu1 }
 0x2dc   : > { %v1788_v42 = vadd.f32 %v5532_v54, %v5516_v59 }
 0x2dd   : > { %v1663_v6 = vpop.f32.mrf.mxu0  ;;  %v5538_v37 = vpop.f32.mrf.mxu1 }
 0x2de   : > { %v1783_v40 = vadd.f32 %v1782_v30, %v1663_v6 }
 0x2df   : > { %v5519_v50 = vpop.f32.mrf.mxu0  ;;  %v1802_v15 = vpop.f32.mrf.mxu1 }
 0x2e0   : > { %v1798_v61 = vadd.f32 %v5535_v0, %v5519_v50 }
 0x2e1   : > { %v1673_v10 = vpop.f32.mrf.mxu0  ;;  %v5541_v17 = vpop.f32.mrf.mxu1 }
 0x2e2   : > { %v1793_v13 = vadd.f32 %v1792_v16, %v1673_v10 }
 0x2e3   : > { %v5522_v8 = vpop.f32.mrf.mxu0  ;;  %v1812_v47 = vpop.f32.mrf.mxu1 }
 0x2e4   : > { %v1808_v43 = vadd.f32 %v5538_v37, %v5522_v8 }
 0x2e5   : > { %v1683_v22 = vpop.f32.mrf.mxu0  ;;  %v5564_v19 = vpop.f32.mrf.mxu1 }
 0x2e6   : > { %v1803_v1 = vadd.f32 %v1802_v15, %v1683_v22 }
 0x2e7   : > { %v5525_v24 = vpop.f32.mrf.mxu0  ;;  %v2071_v28 = vpop.f32.mrf.mxu1 }
 0x2e8   : > { %v1818_v6 = vadd.f32 %v5541_v17, %v5525_v24 }
 0x2e9   : > { %v1693_v53 = vpop.f32.mrf.mxu0  ;;  %v5567_v3 = vpop.f32.mrf.mxu1 }
 0x2ea   : > { %v1813_v16 = vadd.f32 %v1812_v47, %v1693_v53 }
 0x2eb   : > { %v5548_v26 = vpop.f32.mrf.mxu0  ;;  %v2081_v32 = vpop.f32.mrf.mxu1 }
 0x2ec   : > { %v1962_v36 = vadd.f32 %v5548_v26, %v1788_v42 }
 0x2ed   : > { %v1922_v39 = vpop.f32.mrf.mxu0  ;;  %v5570_v45 = vpop.f32.mrf.mxu1 }
 0x2ee   : > { %v1961_v41 = vadd.f32 %v1922_v39, %v1783_v40  ;;  %v2111_v62 = vadd.f32 %v5564_v19, %v1962_v36 }
 0x2ef   : > { %v5551_v2 = vpop.f32.mrf.mxu0  ;;  %v2091_v21 = vpop.f32.mrf.mxu1 }
 0x2f0   : > { %v1964_v38 = vadd.f32 %v5551_v2, %v1798_v61  ;;  %v2110_v56 = vadd.f32 %v2071_v28, %v1961_v41 }
 0x2f1   : > { %v1932_v27 = vpop.f32.mrf.mxu0  ;;  %v5573_v34 = vpop.f32.mrf.mxu1 }
 0x2f2   : > { %v1963_v46 = vadd.f32 %v1932_v27, %v1793_v13  ;;  %v2113_v30 = vadd.f32 %v5567_v3, %v1964_v38 }
 0x2f3   : > { %v5554_v25 = vpop.f32.mrf.mxu0  ;;  %v2101_v44 = vpop.f32.mrf.mxu1 }
 0x2f4   : > { %v1966_v9 = vadd.f32 %v5554_v25, %v1808_v43  ;;  %v2112_v39 = vadd.f32 %v2081_v32, %v1963_v46 }
 0x2f5   : > { %v1942_v29 = vpop.f32.mrf.mxu0  ;;  %v5596_v18 = vpop.f32.mrf.mxu1 }
 0x2f6   : > { %v1965_v26 = vadd.f32 %v1942_v29, %v1803_v1  ;;  %v2115_v37 = vadd.f32 %v5570_v45, %v1966_v9 }
 0x2f7   : > { %v5557_v49 = vpop.f32.mrf.mxu0  ;;  %v2370_v60 = vpop.f32.mrf.mxu1 }
 0x2f8   : > { %v1968_v10 = vadd.f32 %v5557_v49, %v1818_v6  ;;  %v2114_v25 = vadd.f32 %v2091_v21, %v1965_v26 }
 0x2f9   : > { %v1952_v58 = vpop.f32.mrf.mxu0  ;;  %v5599_v55 = vpop.f32.mrf.mxu1 }
 0x2fa   : > { %v1967_v15 = vadd.f32 %v1952_v58, %v1813_v16  ;;  %v2117_v29 = vadd.f32 %v5573_v34, %v1968_v10 }
 0x2fb   : > { %v5580_v31 = vpop.f32.mrf.mxu0  ;;  %v2380_v54 = vpop.f32.mrf.mxu1 }
 0x2fc   : > { %v2260_v51 = vadd.f32 %v5580_v31, %v2111_v62  ;;  %v2116_v9 = vadd.f32 %v2101_v44, %v1967_v15 }
 0x2fd   : > { %v2220_v52 = vpop.f32.mrf.mxu0  ;;  %v5602_v19 = vpop.f32.mrf.mxu1 }
 0x2fe   : > { %v2259_v12 = vadd.f32 %v2220_v52, %v2110_v56  ;;  %v2410_v42 = vadd.f32 %v5596_v18, %v2260_v51 }
 0x2ff   : > { %v5583_v33 = vpop.f32.mrf.mxu0  ;;  %v2390_v1 = vpop.f32.mrf.mxu1 }
 0x300   : > { %v2262_v50 = vadd.f32 %v5583_v33, %v2113_v30  ;;  %v2409_v28 = vadd.f32 %v2370_v60, %v2259_v12 }
 0x301   : > { %v2230_v23 = vpop.f32.mrf.mxu0  ;;  %v5605_v21 = vpop.f32.mrf.mxu1 }
 0x302   : > { %v2261_v2 = vadd.f32 %v2230_v23, %v2112_v39  ;;  %v2412_v17 = vadd.f32 %v5599_v55, %v2262_v50 }
 0x303   : > { %v5586_v35 = vpop.f32.mrf.mxu0 }
 0x304   : > { %v2264_v22 = vadd.f32 %v5586_v35, %v2115_v37  ;;  %v2411_v49 = vadd.f32 %v2380_v54, %v2261_v2  ;;  %v2400_v35 = vpop.f32.mrf.mxu1 }
 0x305   : > { %v2240_v63 = vpop.f32.mrf.mxu0 }
 0x306   : > { %v2263_v24 = vadd.f32 %v2240_v63, %v2114_v25  ;;  %v2414_v18 = vadd.f32 %v5602_v19, %v2264_v22 }
 0x307   : > { %v5589_v59 = vpop.f32.mrf.mxu0 }
 0x308   : > { %v2266_v52 = vadd.f32 %v5589_v59, %v2117_v29  ;;  %v2413_v33 = vadd.f32 %v2390_v1, %v2263_v24  ;;  %v7307_v1 = vmov 0.0   ;;  %v4957_v24 = vld [vmem:[%s7286_s1 + $0xf8] sm:$0xff]  ;;  %v4955_v29 = vld [vmem:[%s7286_s1 + $0xe8] sm:$0xff] }
 0x309   : > { %v2250_v0 = vpop.f32.mrf.mxu0  ;;  %5638 = vmatprep.subr.mxu0 %v4957_v24  ;;  %5654 = vmatprep.subr.mxu1 %v4955_v29 }
 0x30a   : > { %v2265_v40 = vadd.f32 %v2250_v0, %v2116_v9  ;;  %v2416_v55 = vadd.f32 %v5605_v21, %v2266_v52  ;;  %5639 = vmatpush3.msra.mxu0 %v4957_v24  ;;  %v4968_v9 = vld [vmem:[%s7286_s1 + $0x100] sm:$0xff]  ;;  %v6818_v52 = vld [vmem:[%s7286_s1 + $0x138] sm:$0xff]  ;;  %v7309_v24 = vld [vmem:[#allocation6_spill] sm:$0xff] }
 0x30b   : > { %v5612_v8 = vpop.f32.mrf.mxu0 }
 0x30c   : > { %v2559_v27 = vadd.f32 %v5612_v8, %v2410_v42  ;;  %v2415_v62 = vadd.f32 %v2400_v35, %v2265_v40 }
 0x30d   : > { %v2519_v31 = vpop.f32.mrf.mxu0 }
 0x30e   : > { %v2576_v56 = vmul.f32 1.442695, %v2559_v27  ;;  %v2558_v3 = vadd.f32 %v2519_v31, %v2409_v28  ;;  %vm2567_vm15 = vcmp.gt.f32.partialorder %v2559_v27, 0.0 }
 0x30f   : > { %v5615_v32 = vpop.f32.mrf.mxu0 }
 0x310   : > { %5946 = vpow2.f32 %v2576_v56  ;;  %v2574_v47 = vmul.f32 1.442695, %v2558_v3  ;;  %v2561_v53 = vadd.f32 %v5615_v32, %v2412_v17  ;;  %vm2566_vm10 = vcmp.gt.f32.partialorder %v2558_v3, 0.0  ;;  %v4954_v32 = vld [vmem:[%s7286_s1 + $0xe0] sm:$0xff] }
 0x311   : > { %v2529_v45 = vpop.f32.mrf.mxu0 }
 0x312   : > { %5948 = vpow2.f32 %v2574_v47  ;;  %v2580_v12 = vmul.f32 1.442695, %v2561_v53  ;;  %v2560_v58 = vadd.f32 %v2529_v45, %v2411_v49  ;;  %vm2569_vm1 = vcmp.gt.f32.partialorder %v2561_v53, 0.0  ;;  %v4956_v47 = vld [vmem:[%s7286_s1 + $0xf0] sm:$0xff]  ;;  %v4979_v49 = vld [vmem:[%s7286_s1 + $0x118] sm:$0xff] }
 0x313   : > { %v5618_v60 = vpop.f32.mrf.mxu0  ;;  %5640 = vmatprep.subr.mxu0 %v4956_v47  ;;  %v4978_v45 = vld [vmem:[%s7286_s1 + $0x110] sm:$0xff] }
 0x314   : > { %5950 = vpow2.f32 %v2580_v12  ;;  %v2578_v36 = vmul.f32 1.442695, %v2560_v58  ;;  %v2563_v23 = vadd.f32 %v5618_v60, %v2414_v18  ;;  %vm2568_vm0 = vcmp.gt.f32.partialorder %v2560_v58, 0.0  ;;  %5641 = vmatpush3.msra.mxu0 %v4956_v47  ;;  %v6812_v18 = vld [vmem:[%s7286_s1 + $0x128] sm:$0xff] }
 0x315   : > { %v2539_v34 = vpop.f32.mrf.mxu0  ;;  %5643 = vmatmul.mubr.msk.f32.vlgmr.msra.gmra.mxu0 %vm321_vm4, %v6576_v11 }
 0x316   : > { %5952 = vpow2.f32 %v2578_v36  ;;  %v2584_v61 = vmul.f32 1.442695, %v2563_v23  ;;  %v2562_v41 = vadd.f32 %v2539_v34, %v2413_v33  ;;  %vm2571_vm6 = vcmp.gt.f32.partialorder %v2563_v23, 0.0  ;;  %5645 = vmatprep.mubr.msk.f32.mxu0 %vm321_vm4, %v6576_v11 }
 0x317   : > { %v5621_v44 = vpop.f32.mrf.mxu0 }
 0x318   : > { %5954 = vpow2.f32 %v2584_v61  ;;  %v2582_v13 = vmul.f32 1.442695, %v2562_v41  ;;  %v2565_v38 = vadd.f32 %v5621_v44, %v2416_v55  ;;  %vm2570_vm5 = vcmp.gt.f32.partialorder %v2562_v41, 0.0 }
 0x319   : > { %v2549_v43 = vpop.f32.mrf.mxu0  ;;  %5646 = vmatmul.mubr.msk.f32.gmra.mxu0 %vm321_vm4, %v6576_v11 }
 0x31a   : > { %5956 = vpow2.f32 %v2582_v13  ;;  %v2588_v63 = vmul.f32 1.442695, %v2565_v38  ;;  %v2564_v46 = vadd.f32 %v2549_v43, %v2415_v62  ;;  %vm2573_vm8 = vcmp.gt.f32.partialorder %v2565_v38, 0.0 }
 0x31c   : > { %5958 = vpow2.f32 %v2588_v63  ;;  %v2586_v51 = vmul.f32 1.442695, %v2564_v46  ;;  %vm2572_vm7 = vcmp.gt.f32.partialorder %v2564_v46, 0.0  ;;  %v7308_v63 = vld [vmem:[#allocation7_spill] sm:$0xff] }
 0x31d   : > { %v5947_v54 = vpop.eup %5946 }
 0x31e   : > { %5960 = vpow2.f32 %v2586_v51  ;;  %v4929_v30 = vadd.f32 -1.0, %v5947_v54 }
 0x31f   : > { %v5949_v59 = vpop.eup %5948 }
 0x320   : > { %v4928_v6 = vadd.f32 -1.0, %v5949_v59  ;;  %v2599_v39 = vsel %vm2567_vm15, %v2559_v27, %v4929_v30 }
 0x321   : > { %v5951_v26 = vpop.eup %5950 }
 0x322   : > { %v2598_v0 = vsel %vm2566_vm10, %v2558_v3, %v4928_v6  ;;  %v4931_v42 = vadd.f32 -1.0, %v5951_v26 }
 0x323   : > { %v5953_v50 = vpop.eup %5952  ;;  %5626 = vmatprep.mubr.msk.f32.mxu1 %vm321_vm4, %v2598_v0 }
 0x324   : > { %5627 = vmatmul.mubr.msk.f32.vlgmr.msra.gmra.mxu1 %vm321_vm4, %v2599_v39  ;;  %v4930_v16 = vadd.f32 -1.0, %v5953_v50  ;;  %v2601_v8 = vsel %vm2569_vm1, %v2561_v53, %v4931_v42  ;;  %v4969_v53 = vld [vmem:[%s7286_s1 + $0x108] sm:$0xff] }
 0x325   : > { %v5955_v10 = vpop.eup %5954  ;;  %5655 = vmatpush3.msra.mxu1 %v4955_v29  ;;  %5670 = vmatprep.subr.mxu0 %v4969_v53 }
 0x326   : > { %v2600_v19 = vsel %vm2568_vm0, %v2560_v58, %v4930_v16  ;;  %v4933_v2 = vadd.f32 -1.0, %v5955_v10  ;;  %5656 = vmatprep.subr.mxu1 %v4954_v32  ;;  %5671 = vmatpush3.msra.mxu0 %v4969_v53 }
 0x327   : > { %v5957_v37 = vpop.eup %5956  ;;  %5629 = vmatprep.mubr.msk.f32.mxu1 %vm321_vm4, %v2600_v19  ;;  %5657 = vmatpush3.msra.mxu1 %v4954_v32 }
 0x328   : > { %5630 = vmatmul.mubr.msk.f32.gmra.mxu1 %vm321_vm4, %v2601_v8  ;;  %v4932_v28 = vadd.f32 -1.0, %v5957_v37  ;;  %v2603_v25 = vsel %vm2571_vm6, %v2563_v23, %v4933_v2  ;;  %5686 = vmatprep.subr.mxu1 %v4979_v49 }
 0x329   : > { %v5959_v15 = vpop.eup %5958  ;;  %5672 = vmatprep.subr.mxu0 %v4968_v9 }
 0x32a   : > { %v2602_v27 = vsel %vm2570_vm5, %v2562_v41, %v4932_v28  ;;  %v4935_v31 = vadd.f32 -1.0, %v5959_v15  ;;  %5673 = vmatpush3.msra.mxu0 %v4968_v9 }
 0x32b   : > { %v5961_v22 = vpop.eup %5960  ;;  %5632 = vmatprep.mubr.msk.f32.mxu1 %vm321_vm4, %v2602_v27  ;;  %5702 = vmatprep.subr.mxu0 %v6812_v18 }
 0x32c   : > { %5633 = vmatmul.mubr.msk.f32.gmra.mxu1 %vm321_vm4, %v2603_v25  ;;  %v4934_v56 = vadd.f32 -1.0, %v5961_v22  ;;  %v2605_v17 = vsel %vm2573_vm8, %v2565_v38, %v4935_v31 }
 0x32e   : > { %v2604_v3 = vsel %vm2572_vm7, %v2564_v46, %v4934_v56 }
 0x32f   : > { %5635 = vmatprep.mubr.msk.f32.mxu1 %vm321_vm4, %v2604_v3 }
 0x330   : > { %5636 = vmatmul.mubr.msk.f32.gmra.mxu1 %vm321_vm4, %v2605_v17 }
 0x331   : > { %5658 = vmatprep.mubr.f32.mxu1 %v7307_v1 }
 0x334   : > { %5659 = vmatmul.mubr.f32.vlgmr.msra.gmra.mxu1 %v7307_v1 }
 0x335   : > { %5661 = vmatprep.mubr.f32.mxu1 %v7307_v1  ;;  %5687 = vmatpush3.msra.mxu1 %v4979_v49 }
 0x336   : > { %5688 = vmatprep.subr.mxu1 %v4978_v45 }
 0x337   : > { %5689 = vmatpush3.msra.mxu1 %v4978_v45  ;;  %v4998_v45 = vld [vmem:[%s7286_s1 + $0x130] sm:$0xff] }
 0x338   : > { %5662 = vmatmul.mubr.f32.gmra.mxu1 %v7307_v1  ;;  %5718 = vmatprep.subr.mxu1 %v6818_v52 }
 0x339   : > { %5664 = vmatprep.mubr.f32.mxu1 %v7307_v1 }
 0x33c   : > { %5665 = vmatmul.mubr.f32.gmra.mxu1 %v7307_v1 }
 0x3e4   : > { %v5628_v12 = vpop.f32.mrf.mxu1 }
 0x3e5   : > { %v6824_v58 = vadd.f32 %v5628_v12, %v6499_v57 }
 0x3e6   : > { %v2699_v21 = vpop.f32.mrf.mxu1 }
 0x3e7   : > { %v2756_v60 = vmul.f32 1.442695, %v6824_v58  ;;  %v6828_v33 = vadd.f32 %v2699_v21, %v6503_v20  ;;  %vm2747_vm9 = vcmp.gt.f32.partialorder %v6824_v58, 0.0 }
 0x3e8   : > { %v5631_v40 = vpop.f32.mrf.mxu1 }
 0x3e9   : > { %5962 = vpow2.f32 %v2756_v60  ;;  %v2754_v36 = vmul.f32 1.442695, %v6828_v33  ;;  %v6832_v23 = vadd.f32 %v5631_v40, %v6507_v48  ;;  %vm2746_vm10 = vcmp.gt.f32.partialorder %v6828_v33, 0.0 }
 0x3ea   : > { %v2709_v34 = vpop.f32.mrf.mxu1 }
 0x3eb   : > { %5964 = vpow2.f32 %v2754_v36  ;;  %v2760_v61 = vmul.f32 1.442695, %v6832_v23  ;;  %v6836_v57 = vadd.f32 %v2709_v34, %v6511_v5  ;;  %vm2749_vm15 = vcmp.gt.f32.partialorder %v6832_v23, 0.0 }
 0x3ec   : > { %v5634_v41 = vpop.f32.mrf.mxu1 }
 0x3ed   : > { %5966 = vpow2.f32 %v2760_v61  ;;  %v2758_v55 = vmul.f32 1.442695, %v6836_v57  ;;  %v6840_v20 = vadd.f32 %v5634_v41, %v6515_v4  ;;  %vm2748_vm0 = vcmp.gt.f32.partialorder %v6836_v57, 0.0 }
 0x3ee   : > { %v2719_v35 = vpop.f32.mrf.mxu1  ;;  %v3054_v41 = vrot.slane %v7307_v1, 2 }
 0x3ef   : > { %5968 = vpow2.f32 %v2758_v55  ;;  %v2764_v44 = vmul.f32 1.442695, %v6840_v20  ;;  %v6844_v48 = vadd.f32 %v2719_v35, %v6519_v14  ;;  %vm2751_vm1 = vcmp.gt.f32.partialorder %v6840_v20, 0.0 }
 0x3f0   : > { %v5637_v13 = vpop.f32.mrf.mxu1 }
 0x3f1   : > { %5970 = vpow2.f32 %v2764_v44  ;;  %v2762_v38 = vmul.f32 1.442695, %v6844_v48  ;;  %v6851_v4 = vadd.f32 %v5637_v13, %v7308_v63  ;;  %vm2750_vm5 = vcmp.gt.f32.partialorder %v6844_v48, 0.0 }
 0x3f2   : > { %v2729_v5 = vpop.f32.mrf.mxu1 }
 0x3f3   : > { %5972 = vpow2.f32 %v2762_v38  ;;  %v6848_v62 = vadd.f32 %v2729_v5, %v6527_v7  ;;  %v2768_v6 = vmul.f32 1.442695, %v6851_v4  ;;  %vm2753_vm7 = vcmp.gt.f32.partialorder %v6851_v4, 0.0 }
 0x3f5   : > { %v2766_v46 = vmul.f32 1.442695, %v6848_v62  ;;  %vm2752_vm6 = vcmp.gt.f32.partialorder %v6848_v62, 0.0 }
 0x3f6   : > { %v5963_v43 = vpop.eup %5962 }
 0x3f7   : > { %v4947_v51 = vadd.f32 -1.0, %v5963_v43  ;;  %5974 = vpow2.f32 %v2766_v46 }
 0x3f8   : > { %v5965_v54 = vpop.eup %5964  ;;  %5976 = vpow2.f32 %v2768_v6 }
 0x3f9   : > { %v2779_v14 = vsel %vm2747_vm9, %v6824_v58, %v4947_v51  ;;  %v4946_v59 = vadd.f32 -1.0, %v5965_v54 }
 0x3fa   : > { %v5967_v30 = vpop.eup %5966  ;;  %v2795_v50 = vrot.slane %v2779_v14, 2  ;;  %v4988_v14 = vld [vmem:[%s7286_s1 + $0x120] sm:$0xff] }
 0x3fb   : > { %v2778_v7 = vsel %vm2746_vm10, %v6828_v33, %v4946_v59  ;;  %v4949_v26 = vadd.f32 -1.0, %v5967_v30  ;;  %v3481_v30 = vrot.slane %v7307_v1, 5 }
 0x3fc   : > { %v5969_v0 = vpop.eup %5968  ;;  %v2794_v39 = vrot.slane %v2778_v7, 2 }
 0x3fd   : > { %v2781_v42 = vsel %vm2749_vm15, %v6832_v23, %v4949_v26  ;;  %v4948_v16 = vadd.f32 -1.0, %v5969_v0 }
 0x3fe   : > { %v5971_v10 = vpop.eup %5970  ;;  %v6862_v19 = vsel %vm279_vm2, 0.0, %v2794_v39  ;;  %v6866_v37 = vsel %vm279_vm2, %v2794_v39, %v2795_v50  ;;  %v2799_v22 = vrot.slane %v2781_v42, 2 }
 0x3ff   : > { %v2780_v8 = vsel %vm2748_vm0, %v6836_v57, %v4948_v16  ;;  %v4951_v2 = vadd.f32 -1.0, %v5971_v10  ;;  %5667 = vmatprep.mubr.msk.f32.mxu1 %vm321_vm4, %v6862_v19  ;;  %v2819_v28 = vrot.slane %v6862_v19, 1  ;;  %v2821_v15 = vrot.slane %v6866_v37, 1  ;;  %v5009_v10 = vld [vmem:[%s7286_s1 + $0x148] sm:$0xff] }
 0x400   : > { %v5973_v27 = vpop.eup %5972  ;;  %v2797_v25 = vrot.slane %v2780_v8, 2  ;;  %5668 = vmatmul.mubr.msk.f32.gmra.mxu1 %vm321_vm4, %v6866_v37  ;;  %v3194_v31 = vrot.slane %v6862_v19, 3  ;;  %v3196_v47 = vrot.slane %v6866_v37, 3  ;;  %v3056_v43 = vrot.slane %v6862_v19, 2 }
 0x401   : > { %v4950_v56 = vadd.f32 -1.0, %v5973_v27  ;;  %v2820_v3 = vsel %vm303_vm3, %v6576_v11, %v2819_v28  ;;  %v2822_v17 = vsel %vm303_vm3, %v2819_v28, %v2821_v15  ;;  %5690 = vmatprep.mubr.msk.f32.mxu1 %vm321_vm4, %v7309_v24  ;;  %v6892_v53 = vsel %vm2751_vm1, %v6840_v20, %v4951_v2 }
 0x402   : > { %v6883_v29 = vsel %vm279_vm2, %v2795_v50, %v2797_v25  ;;  %v6886_v32 = vsel %vm279_vm2, %v2797_v25, %v2799_v22  ;;  %5648 = vmatprep.mubr.msk.f32.mxu0 %vm321_vm4, %v2820_v3  ;;  %v3195_v21 = vsel %vm716_vm11, %v7309_v24, %v3194_v31  ;;  %v2803_v34 = vrot.slane %v6892_v53, 2 }
 0x403   : > { %v2782_v11 = vsel %vm2750_vm5, %v6844_v48, %v4950_v56  ;;  %5649 = vmatmul.mubr.msk.f32.gmra.mxu0 %vm321_vm4, %v2822_v17  ;;  %v2823_v49 = vrot.slane %v6883_v29, 1  ;;  %v2825_v9 = vrot.slane %v6886_v32, 1  ;;  %v3198_v60 = vrot.slane %v6883_v29, 3 }
 0x404   : > { %v2801_v12 = vrot.slane %v2782_v11, 2  ;;  %5691 = vmatmul.mubr.msk.f32.vlgmr.msra.gmra.mxu1 %vm321_vm4, %v7309_v24  ;;  %v5975_v55 = vpop.eup %5974  ;;  %v3197_v35 = vsel %vm716_vm11, %v3194_v31, %v3196_v47  ;;  %v3200_v44 = vrot.slane %v6886_v32, 3  ;;  %v3058_v51 = vrot.slane %v6866_v37, 2 }
 0x405   : > { %5693 = vmatprep.mubr.msk.f32.mxu1 %vm321_vm4, %v3195_v21  ;;  %v2824_v40 = vsel %vm303_vm3, %v2821_v15, %v2823_v49  ;;  %v2826_v36 = vsel %vm303_vm3, %v2823_v49, %v2825_v9  ;;  %5719 = vmatpush3.msra.mxu1 %v6818_v52  ;;  %v3199_v52 = vsel %vm716_vm11, %v3196_v47, %v3198_v60  ;;  %v4952_v5 = vadd.f32 -1.0, %v5975_v55  ;;  %v5977_v63 = vpop.eup %5976  ;;  %v7310_v21 = vld [vmem:[#allocation5_spill] sm:$0xff] }
 0x406   : > { %v6912_v61 = vsel %vm279_vm2, %v2799_v22, %v2801_v12  ;;  %5651 = vmatprep.mubr.msk.f32.mxu0 %vm321_vm4, %v2824_v40  ;;  %5720 = vmatprep.subr.mxu1 %v4998_v45  ;;  %v6926_v38 = vsel %vm279_vm2, %v2801_v12, %v2803_v34  ;;  %v3201_v46 = vsel %vm716_vm11, %v3198_v60, %v3200_v44  ;;  %v3482_v6 = vrot.slane %v6862_v19, 5 }
 0x407   : > { %5652 = vmatmul.mubr.msk.f32.gmra.mxu0 %vm321_vm4, %v2826_v36  ;;  %5721 = vmatpush3.msra.mxu1 %v4998_v45  ;;  %v3202_v13 = vrot.slane %v6912_v61, 3  ;;  %v3204_v54 = vrot.slane %v6926_v38, 3  ;;  %v4953_v7 = vadd.f32 -1.0, %v5977_v63  ;;  %v2784_v26 = vsel %vm2752_vm6, %v6848_v62, %v4952_v5 }
 0x408   : > { %5694 = vmatmul.mubr.msk.f32.gmra.mxu1 %vm321_vm4, %v3197_v35  ;;  %5674 = vmatprep.mubr.msk.f32.mxu0 %vm321_vm4, %v3054_v41  ;;  %v3057_v0 = vsel %vm279_vm2, %v3054_v41, %v3056_v43  ;;  %v3060_v50 = vrot.slane %v6883_v29, 2  ;;  %v3062_v42 = vrot.slane %v6886_v32, 2  ;;  %v3484_v16 = vrot.slane %v6866_v37, 5 }
 0x409   : > { %5696 = vmatprep.mubr.msk.f32.mxu1 %vm321_vm4, %v3199_v52  ;;  %v3203_v59 = vsel %vm716_vm11, %v3200_v44, %v3202_v13  ;;  %v3205_v39 = vsel %vm716_vm11, %v3202_v13, %v3204_v54  ;;  %v3483_v8 = vsel %vm1016_vm13, %v3481_v30, %v3482_v6  ;;  %v3486_v2 = vrot.slane %v6883_v29, 5  ;;  %v5008_v52 = vld [vmem:[%s7286_s1 + $0x140] sm:$0xff] }
 0x40a   : > { %v2805_v28 = vrot.slane %v2784_v26, 2  ;;  %v3061_v15 = vsel %vm279_vm2, %v3058_v51, %v3060_v50  ;;  %v3064_v27 = vrot.slane %v6912_v61, 2  ;;  %v6965_v22 = vsel %vm2753_vm7, %v6851_v4, %v4953_v7 }
 0x40b   : > { %5675 = vmatmul.mubr.msk.f32.vlgmr.msra.gmra.mxu0 %vm321_vm4, %v3054_v41  ;;  %v3063_v25 = vsel %vm279_vm2, %v3060_v50, %v3062_v42  ;;  %v3485_v31 = vsel %vm1016_vm13, %v3482_v6, %v3484_v16  ;;  %v3488_v56 = vrot.slane %v6886_v32, 5  ;;  %v3487_v3 = vsel %vm1016_vm13, %v3484_v16, %v3486_v2 }
 0x40c   : > { %5697 = vmatmul.mubr.msk.f32.gmra.mxu1 %vm321_vm4, %v3201_v46  ;;  %5703 = vmatpush3.msra.mxu0 %v6812_v18  ;;  %v3059_v18 = vsel %vm279_vm2, %v3056_v43, %v3058_v51  ;;  %v3490_v17 = vrot.slane %v6912_v61, 5  ;;  %v6979_v24 = vsel %vm279_vm2, %v2803_v34, %v2805_v28  ;;  %v2807_v47 = vrot.slane %v6965_v22, 2 }
 0x40d   : > { %5699 = vmatprep.mubr.msk.f32.mxu1 %vm321_vm4, %v3203_v59  ;;  %5677 = vmatprep.mubr.msk.f32.mxu0 %vm321_vm4, %v3054_v41  ;;  %v3065_v11 = vsel %vm279_vm2, %v3062_v42, %v3064_v27  ;;  %v3335_v49 = vrot.slane %v6862_v19, 4  ;;  %v3489_v9 = vsel %vm1016_vm13, %v3486_v2, %v3488_v56  ;;  %v3337_v45 = vrot.slane %v6866_v37, 4  ;;  %v5027_v2 = vld [vmem:[%s7287_s2 + $0x28] sm:$0xff]  ;;  %v5660_v27 = vpop.f32.mrf.mxu1 }
 0x40e   : > { %5704 = vmatprep.subr.mxu0 %v4988_v14  ;;  %v3492_v12 = vrot.slane %v6926_v38, 5  ;;  %v3491_v53 = vsel %vm1016_vm13, %v3488_v56, %v3490_v17  ;;  %v3494_v60 = vrot.slane %v6979_v24, 5  ;;  %v2808_v40 = vsel %vm279_vm2, %v2805_v28, %v2807_v47  ;;  %v5026_v28 = vld [vmem:[%s7287_s2 + $0x20] sm:$0xff]  ;;  %5750 = vmatprep.subr.mxu1 %v5027_v2  ;;  %v5644_v56 = vpop.f32.mrf.mxu0 }
 0x40f   : > { %5678 = vmatmul.mubr.msk.f32.gmra.mxu0 %vm321_vm4, %v3057_v0  ;;  %v3336_v36 = vsel %vm866_vm12, %v7310_v21, %v3335_v49  ;;  %v3339_v34 = vrot.slane %v6883_v29, 4  ;;  %v3338_v41 = vsel %vm866_vm12, %v3335_v49, %v3337_v45  ;;  %v3341_v35 = vrot.slane %v6886_v32, 4  ;;  %v3012_v22 = vpop.f32.mrf.mxu1 }
 0x410   : > { %5680 = vmatprep.mubr.msk.f32.mxu0 %vm321_vm4, %v3059_v18  ;;  %5700 = vmatmul.mubr.msk.f32.gmra.mxu1 %vm321_vm4, %v3205_v39  ;;  %v3493_v55 = vsel %vm1016_vm13, %v3490_v17, %v3492_v12  ;;  %v3496_v44 = vrot.slane %v2808_v40, 5  ;;  %v3495_v13 = vsel %vm1016_vm13, %v3492_v12, %v3494_v60  ;;  %v3343_v43 = vrot.slane %v6912_v61, 4  ;;  %v2903_v17 = vpop.f32.mrf.mxu0 }
 0x411   : > { %5722 = vmatprep.mubr.msk.f32.mxu1 %vm321_vm4, %v3483_v8  ;;  %5705 = vmatpush3.msra.mxu0 %v4988_v14  ;;  %v3340_v5 = vsel %vm866_vm12, %v3337_v45, %v3339_v34  ;;  %v3342_v63 = vsel %vm866_vm12, %v3339_v34, %v3341_v35  ;;  %v3345_v51 = vrot.slane %v6926_v38, 4  ;;  %v3347_v14 = vrot.slane %v6979_v24, 4 }
 0x412   : > { %5734 = vmatprep.subr.mxu0 %v5009_v10  ;;  %v3497_v46 = vsel %vm1016_vm13, %v3494_v60, %v3496_v44  ;;  %v3344_v54 = vsel %vm866_vm12, %v3341_v35, %v3343_v43  ;;  %v3630_v30 = vrot.slane %v6862_v19, 6  ;;  %v3631_v6 = vrot.slane %v6866_v37, 6 }
 0x413   : > { %5681 = vmatmul.mubr.msk.f32.gmra.mxu0 %vm321_vm4, %v3061_v15  ;;  %v3346_v59 = vsel %vm866_vm12, %v3343_v43, %v3345_v51  ;;  %v3348_v7 = vsel %vm866_vm12, %v3345_v51, %v3347_v14  ;;  %v3633_v26 = vrot.slane %v6883_v29, 6  ;;  %v3635_v50 = vrot.slane %v6886_v32, 6  ;;  %v5037_v15 = vld [vmem:[%s7288_s3 + $0x18] sm:$0xff] }
 0x414   : > { %5683 = vmatprep.mubr.msk.f32.mxu0 %vm321_vm4, %v3063_v25  ;;  %5723 = vmatmul.mubr.msk.f32.vlgmr.msra.gmra.mxu1 %vm321_vm4, %v3485_v31  ;;  %v3632_v0 = vsel %vm1166_vm14, %v3630_v30, %v3631_v6  ;;  %v3637_v19 = vrot.slane %v6912_v61, 6  ;;  %v3639_v39 = vrot.slane %v6926_v38, 6  ;;  %v3641_v42 = vrot.slane %v6979_v24, 6  ;;  %v5663_v25 = vpop.f32.mrf.mxu1 }
 0x415   : > { %5725 = vmatprep.mubr.msk.f32.mxu1 %vm321_vm4, %v3487_v3  ;;  %v3634_v18 = vsel %vm1166_vm14, %v3631_v6, %v3633_v26  ;;  %v3636_v37 = vsel %vm1166_vm14, %v3633_v26, %v3635_v50  ;;  %v3643_v16 = vrot.slane %v2808_v40, 6  ;;  %v3645_v38 = vrot.slane %v2807_v47, 6  ;;  %5751 = vmatpush3.msra.mxu1 %v5027_v2  ;;  %v5647_v47 = vpop.f32.mrf.mxu0 }
 0x416   : > { %v3638_v29 = vsel %vm1166_vm14, %v3635_v50, %v3637_v19  ;;  %v3640_v32 = vsel %vm1166_vm14, %v3637_v19, %v3639_v39  ;;  %v3642_v61 = vsel %vm1166_vm14, %v3639_v39, %v3641_v42  ;;  %5752 = vmatprep.subr.mxu1 %v5026_v28  ;;  %v3022_v31 = vpop.f32.mrf.mxu1  ;;  %v3018_v6 = vadd.f32 %v5660_v27, %v5644_v56 }
 0x417   : > { %5684 = vmatmul.mubr.msk.f32.gmra.mxu0 %vm321_vm4, %v3065_v11  ;;  %v3646_v8 = vsel %vm1166_vm14, %v3643_v16, %v3645_v38  ;;  %5753 = vmatpush3.msra.mxu1 %v5026_v28  ;;  %v2913_v49 = vpop.f32.mrf.mxu0  ;;  %v3028_v19 = vadd.f32 %v5663_v25, %v5647_v47  ;;  %vm4672_vm5 = vcmask 261120  }
 0x418   : > { %5726 = vmatmul.mubr.msk.f32.gmra.mxu1 %vm321_vm4, %v3489_v9  ;;  %5706 = vmatprep.mubr.msk.f32.mxu0 %vm321_vm4, %v7310_v21  ;;  %v5666_v3 = vpop.f32.mrf.mxu1 }
 0x419   : > { %5728 = vmatprep.mubr.msk.f32.mxu1 %vm321_vm4, %v3491_v53 }
 0x41a   : > { %v3032_v24 = vpop.f32.mrf.mxu1 }
 0x41b   : > { %5707 = vmatmul.mubr.msk.f32.vlgmr.msra.gmra.mxu0 %vm321_vm4, %v3336_v36 }
 0x41c   : > { %5709 = vmatprep.mubr.msk.f32.mxu0 %vm321_vm4, %v3338_v41  ;;  %5729 = vmatmul.mubr.msk.f32.gmra.mxu1 %vm321_vm4, %v3493_v55 }
 0x41d   : > { %5735 = vmatpush3.msra.mxu0 %v5009_v10  ;;  %5731 = vmatprep.mubr.msk.f32.mxu1 %vm321_vm4, %v3495_v13  ;;  %v3644_v10 = vsel %vm1166_vm14, %v3641_v42, %v3643_v16  ;;  %v3023_v42 = vadd.f32 %v3022_v31, %v2913_v49 }
 0x41e   : > { %5736 = vmatprep.subr.mxu0 %v5008_v52 }
 0x41f   : > { %5710 = vmatmul.mubr.msk.f32.gmra.mxu0 %vm321_vm4, %v3340_v5 }
 0x420   : > { %5712 = vmatprep.mubr.msk.f32.mxu0 %vm321_vm4, %v3342_v63  ;;  %5732 = vmatmul.mubr.msk.f32.gmra.mxu1 %vm321_vm4, %v3497_v46 }
 0x421   : > { %5737 = vmatpush3.msra.mxu0 %v5008_v52 }
 0x422   : > { %5766 = vmatprep.subr.mxu0 %v5037_v15 }
 0x423   : > { %5713 = vmatmul.mubr.msk.f32.gmra.mxu0 %vm321_vm4, %v3344_v54 }
 0x424   : > { %5715 = vmatprep.mubr.msk.f32.mxu0 %vm321_vm4, %v3346_v59 }
 0x427   : > { %5716 = vmatmul.mubr.msk.f32.gmra.mxu0 %vm321_vm4, %v3348_v7 }
 0x428   : > { %5738 = vmatprep.mubr.msk.f32.mxu0 %vm321_vm4, %v3632_v0  ;;  %v3013_v0 = vadd.f32 %v3012_v22, %v2903_v17 }
 0x42b   : > { %5739 = vmatmul.mubr.msk.f32.vlgmr.msra.gmra.mxu0 %vm321_vm4, %v3634_v18 }
 0x42c   : > { %5741 = vmatprep.mubr.msk.f32.mxu0 %vm321_vm4, %v3636_v37  ;;  %5767 = vmatpush3.msra.mxu0 %v5037_v15 }
 0x42f   : > { %5742 = vmatmul.mubr.msk.f32.gmra.mxu0 %vm321_vm4, %v3638_v29 }
 0x430   : > { %5744 = vmatprep.mubr.msk.f32.mxu0 %vm321_vm4, %v3640_v32 }
 0x433   : > { %5745 = vmatmul.mubr.msk.f32.gmra.mxu0 %vm321_vm4, %v3642_v61 }
 0x434   : > { %5747 = vmatprep.mubr.msk.f32.mxu0 %vm321_vm4, %v3644_v10 }
 0x437   : > { %5748 = vmatmul.mubr.msk.f32.gmra.mxu0 %vm321_vm4, %v3646_v8 }
 0x4c0   : > { %v5669_v11 = vpop.f32.mrf.mxu1 }
 0x4c2   : > { %v3042_v9 = vpop.f32.mrf.mxu1 }
 0x4c3   : > { %v5650_v45 = vpop.f32.mrf.mxu0 }
 0x4c4   : > { %v5692_v12 = vpop.f32.mrf.mxu1  ;;  %v3038_v61 = vadd.f32 %v5666_v3, %v5650_v45 }
 0x4c5   : > { %v2923_v53 = vpop.f32.mrf.mxu0 }
 0x4c6   : > { %v3284_v21 = vpop.f32.mrf.mxu1  ;;  %v3033_v28 = vadd.f32 %v3032_v24, %v2923_v53 }
 0x4c7   : > { %v5653_v60 = vpop.f32.mrf.mxu0 }
 0x4c8   : > { %v5695_v40 = vpop.f32.mrf.mxu1  ;;  %v3048_v17 = vadd.f32 %v5669_v11, %v5653_v60 }
 0x4c9   : > { %v2933_v36 = vpop.f32.mrf.mxu0 }
 0x4ca   : > { %v3294_v34 = vpop.f32.mrf.mxu1  ;;  %v3043_v31 = vadd.f32 %v3042_v9, %v2933_v36 }
 0x4cb   : > { %v5676_v41 = vpop.f32.mrf.mxu0 }
 0x4cc   : > { %v5698_v55 = vpop.f32.mrf.mxu1  ;;  %v3184_v50 = vadd.f32 %v5676_v41, %v3018_v6 }
 0x4cd   : > { %v3144_v35 = vpop.f32.mrf.mxu0 }
 0x4ce   : > { %v3304_v44 = vpop.f32.mrf.mxu1  ;;  %v3183_v37 = vadd.f32 %v3144_v35, %v3013_v0  ;;  %v3324_v16 = vadd.f32 %v5692_v12, %v3184_v50 }
 0x4cf   : > { %v5679_v52 = vpop.f32.mrf.mxu0 }
 0x4d0   : > { %v5701_v5 = vpop.f32.mrf.mxu1  ;;  %v3186_v32 = vadd.f32 %v5679_v52, %v3028_v19  ;;  %v3323_v2 = vadd.f32 %v3284_v21, %v3183_v37 }
 0x4d1   : > { %v3154_v13 = vpop.f32.mrf.mxu0 }
 0x4d2   : > { %v3314_v46 = vpop.f32.mrf.mxu1  ;;  %v3185_v38 = vadd.f32 %v3154_v13, %v3023_v42  ;;  %v3326_v22 = vadd.f32 %v5695_v40, %v3186_v32 }
 0x4d3   : > { %v5682_v43 = vpop.f32.mrf.mxu0 }
 0x4d4   : > { %v5724_v14 = vpop.f32.mrf.mxu1  ;;  %v3188_v15 = vadd.f32 %v5682_v43, %v3038_v61  ;;  %v3325_v35 = vadd.f32 %v3294_v34, %v3185_v38 }
 0x4d5   : > { %v3164_v63 = vpop.f32.mrf.mxu0 }
 0x4d6   : > { %v3580_v7 = vpop.f32.mrf.mxu1  ;;  %v3187_v41 = vadd.f32 %v3164_v63, %v3033_v28  ;;  %v3328_v3 = vadd.f32 %v5698_v55, %v3188_v15 }
 0x4d7   : > { %v5685_v51 = vpop.f32.mrf.mxu0 }
 0x4d8   : > { %v5727_v39 = vpop.f32.mrf.mxu1  ;;  %v3190_v49 = vadd.f32 %v5685_v51, %v3048_v17  ;;  %v3327_v43 = vadd.f32 %v3304_v44, %v3187_v41 }
 0x4d9   : > { %v3174_v54 = vpop.f32.mrf.mxu0 }
 0x4da   : > { %v3590_v27 = vpop.f32.mrf.mxu1  ;;  %v3189_v24 = vadd.f32 %v3174_v54, %v3043_v31 }
 0x4db   : > { %v5708_v59 = vpop.f32.mrf.mxu0 }
 0x4dc   : > { %v3471_v8 = vadd.f32 %v5708_v59, %v3324_v16  ;;  %v5730_v12 = vpop.f32.mrf.mxu1  ;;  %v3329_v55 = vadd.f32 %v3314_v46, %v3189_v24 }
 0x4dd   : > { %v3431_v30 = vpop.f32.mrf.mxu0 }
 0x4de   : > { %v3470_v1 = vadd.f32 %v3431_v30, %v3323_v2  ;;  %v3620_v6 = vadd.f32 %v5724_v14, %v3471_v8  ;;  %v3600_v60 = vpop.f32.mrf.mxu1 }
 0x4df   : > { %v5711_v26 = vpop.f32.mrf.mxu0 }
 0x4e0   : > { %v3473_v47 = vadd.f32 %v5711_v26, %v3326_v22  ;;  %v3619_v21 = vadd.f32 %v3580_v7, %v3470_v1  ;;  %v3330_v26 = vadd.f32 %v5701_v5, %v3190_v49  ;;  %v5733_v44 = vpop.f32.mrf.mxu1 }
 0x4e1   : > { %v3441_v18 = vpop.f32.mrf.mxu0 }
 0x4e2   : > { %v3472_v52 = vadd.f32 %v3441_v18, %v3325_v35  ;;  %v3622_v11 = vadd.f32 %v5727_v39, %v3473_v47  ;;  %v3610_v16 = vpop.f32.mrf.mxu1 }
 0x4e3   : > { %v5714_v29 = vpop.f32.mrf.mxu0 }
 0x4e4   : > { %v3475_v53 = vadd.f32 %v5714_v29, %v3328_v3  ;;  %v3621_v51 = vadd.f32 %v3590_v27, %v3472_v52 }
 0x4e5   : > { %v3451_v10 = vpop.f32.mrf.mxu0 }
 0x4e6   : > { %v3474_v63 = vadd.f32 %v3451_v10, %v3327_v43  ;;  %v3624_v0 = vadd.f32 %v5730_v12, %v3475_v53 }
 0x4e7   : > { %v5717_v56 = vpop.f32.mrf.mxu0 }
 0x4e8   : > { %v3477_v50 = vadd.f32 %v5717_v56, %v3330_v26  ;;  %v3623_v18 = vadd.f32 %v3600_v60, %v3474_v63  ;;  %v3982_v60 = vld [vmem:[%s7288_s3 + $0x8] sm:$0xff]  ;;  %v5036_v63 = vld [vmem:[%s7288_s3 + $0x10] sm:$0xff]  ;;  %v3981_v26 = vld [vmem:[%s7288_s3] sm:$0xff] }
 0x4e9   : > { %v3461_v25 = vpop.f32.mrf.mxu0  ;;  %5782 = vmatprep.subr.mxu1 %v3982_v60  ;;  %5768 = vmatprep.subr.mxu0 %v5036_v63 }
 0x4ea   : > { %v3476_v19 = vadd.f32 %v3461_v25, %v3329_v55  ;;  %v3626_v32 = vadd.f32 %v5733_v44, %v3477_v50  ;;  %5769 = vmatpush3.msra.mxu0 %v5036_v63 }
 0x4eb   : > { %v5740_v45 = vpop.f32.mrf.mxu0 }
 0x4ec   : > { %v3769_v13 = vadd.f32 %v5740_v45, %v3620_v6  ;;  %v3625_v38 = vadd.f32 %v3610_v16, %v3476_v19 }
 0x4ed   : > { %v3729_v59 = vpop.f32.mrf.mxu0 }
 0x4ee   : > { %v3786_v30 = vmul.f32 1.442695, %v3769_v13  ;;  %v3768_v40 = vadd.f32 %v3729_v59, %v3619_v21  ;;  %vm3777_vm14 = vcmp.gt.f32.partialorder %v3769_v13, 0.0 }
 0x4ef   : > { %v5743_v34 = vpop.f32.mrf.mxu0 }
 0x4f0   : > { %5978 = vpow2.f32 %v3786_v30  ;;  %v3784_v9 = vmul.f32 1.442695, %v3768_v40  ;;  %v3771_v36 = vadd.f32 %v5743_v34, %v3622_v11  ;;  %vm3776_vm12 = vcmp.gt.f32.partialorder %v3768_v40, 0.0  ;;  %v5055_v34 = vld [vmem:[%s7288_s3 + $0x28] sm:$0xff] }
 0x4f1   : > { %v3739_v14 = vpop.f32.mrf.mxu0  ;;  %5798 = vmatprep.subr.mxu0 %v5055_v34 }
 0x4f2   : > { %5980 = vpow2.f32 %v3784_v9  ;;  %v3790_v1 = vmul.f32 1.442695, %v3771_v36  ;;  %v3770_v54 = vadd.f32 %v3739_v14, %v3621_v51  ;;  %vm3779_vm9 = vcmp.gt.f32.partialorder %v3771_v36, 0.0  ;;  %v5065_v9 = vld [vmem:[%s7288_s3 + $0x38] sm:$0xff] }
 0x4f3   : > { %v5746_v7 = vpop.f32.mrf.mxu0 }
 0x4f4   : > { %5982 = vpow2.f32 %v3790_v1  ;;  %v3788_v37 = vmul.f32 1.442695, %v3770_v54  ;;  %v3773_v39 = vadd.f32 %v5746_v7, %v3624_v0  ;;  %vm3778_vm8 = vcmp.gt.f32.partialorder %v3770_v54, 0.0 }
 0x4f5   : > { %v3749_v5 = vpop.f32.mrf.mxu0 }
 0x4f6   : > { %5984 = vpow2.f32 %v3788_v37  ;;  %v3794_v29 = vmul.f32 1.442695, %v3773_v39  ;;  %v3772_v42 = vadd.f32 %v3749_v5, %v3623_v18  ;;  %vm3781_vm15 = vcmp.gt.f32.partialorder %v3773_v39, 0.0 }
 0x4f7   : > { %v5749_v46 = vpop.f32.mrf.mxu0 }
 0x4f8   : > { %5986 = vpow2.f32 %v3794_v29  ;;  %v3792_v61 = vmul.f32 1.442695, %v3772_v42  ;;  %v3775_v10 = vadd.f32 %v5749_v46, %v3626_v32  ;;  %vm3780_vm10 = vcmp.gt.f32.partialorder %v3772_v42, 0.0 }
 0x4f9   : > { %v3759_v8 = vpop.f32.mrf.mxu0 }
 0x4fa   : > { %5988 = vpow2.f32 %v3792_v61  ;;  %v3798_v2 = vmul.f32 1.442695, %v3775_v10  ;;  %v3774_v28 = vadd.f32 %v3759_v8, %v3625_v38  ;;  %vm3783_vm1 = vcmp.gt.f32.partialorder %v3775_v10, 0.0 }
 0x4fc   : > { %5990 = vpow2.f32 %v3798_v2  ;;  %v3796_v15 = vmul.f32 1.442695, %v3774_v28  ;;  %vm3782_vm0 = vcmp.gt.f32.partialorder %v3774_v28, 0.0 }
 0x4fd   : > { %v5979_v27 = vpop.eup %5978 }
 0x4fe   : > { %5992 = vpow2.f32 %v3796_v15  ;;  %v5019_v22 = vadd.f32 -1.0, %v5979_v27 }
 0x4ff   : > { %v5981_v56 = vpop.eup %5980 }
 0x500   : > { %v5018_v17 = vadd.f32 -1.0, %v5981_v56  ;;  %v3809_v35 = vsel %vm3777_vm14, %v3769_v13, %v5019_v22 }
 0x501   : > { %v5983_v41 = vpop.eup %5982 }
 0x502   : > { %v3808_v25 = vsel %vm3776_vm12, %v3768_v40, %v5018_v17  ;;  %v5021_v6 = vadd.f32 -1.0, %v5983_v41 }
 0x503   : > { %v5985_v47 = vpop.eup %5984  ;;  %5754 = vmatprep.mubr.msk.f32.mxu1 %vm321_vm4, %v3808_v25 }
 0x504   : > { %5755 = vmatmul.mubr.msk.f32.vlgmr.msra.gmra.mxu1 %vm321_vm4, %v3809_v35  ;;  %v5020_v31 = vadd.f32 -1.0, %v5985_v47  ;;  %v3811_v45 = vsel %vm3779_vm9, %v3771_v36, %v5021_v6 }
 0x505   : > { %v5987_v49 = vpop.eup %5986  ;;  %5783 = vmatpush3.msra.mxu1 %v3982_v60 }
 0x506   : > { %v3810_v12 = vsel %vm3778_vm8, %v3770_v54, %v5020_v31  ;;  %v5023_v52 = vadd.f32 -1.0, %v5987_v49  ;;  %5784 = vmatprep.subr.mxu1 %v3981_v26 }
 0x507   : > { %v5989_v3 = vpop.eup %5988  ;;  %5757 = vmatprep.mubr.msk.f32.mxu1 %vm321_vm4, %v3810_v12  ;;  %5785 = vmatpush3.msra.mxu1 %v3981_v26 }
 0x508   : > { %5758 = vmatmul.mubr.msk.f32.gmra.mxu1 %vm321_vm4, %v3811_v45  ;;  %v5022_v21 = vadd.f32 -1.0, %v5989_v3  ;;  %v3813_v43 = vsel %vm3781_vm15, %v3773_v39, %v5023_v52  ;;  %5814 = vmatprep.subr.mxu1 %v5065_v9 }
 0x509   : > { %v5991_v24 = vpop.eup %5990 }
 0x50a   : > { %v3812_v13 = vsel %vm3780_vm10, %v3772_v42, %v5022_v21  ;;  %v5025_v59 = vadd.f32 -1.0, %v5991_v24 }
 0x50b   : > { %v5993_v53 = vpop.eup %5992  ;;  %5760 = vmatprep.mubr.msk.f32.mxu1 %vm321_vm4, %v3812_v13 }
 0x50c   : > { %5761 = vmatmul.mubr.msk.f32.gmra.mxu1 %vm321_vm4, %v3813_v43  ;;  %v5024_v30 = vadd.f32 -1.0, %v5993_v53  ;;  %v3815_v11 = vsel %vm3783_vm1, %v3775_v10, %v5025_v59 }
 0x50e   : > { %v3814_v40 = vsel %vm3782_vm0, %v3774_v28, %v5024_v30 }
 0x50f   : > { %5763 = vmatprep.mubr.msk.f32.mxu1 %vm321_vm4, %v3814_v40 }
 0x510   : > { %5764 = vmatmul.mubr.msk.f32.gmra.mxu1 %vm321_vm4, %v3815_v11 }
 0x5c4   : > { %v5756_v36 = vpop.f32.mrf.mxu1 }
 0x5c5   : > { %v3949_v51 = vadd.f32 %v5756_v36, %v6824_v58 }
 0x5c6   : > { %v3909_v55 = vpop.f32.mrf.mxu1 }
 0x5c7   : > { %v3948_v14 = vadd.f32 %v3909_v55, %v6828_v33  ;;  %v3965_v50 = vrot.slane %v3949_v51, 5 }
 0x5c8   : > { %v5759_v0 = vpop.f32.mrf.mxu1 }
 0x5c9   : > { %v3964_v1 = vrot.slane %v3948_v14, 5  ;;  %v3951_v54 = vadd.f32 %v5759_v0, %v6832_v23  ;;  %v5064_v23 = vld [vmem:[%s7288_s3 + $0x30] sm:$0xff] }
 0x5ca   : > { %v3919_v44 = vpop.f32.mrf.mxu1 }
 0x5cb   : > { %v7087_v7 = vsel %vm1016_vm13, %v3964_v1, %v3965_v50  ;;  %v7090_v18 = vsel %vm1016_vm13, 0.0, %v3964_v1  ;;  %v3950_v19 = vadd.f32 %v3919_v44, %v6836_v57  ;;  %v3969_v39 = vrot.slane %v3951_v54, 5 }
 0x5cc   : > { %v3987_v37 = vrot.slane %v7090_v18, 1  ;;  %v5762_v58 = vpop.f32.mrf.mxu1  ;;  %5786 = vmatprep.mubr.msk.f32.mxu1 %vm321_vm4, %v7090_v18  ;;  %v3988_v33 = vrot.slane %v7087_v7, 1  ;;  %v4398_v41 = vrot.slane %v7090_v18, 3  ;;  %v4399_v35 = vrot.slane %v7087_v7, 3 }
 0x5cd   : > { %v3967_v5 = vrot.slane %v3950_v19, 5  ;;  %v3953_v29 = vadd.f32 %v5762_v58, %v6840_v20  ;;  %5787 = vmatmul.mubr.msk.f32.vlgmr.msra.gmra.mxu1 %vm321_vm4, %v7087_v7  ;;  %v4249_v43 = vrot.slane %v7090_v18, 2  ;;  %v4250_v59 = vrot.slane %v7087_v7, 2 }
 0x5ce   : > { %v3929_v57 = vpop.f32.mrf.mxu1  ;;  %v3989_v42 = vsel %vm303_vm3, %v3987_v37, %v3988_v33  ;;  %5815 = vmatpush3.msra.mxu1 %v5065_v9  ;;  %v4400_v24 = vsel %vm716_vm11, %v4398_v41, %v4399_v35 }
 0x5cf   : > { %v3952_v32 = vadd.f32 %v3929_v57, %v6844_v48  ;;  %5770 = vmatprep.mubr.msk.f32.mxu0 %vm321_vm4, %v3989_v42  ;;  %v7107_v16 = vsel %vm1016_vm13, %v3965_v50, %v3967_v5  ;;  %v7110_v46 = vsel %vm1016_vm13, %v3967_v5, %v3969_v39  ;;  %5816 = vmatprep.subr.mxu1 %v5064_v23  ;;  %v3973_v38 = vrot.slane %v3953_v29, 5 }
 0x5d0   : > { %v5765_v61 = vpop.f32.mrf.mxu1  ;;  %v3990_v20 = vrot.slane %v7107_v16, 1  ;;  %5789 = vmatprep.mubr.msk.f32.mxu1 %vm321_vm4, %v7107_v16  ;;  %v3992_v10 = vrot.slane %v7110_v46, 1  ;;  %5817 = vmatpush3.msra.mxu1 %v5064_v23  ;;  %v4401_v3 = vrot.slane %v7107_v16, 3  ;;  %v4403_v21 = vrot.slane %v7110_v46, 3 }
 0x5d1   : > { %v3971_v48 = vrot.slane %v3952_v32, 5  ;;  %v3955_v8 = vadd.f32 %v5765_v61, %v6851_v4  ;;  %5790 = vmatmul.mubr.msk.f32.gmra.mxu1 %vm321_vm4, %v7110_v46  ;;  %v5054_v4 = vld [vmem:[%s7288_s3 + $0x20] sm:$0xff]  ;;  %v4252_v26 = vrot.slane %v7107_v16, 2  ;;  %v4254_v9 = vrot.slane %v7110_v46, 2 }
 0x5d2   : > { %v3939_v2 = vpop.f32.mrf.mxu1  ;;  %v3991_v28 = vsel %vm303_vm3, %v3988_v33, %v3990_v20  ;;  %v3993_v15 = vsel %vm303_vm3, %v3990_v20, %v3992_v10  ;;  %v4402_v40 = vsel %vm716_vm11, %v4399_v35, %v4401_v3  ;;  %v4404_v63 = vsel %vm716_vm11, %v4401_v3, %v4403_v21 }
 0x5d3   : > { %v3954_v27 = vadd.f32 %v3939_v2, %v6848_v62  ;;  %5771 = vmatmul.mubr.msk.f32.vlgmr.msra.gmra.mxu0 %vm321_vm4, %v3991_v28  ;;  %v7124_v56 = vsel %vm1016_vm13, %v3969_v39, %v3971_v48  ;;  %v7127_v22 = vsel %vm1016_vm13, %v3971_v48, %v3973_v38  ;;  %v7138_v25 = vrot.slane %v3955_v8, 5 }
 0x5d4   : > { %5773 = vmatprep.mubr.msk.f32.mxu0 %vm321_vm4, %v3993_v15  ;;  %v3994_v17 = vrot.slane %v7124_v56, 1  ;;  %5792 = vmatprep.mubr.msk.f32.mxu1 %vm321_vm4, %v7124_v56  ;;  %v3996_v62 = vrot.slane %v7127_v22, 1  ;;  %v4405_v30 = vrot.slane %v7124_v56, 3  ;;  %v4407_v60 = vrot.slane %v7127_v22, 3 }
 0x5d5   : > { %v3975_v47 = vrot.slane %v3954_v27, 5  ;;  %5799 = vmatpush3.msra.mxu0 %v5055_v34  ;;  %5793 = vmatmul.mubr.msk.f32.gmra.mxu1 %vm321_vm4, %v7127_v22  ;;  %v4002_v11 = vrot.slane %v7138_v25, 1  ;;  %v4251_v36 = vsel %vm279_vm2, %v4249_v43, %v4250_v59  ;;  %v4256_v50 = vrot.slane %v7124_v56, 2 }
 0x5d6   : > { %v3995_v6 = vsel %vm303_vm3, %v3992_v10, %v3994_v17  ;;  %v3997_v31 = vsel %vm303_vm3, %v3994_v17, %v3996_v62  ;;  %5800 = vmatprep.subr.mxu0 %v5054_v4  ;;  %v4406_v55 = vsel %vm716_vm11, %v4403_v21, %v4405_v30  ;;  %v4408_v0 = vsel %vm716_vm11, %v4405_v30, %v4407_v60 }
 0x5d7   : > { %5774 = vmatmul.mubr.msk.f32.gmra.mxu0 %vm321_vm4, %v3995_v6  ;;  %v3976_v49 = vsel %vm1016_vm13, %v3973_v38, %v3975_v47  ;;  %v3978_v12 = vsel %vm1016_vm13, %v3975_v47, %v7138_v25  ;;  %v4253_v1 = vsel %vm279_vm2, %v4250_v59, %v4252_v26  ;;  %v4258_v54 = vrot.slane %v7127_v22, 2 }
 0x5d8   : > { %5776 = vmatprep.mubr.msk.f32.mxu0 %vm321_vm4, %v3997_v31  ;;  %v3998_v45 = vrot.slane %v3976_v49, 1  ;;  %5795 = vmatprep.mubr.msk.f32.mxu1 %vm321_vm4, %v3976_v49  ;;  %v4000_v52 = vrot.slane %v3978_v12, 1  ;;  %v4409_v51 = vrot.slane %v3976_v49, 3  ;;  %v4411_v14 = vrot.slane %v3978_v12, 3 }
 0x5d9   : > { %5796 = vmatmul.mubr.msk.f32.gmra.mxu1 %vm321_vm4, %v3978_v12  ;;  %5801 = vmatpush3.msra.mxu0 %v5054_v4  ;;  %v4255_v44 = vsel %vm279_vm2, %v4252_v26, %v4254_v9  ;;  %v4413_v19 = vrot.slane %v7138_v25, 3  ;;  %v4260_v37 = vrot.slane %v3976_v49, 2  ;;  %v4257_v58 = vsel %vm279_vm2, %v4254_v9, %v4256_v50 }
 0x5da   : > { %5818 = vmatprep.mubr.msk.f32.mxu1 %vm321_vm4, %v4400_v24  ;;  %v3999_v13 = vsel %vm303_vm3, %v3996_v62, %v3998_v45  ;;  %v4001_v53 = vsel %vm303_vm3, %v3998_v45, %v4000_v52  ;;  %v4003_v34 = vsel %vm303_vm3, %v4000_v52, %v4002_v11  ;;  %v4410_v7 = vsel %vm716_vm11, %v4407_v60, %v4409_v51 }
 0x5db   : > { %5777 = vmatmul.mubr.msk.f32.gmra.mxu0 %vm321_vm4, %v3999_v13  ;;  %v4412_v18 = vsel %vm716_vm11, %v4409_v51, %v4411_v14  ;;  %v4262_v33 = vrot.slane %v3978_v12, 2  ;;  %v4259_v23 = vsel %vm279_vm2, %v4256_v50, %v4258_v54  ;;  %v4414_v39 = vsel %vm716_vm11, %v4411_v14, %v4413_v19 }
 0x5dc   : > { %5779 = vmatprep.mubr.msk.f32.mxu0 %vm321_vm4, %v4001_v53  ;;  %v4261_v5 = vsel %vm279_vm2, %v4258_v54, %v4260_v37  ;;  %v4264_v57 = vrot.slane %v7138_v25, 2  ;;  %v4544_v32 = vlaneseq  ;;  %vm4574_vm3 = vcmask 523264  }
 0x5dd   : > { %5819 = vmatmul.mubr.msk.f32.vlgmr.msra.gmra.mxu1 %vm321_vm4, %v4402_v40  ;;  %v4263_v29 = vsel %vm279_vm2, %v4260_v37, %v4262_v33  ;;  %v7311_v2 = vmov 0.0  }
 0x5de   : > { %5821 = vmatprep.mubr.msk.f32.mxu1 %vm321_vm4, %v4404_v63  ;;  %v4265_v42 = vsel %vm279_vm2, %v4262_v33, %v4264_v57  ;;  %v4545_v16 = vshrl.u32 %v4544_v32, 7  ;;  %v4550_v46 = vand.u32 127, %v4544_v32 }
 0x5df   : > { %5780 = vmatmul.mubr.msk.f32.gmra.mxu0 %vm321_vm4, %v4003_v34 }
 0x5e0   : > { %5802 = vmatprep.mubr.msk.f32.mxu0 %vm321_vm4, %v4251_v36  ;;  %v4551_v61 = vmul.u32 2, %v4545_v16  ;;  %v4546_v20 = vadd.s32 8, %v4545_v16  ;;  %v4547_v10 = vadd.s32 16, %v4545_v16  ;;  %v4548_v38 = vadd.s32 24, %v4545_v16 }
 0x5e1   : > { %5822 = vmatmul.mubr.msk.f32.gmra.mxu1 %vm321_vm4, %v4406_v55 }
 0x5e2   : > { %5824 = vmatprep.mubr.msk.f32.mxu1 %vm321_vm4, %v4408_v0  ;;  %vm4555_vm11 = vcmp.eq.s32.totalorder %v4550_v46, %v4551_v61  ;;  %v4552_v48 = vmul.u32 2, %v4546_v20  ;;  %v4553_v8 = vmul.u32 2, %v4547_v10 }
 0x5e3   : > { %5803 = vmatmul.mubr.msk.f32.vlgmr.msra.gmra.mxu0 %vm321_vm4, %v4253_v1  ;;  %v5074_v28 = vsel %vm4555_vm11, 1.0, %v7311_v2  ;;  %v4554_v15 = vmul.u32 2, %v4548_v38 }
 0x5e4   : > { %5805 = vmatprep.mubr.msk.f32.mxu0 %vm321_vm4, %v4255_v44  ;;  %vm7205_vm13 = vcmp.eq.s32.totalorder %v4550_v46, %v4552_v48  ;;  %vm7209_vm2 = vcmp.eq.s32.totalorder %v4550_v46, %v4553_v8 }
 0x5e5   : > { %5825 = vmatmul.mubr.msk.f32.gmra.mxu1 %vm321_vm4, %v4410_v7  ;;  %v5075_v48 = vsel %vm7205_vm13, 1.0, %v7311_v2  ;;  %v5076_v8 = vsel %vm7209_vm2, 1.0, %v7311_v2 }
 0x5e6   : > { %5827 = vmatprep.mubr.msk.f32.mxu1 %vm321_vm4, %v4412_v18 }
 0x5e7   : > { %5806 = vmatmul.mubr.msk.f32.gmra.mxu0 %vm321_vm4, %v4257_v58 }
 0x5e8   : > { %5808 = vmatprep.mubr.msk.f32.mxu0 %vm321_vm4, %v4259_v23 }
 0x5e9   : > { %5828 = vmatmul.mubr.msk.f32.gmra.mxu1 %vm321_vm4, %v4414_v39 }
 0x5eb   : > { %5809 = vmatmul.mubr.msk.f32.gmra.mxu0 %vm321_vm4, %v4261_v5 }
 0x5ec   : > { %5811 = vmatprep.mubr.msk.f32.mxu0 %vm321_vm4, %v4263_v29 }
 0x5ef   : > { %5812 = vmatmul.mubr.msk.f32.gmra.mxu0 %vm321_vm4, %v4265_v42  ;;  %vm7213_vm4 = vcmp.eq.s32.totalorder %v4550_v46, %v4554_v15  ;;  %v5078_v15 = vld [vmem:[%s7289_s4] ss:$0 sm:$0xff] }
 0x5f0   : > { %5846 = vmatprep.mubr.msk.f32.mxu0 %vm4574_vm3, %v5074_v28  ;;  %v5077_v28 = vsel %vm7213_vm4, 1.0, %v7311_v2 }
 0x68d   : > { %v5788_v4 = vpop.f32.mrf.mxu1 }
 0x68f   : > { %v4207_v17 = vpop.f32.mrf.mxu1 }
 0x691   : > { %v5791_v62 = vpop.f32.mrf.mxu1 }
 0x693   : > { %v5772_v41 = vpop.f32.mrf.mxu0  ;;  %v4217_v25 = vpop.f32.mrf.mxu1 }
 0x694   : > { %v4213_v29 = vadd.f32 %v5788_v4, %v5772_v41 }
 0x695   : > { %v4086_v47 = vpop.f32.mrf.mxu0  ;;  %v5794_v35 = vpop.f32.mrf.mxu1 }
 0x696   : > { %v4208_v32 = vadd.f32 %v4207_v17, %v4086_v47 }
 0x697   : > { %v5775_v6 = vpop.f32.mrf.mxu0  ;;  %v4227_v31 = vpop.f32.mrf.mxu1 }
 0x698   : > { %v4223_v37 = vadd.f32 %v5791_v62, %v5775_v6 }
 0x699   : > { %v4096_v49 = vpop.f32.mrf.mxu0  ;;  %v5797_v12 = vpop.f32.mrf.mxu1 }
 0x69a   : > { %v4218_v23 = vadd.f32 %v4217_v25, %v4096_v49 }
 0x69b   : > { %v5778_v3 = vpop.f32.mrf.mxu0  ;;  %v4237_v45 = vpop.f32.mrf.mxu1 }
 0x69c   : > { %v4233_v14 = vadd.f32 %v5794_v35, %v5778_v3 }
 0x69d   : > { %v4106_v52 = vpop.f32.mrf.mxu0  ;;  %v5820_v21 = vpop.f32.mrf.mxu1 }
 0x69e   : > { %v4228_v54 = vadd.f32 %v4227_v31, %v4106_v52 }
 0x69f   : > { %v5781_v24 = vpop.f32.mrf.mxu0  ;;  %v4497_v13 = vpop.f32.mrf.mxu1 }
 0x6a0   : > { %v4243_v36 = vadd.f32 %v5797_v12, %v5781_v24 }
 0x6a1   : > { %v4116_v53 = vpop.f32.mrf.mxu0  ;;  %v5823_v43 = vpop.f32.mrf.mxu1 }
 0x6a2   : > { %v4238_v0 = vadd.f32 %v4237_v45, %v4116_v53 }
 0x6a3   : > { %v5804_v59 = vpop.f32.mrf.mxu0  ;;  %v4507_v30 = vpop.f32.mrf.mxu1 }
 0x6a4   : > { %v4388_v16 = vadd.f32 %v5804_v59, %v4213_v29 }
 0x6a5   : > { %v4348_v40 = vpop.f32.mrf.mxu0  ;;  %v5826_v11 = vpop.f32.mrf.mxu1 }
 0x6a6   : > { %v4387_v61 = vadd.f32 %v4348_v40, %v4208_v32  ;;  %v4537_v10 = vadd.f32 %v5820_v21, %v4388_v16 }
 0x6a7   : > { %v5807_v60 = vpop.f32.mrf.mxu0  ;;  %v4517_v26 = vpop.f32.mrf.mxu1 }
 0x6a8   : > { %v4390_v39 = vadd.f32 %v5807_v60, %v4223_v37  ;;  %v4536_v38 = vadd.f32 %v4497_v13, %v4387_v61 }
 0x6a9   : > { %v4358_v63 = vpop.f32.mrf.mxu0  ;;  %v5829_v51 = vpop.f32.mrf.mxu1 }
 0x6aa   : > { %v4389_v57 = vadd.f32 %v4358_v63, %v4218_v23  ;;  %v4539_v46 = vadd.f32 %v5823_v43, %v4390_v39 }
 0x6ab   : > { %v5810_v34 = vpop.f32.mrf.mxu0  ;;  %v4527_v19 = vpop.f32.mrf.mxu1 }
 0x6ac   : > { %v4392_v44 = vadd.f32 %v5810_v34, %v4233_v14  ;;  %v4538_v20 = vadd.f32 %v4507_v30, %v4389_v57 }
 0x6ad   : > { %v4368_v9 = vpop.f32.mrf.mxu0 }
 0x6ae   : > { %v4391_v58 = vadd.f32 %v4368_v9, %v4228_v54  ;;  %v4541_v5 = vadd.f32 %v5826_v11, %v4392_v44 }
 0x6af   : > { %v5813_v55 = vpop.f32.mrf.mxu0 }
 0x6b0   : > { %v4394_v50 = vadd.f32 %v5813_v55, %v4243_v36  ;;  %v4540_v42 = vadd.f32 %v4517_v26, %v4391_v58 }
 0x6b1   : > { %v4378_v1 = vpop.f32.mrf.mxu0 }
 0x6b2   : > { %v4543_v7 = vadd.f32 %v5829_v51, %v4394_v50  ;;  %v4393_v18 = vadd.f32 %v4378_v1, %v4238_v0 }
 0x6b4   : > { %v4542_v33 = vadd.f32 %v4527_v19, %v4393_v18  ;;  %5830 = vmatprep.subr.mxu0 %v4543_v7 }
 0x6b5   : > { %5831 = vmatpush3.msra.mxu0 %v4543_v7 }
 0x6b6   : > { %5832 = vmatprep.subr.mxu0 %v4542_v33 }
 0x6b7   : > { %5833 = vmatpush3.msra.mxu0 %v4542_v33 }
 0x6b8   : > { %5834 = vmatprep.subr.mxu0 %v4541_v5 }
 0x6b9   : > { %5835 = vmatpush3.msra.mxu0 %v4541_v5 }
 0x6ba   : > { %5836 = vmatprep.subr.mxu0 %v4540_v42 }
 0x6bb   : > { %5837 = vmatpush3.msra.mxu0 %v4540_v42 }
 0x6bc   : > { %5838 = vmatprep.subr.mxu0 %v4539_v46 }
 0x6bd   : > { %5839 = vmatpush3.msra.mxu0 %v4539_v46 }
 0x6be   : > { %5840 = vmatprep.subr.mxu0 %v4538_v20 }
 0x6bf   : > { %5841 = vmatpush3.msra.mxu0 %v4538_v20 }
 0x6c0   : > { %5842 = vmatprep.subr.mxu0 %v4537_v10 }
 0x6c1   : > { %5843 = vmatpush3.msra.mxu0 %v4537_v10 }
 0x6c2   : > { %5844 = vmatprep.subr.mxu0 %v4536_v38 }
 0x6c3   : > { %5845 = vmatpush3.msra.mxu0 %v4536_v38 }
 0x6c4   : > { %5847 = vmatmul.mubr.msk.f32.vlgmr.msra.gmra.mxu0 %vm4574_vm3, %v5075_v48 }
 0x6c5   : > { %5849 = vmatprep.mubr.msk.f32.mxu0 %vm4574_vm3, %v5076_v8 }
 0x6c8   : > { %5850 = vmatmul.mubr.msk.f32.gmra.mxu0 %vm4574_vm3, %v5077_v28 }
 0x784   : > { %v5848_v27 = vpop.f32.mrf.mxu0 }
 0x785   : > { %v4659_v56 = vadd.f32 %v5848_v27, %v5078_v15 }
 0x786   : > { %v4653_v4 = vpop.f32.mrf.mxu0 }
 0x787   : > { %4674 = vst.msk [vmem:[%s217_s14 + $0x8] sm:$0xff] %vm4672_vm5, %v4659_v56  ;;  %v4654_v17 = vadd.f32 %v5078_v15, %v4653_v4 }
 0x788   : > { %v5851_v22 = vpop.f32.mrf.mxu0 }
 0x789   : > { %4673 = vst.msk [vmem:[%s217_s14] sm:$0xff] %vm4672_vm5, %v4654_v17  ;;  %v4669_v2 = vadd.f32 %v5851_v22, %v5078_v15 }
 0x78a   : > { %v4663_v62 = vpop.f32.mrf.mxu0 }
 0x78b   : > { %4676 = vst.msk [vmem:[%s217_s14 + $0x18] sm:$0xff] %vm4672_vm5, %v4669_v2  ;;  %v4664_v41 = vadd.f32 %v5078_v15, %v4663_v62 }
 0x78d   : > { %4675 = vst.msk [vmem:[%s217_s14 + $0x10] sm:$0xff] %vm4672_vm5, %v4664_v41 }
 0x78e   : > { %6007 = shalt.err (!%p6004_p3)
}
 0x78f   : > { %s6008_s8 = scalar_lea.hbm %s7242_s25, 512  ;;  %s6012_s11 = scalar_lea.hbm %s7290_s5, 1024 }
 0x790   : > { %p6009_p4 = scmp.ne.s32.totalorder %s7242_s25, %s6008_s8  ;;  %p6013_p9 = scmp.lt.s32.totalorder %s7242_s25, %s7290_s5 }
 0x791   : > { %p6014_p10 = scmp.lt.s32.totalorder %s6012_s11, %s6008_s8 }
 0x792   : > { %p6010_p7 = pnand %p6009_p4, %p6128_p5 }
 0x793   : > { %p6015_p11 = por %p6014_p10, %p6013_p9 }
 0x794   : > { %p6011_p8 = pneg %p6010_p7 }
 0x796   : > { %p6016_p12 = pnand %p6015_p11, %p6011_p8 }
 0x798   : > { %6019 = shalt.err (!%p6016_p12)
}
 0x799   : > { %s6058_s14 = smov 128   ;;  %s6059_s16 = smov 8  }
 0x79a   : > { %5856 = dma.vmem_to_hbm [thread:$0]  (%p6128_p5), %s7236_s15, 512, %s7242_s25, %s7245_s22, %s6058_s14, %s6058_s14, %s6059_s16  }
 0x79b PF: > { %p5862_p13 = scmp.ge.s32.totalorder %s6054_s21, 2  ;;  %s4706_s17 = sand.u32 1, %s6042_s18  }
 0x79c   : > { %s4707_s23 = scalar_lea.sflag [#allocation3], %s4706_s17 }
 0x79d   : > { %p5859_p0 = pnand %p5862_p13, %p6132_p6 }
 0x79f   : > { %p5860_p1 = pneg %p5859_p0 }
 0x7a1   : > { %6037 = dma.done.wait (%p5860_p1), %s4707_s23, 512  }
 0x7a2   : > { %6039 = vsyncadd (%p5860_p1), %s4707_s23, 4294966784  ;;  %p15_p2 = scmp.ge.s32.totalorder %s6115_s24, 4   ;;  %s7318_s18 = smov %s6046_s19 }
 0x7a3   : > { %s7319_s19 = smov %s6050_s20  ;;  %s7320_s20 = smov %s6126_s27 }
 0x7a4   : > { %s7321_s21 = smov %s6115_s24  ;;  %17 = sbr.rel (!%p15_p2) target bundleno = 3 (0x3), region = 100 }
 0x7a9   :  { %4712 = vsyncpa [#allocation3], 1 }
 0x7aa   :  { %4714 = vsyncpa [#allocation3 + $0x1], 1 }

</bundles_post_ra>
